<compile_context>
chip_gen: v7x
topology: tpu7x:2x2x1
jax: 0.10.0
libtpu: 0.0.40
codegen_flags: <defaults>
</compile_context>

<pallas_src>
import functools

import numpy as np
import jax
import jax.numpy as jnp
from jax.experimental import pallas as pl
from jax.experimental.pallas import tpu as pltpu

BN_EPS = 1e-5
_LANE = 128
_SUB = 16                              # sublane rounding (safe for bf16 packing)
_STREAM_BUDGET = 24 * 1024 * 1024      # target bytes for streamed double-buffered acts


def _round_up(x, m):
    return ((x + m - 1) // m) * m


def _erf_poly(x):
    # Abramowitz & Stegun 7.1.26 (|err| <= 1.5e-7).  Uses only exp (EUP slot)
    # plus ~10 VPU ops; avoids depending on an erf lowering in Mosaic.
    p = 0.3275911
    a1, a2, a3, a4, a5 = 0.254829592, -0.284496736, 1.421413741, -1.453152027, 1.061405429
    ax = jnp.abs(x)
    t = 1.0 / (1.0 + p * ax)
    poly = ((((a5 * t + a4) * t + a3) * t + a2) * t + a1) * t
    y = 1.0 - poly * jnp.exp(-ax * ax)
    return jnp.where(x >= 0, y, -y)


def _gelu(x, approx):
    if approx:
        return jax.nn.gelu(x, approximate=True)        # tanh form (EUP-friendly)
    # exact-erf form == PyTorch nn.GELU() default
    return 0.5 * x * (1.0 + _erf_poly(x * 0.7071067811865476))


def _sigmoid(x):
    return 1.0 / (1.0 + jnp.exp(-x))


# ----------------------------------------------------------------------------
# Kernels
# ----------------------------------------------------------------------------
def _emit_tile_stats(st_ref, u, p_true, tile_p):
    """Per-tile [sum; sum_sq] of u (f32); rows beyond the true pixel count masked."""
    if p_true % tile_p != 0:           # static: only present when P was padded
        start = pl.program_id(0) * tile_p
        rows = start + jax.lax.broadcasted_iota(jnp.int32, (tile_p, 1), 0)
        u = jnp.where(rows < p_true, u, 0.0)
    s = jnp.sum(u, axis=0, keepdims=True)              # (1, W)
    q = jnp.sum(u * u, axis=0, keepdims=True)          # (1, W)
    st_ref[...] = jnp.concatenate([s, q], axis=0)[None, :, :]


def _head_kernel(x_ref, wh_ref, bh_ref, w1_ref, h_ref, u_ref, st_ref,
                 *, p_true, tile_p, approx_gelu):
    # head: 1x1 conv + GELU, fused with the FIRST block's conv1 (conv1 bias is
    # dropped: exactly cancelled by the following BN's mean subtraction).
    cdt = w1_ref.dtype
    x = x_ref[...].astype(cdt)
    h = _gelu(jnp.dot(x, wh_ref[...], preferred_element_type=jnp.float32)
              + bh_ref[...], approx_gelu)
    u = jnp.dot(h.astype(cdt), w1_ref[...], preferred_element_type=jnp.float32)
    h_ref[...] = h.astype(h_ref.dtype)
    u_ref[...] = u.astype(u_ref.dtype)
    _emit_tile_stats(st_ref, u, p_true, tile_p)


def _mid_kernel(u_ref, sc_ref, sh_ref, w2_ref, v_ref, st_ref,
                *, p_true, tile_p, approx_gelu):
    # BN1 (fused single-pass affine) -> GELU -> conv2 (bias dropped: cancelled by BN2).
    cdt = w2_ref.dtype
    u = u_ref[...].astype(jnp.float32)
    t = _gelu(u * sc_ref[...] + sh_ref[...], approx_gelu)
    v = jnp.dot(t.astype(cdt), w2_ref[...], preferred_element_type=jnp.float32)
    v_ref[...] = v.astype(v_ref.dtype)
    _emit_tile_stats(st_ref, v, p_true, tile_p)


def _join_kernel(z_ref, v_ref, sc_ref, sh_ref, w1n_ref, zo_ref, u_ref, st_ref,
                 *, p_true, tile_p):
    # BN2 (fused affine) + resnet skip, fused with the NEXT block's conv1.
    cdt = w1n_ref.dtype
    z_new = (z_ref[...].astype(jnp.float32)
             + v_ref[...].astype(jnp.float32) * sc_ref[...] + sh_ref[...])
    u = jnp.dot(z_new.astype(cdt), w1n_ref[...], preferred_element_type=jnp.float32)
    zo_ref[...] = z_new.astype(zo_ref.dtype)
    u_ref[...] = u.astype(u_ref.dtype)
    _emit_tile_stats(st_ref, u, p_true, tile_p)


def _tail_kernel(z_ref, v_ref, sc_ref, sh_ref, h_ref, wt_ref, bt_ref, o_ref):
    # Last block's BN2 + skip, body skip (+h), tail 1x1 conv (lane-padded) + sigmoid.
    cdt = wt_ref.dtype
    z_new = (z_ref[...].astype(jnp.float32)
             + v_ref[...].astype(jnp.float32) * sc_ref[...] + sh_ref[...])
    z_fin = z_new + h_ref[...].astype(jnp.float32)
    y = jnp.dot(z_fin.astype(cdt), wt_ref[...],
                preferred_element_type=jnp.float32) + bt_ref[...]
    o_ref[...] = _sigmoid(y)


# ----------------------------------------------------------------------------
# XLA glue: fold per-tile BN partials into a fused (scale, shift) affine
# ----------------------------------------------------------------------------
def _bn_affine(stats, gamma, beta, p_true):
    agg = jnp.sum(stats, axis=0)                       # (2, W)
    mean = agg[0:1] / float(p_true)                    # (1, W)
    var = jnp.maximum(agg[1:2] / float(p_true) - mean * mean, 0.0)
    scale = gamma * jax.lax.rsqrt(var + BN_EPS)
    shift = beta - mean * scale
    return scale, shift


# ----------------------------------------------------------------------------
# Tiling / VMEM sizing (from buffer math, v7x 64 MiB-safe)
# ----------------------------------------------------------------------------
def _pick_tile_p(P, wc_pad, act_bytes):
    max_cap = 4096 if act_bytes <= 2 else 2048
    # join kernel streams 4 (tile_p, wc_pad) act refs, double-buffered
    cap = _STREAM_BUDGET // (4 * 2 * wc_pad * act_bytes)
    cap = max(_SUB, min((cap // _SUB) * _SUB, max_cap))
    if P <= 2 * cap:                   # always give the grid >= 2 steps (v7x megacore)
        return max(_SUB, _round_up(pl.cdiv(P, 2), _SUB))
    return cap


def _vmem_limit_bytes(tile_p, wc_pad, out_pad, act_bytes):
    streamed_join = 4 * 2 * tile_p * wc_pad * act_bytes
    streamed_tail = 3 * 2 * tile_p * wc_pad * act_bytes + 2 * tile_p * out_pad * 4
    resident = 2 * (wc_pad * wc_pad * act_bytes + wc_pad * out_pad * act_bytes
                    + 8 * wc_pad * 4)
    est = max(streamed_join, streamed_tail) + resident + (4 << 20)
    return int(min(max(est, 16 << 20), 48 << 20))


# ----------------------------------------------------------------------------
# Wrapper
# ----------------------------------------------------------------------------
def r2l_body_pallas(x_nchw, params, n_block, *, act_dtype=jnp.bfloat16,
                    gelu_approx=False, tile_p=None):
    assert n_block >= 1
    N, Cin, H, Wsp = x_nchw.shape
    P = N * H * Wsp
    Wc = params["wh"].shape[-1]
    out_dim = params["wt"].shape[-1]

    wc_pad = _round_up(Wc, _LANE)
    out_pad = _round_up(out_dim, _LANE)
    cdt = jnp.dtype(act_dtype)
    act_bytes = cdt.itemsize

    if tile_p is None:
        tile_p = _pick_tile_p(P, wc_pad, act_bytes)
    num_tiles = pl.cdiv(P, tile_p)
    P_pad = num_tiles * tile_p

    # ---- pixels-major layout + zero padding (rows and channel lanes) -------
    x_pc = jnp.transpose(x_nchw, (0, 2, 3, 1)).reshape(P, Cin).astype(jnp.float32)
    if P_pad != P:
        x_pc = jnp.pad(x_pc, ((0, P_pad - P), (0, 0)))

    dc = wc_pad - Wc

    def pad_c(a):                                      # zero-pad channel (last) dim
        return jnp.pad(a, [(0, 0)] * (a.ndim - 1) + [(0, dc)])

    wh = pad_c(params["wh"]).astype(cdt)
    bh = pad_c(params["bh"]).astype(jnp.float32)
    w1 = jnp.pad(params["w1"], ((0, 0), (0, dc), (0, dc))).astype(cdt)
    w2 = jnp.pad(params["w2"], ((0, 0), (0, dc), (0, dc))).astype(cdt)
    g1 = pad_c(params["g1"]).astype(jnp.float32)       # gamma padded with 0 -> scale 0
    be1 = pad_c(params["be1"]).astype(jnp.float32)
    g2 = pad_c(params["g2"]).astype(jnp.float32)
    be2 = pad_c(params["be2"]).astype(jnp.float32)
    wt = jnp.pad(params["wt"], ((0, dc), (0, out_pad - out_dim))).astype(cdt)
    bt = jnp.pad(params["bt"], ((0, 0), (0, out_pad - out_dim))).astype(jnp.float32)

    cp = pltpu.CompilerParams(
        dimension_semantics=("parallel",),
        vmem_limit_bytes=_vmem_limit_bytes(tile_p, wc_pad, out_pad, act_bytes))
    grid = (num_tiles,)

    def row_spec(c):
        return pl.BlockSpec((tile_p, c), lambda i: (i, 0))

    def rep_spec(a):
        nd = a.ndim
        return pl.BlockSpec(a.shape, lambda i: (0,) * nd)

    st_spec = pl.BlockSpec((1, 2, wc_pad), lambda i: (i, 0, 0))
    st_shape = jax.ShapeDtypeStruct((num_tiles, 2, wc_pad), jnp.float32)
    act_shape = jax.ShapeDtypeStruct((P_pad, wc_pad), cdt)

    # --- head (+ first block's conv1) ---------------------------------------
    h, u, st = pl.pallas_call(
        functools.partial(_head_kernel, p_true=P, tile_p=tile_p,
                          approx_gelu=gelu_approx),
        grid=grid,
        in_specs=[row_spec(Cin), rep_spec(wh), rep_spec(bh), rep_spec(w1[0])],
        out_specs=(row_spec(wc_pad), row_spec(wc_pad), st_spec),
        out_shape=(act_shape, act_shape, st_shape),
        compiler_params=cp,
    )(x_pc, wh, bh, w1[0])

    z = h
    out_pc = None
    for blk in range(n_block):
        # BN1 affine, then BN1 -> GELU -> conv2 (+ stats of conv2 output)
        sc1, sh1 = _bn_affine(st, g1[blk], be1[blk], P)
        v, st = pl.pallas_call(
            functools.partial(_mid_kernel, p_true=P, tile_p=tile_p,
                              approx_gelu=gelu_approx),
            grid=grid,
            in_specs=[row_spec(wc_pad), rep_spec(sc1), rep_spec(sh1),
                      rep_spec(w2[blk])],
            out_specs=(row_spec(wc_pad), st_spec),
            out_shape=(act_shape, st_shape),
            compiler_params=cp,
        )(u, sc1, sh1, w2[blk])

        # BN2 affine, then either join with the next block's conv1 or finish.
        sc2, sh2 = _bn_affine(st, g2[blk], be2[blk], P)
        if blk + 1 < n_block:
            z, u, st = pl.pallas_call(
                functools.partial(_join_kernel, p_true=P, tile_p=tile_p),
                grid=grid,
                in_specs=[row_spec(wc_pad), row_spec(wc_pad), rep_spec(sc2),
                          rep_spec(sh2), rep_spec(w1[blk + 1])],
                out_specs=(row_spec(wc_pad), row_spec(wc_pad), st_spec),
                out_shape=(act_shape, act_shape, st_shape),
                compiler_params=cp,
                # z is dead after this call for blk>0; for blk==0 z is h, which
                # the tail still needs, so don't alias it there.
                input_output_aliases=({0: 0} if blk > 0 else {}),
            )(z, v, sc2, sh2, w1[blk + 1])
        else:
            out_pc = pl.pallas_call(
                _tail_kernel,
                grid=grid,
                in_specs=[row_spec(wc_pad), row_spec(wc_pad), rep_spec(sc2),
                          rep_spec(sh2), row_spec(wc_pad), rep_spec(wt),
                          rep_spec(bt)],
                out_specs=row_spec(out_pad),
                out_shape=jax.ShapeDtypeStruct((P_pad, out_pad), jnp.float32),
                compiler_params=cp,
            )(z, v, sc2, sh2, h, wt, bt)

    y = out_pc[:P, :out_dim]
    return jnp.transpose(y.reshape(N, H, Wsp, out_dim), (0, 3, 1, 2))


# ----------------------------------------------------------------------------
# Pure-JAX reference (faithful: two-pass BN, conv biases kept, exact erf GELU)
# ----------------------------------------------------------------------------
def _gelu_ref(x):
    return 0.5 * x * (1.0 + jax.lax.erf(x * 0.7071067811865476))


def _bn_train(x, gamma, beta):
    mean = jnp.mean(x, axis=0, keepdims=True)
    var = jnp.mean(jnp.square(x - mean), axis=0, keepdims=True)
    return (x - mean) * jax.lax.rsqrt(var + BN_EPS) * gamma + beta


def r2l_body_ref(x_nchw, params, n_block):
    N, C, H, Wsp = x_nchw.shape
    x = jnp.transpose(x_nchw, (0, 2, 3, 1)).reshape(N * H * Wsp, C)
    h = _gelu_ref(x @ params["wh"] + params["bh"])
    z = h
    for blk in range(n_block):
        t = z @ params["w1"][blk] + params["b1"][blk]
        t = _bn_train(t, params["g1"][blk], params["be1"][blk])
        t = _gelu_ref(t)
        t = t @ params["w2"][blk] + params["b2"][blk]
        t = _bn_train(t, params["g2"][blk], params["be2"][blk])
        z = z + t
    z = z + h
    y = jax.nn.sigmoid(z @ params["wt"] + params["bt"])
    return jnp.transpose(y.reshape(N, H, Wsp, -1), (0, 3, 1, 2))


def init_params(key, input_dim, W, output_dim, n_block):
    ks = jax.random.split(key, 8)

    def wmat(k, shape, fan_in):
        return jax.random.normal(k, shape, jnp.float32) / jnp.sqrt(float(fan_in))

    # Conv2d(out,in,1,1) weights stored transposed as (in, out) so kernels do x @ W.
    # BN gamma=1, beta=0 (PyTorch default).  b1/b2 exist but are cancelled by
    # training-mode BN (the Pallas path drops them; the reference keeps them).
    return dict(
        wh=wmat(ks[0], (input_dim, W), input_dim),
        bh=jax.random.normal(ks[1], (1, W), jnp.float32) * 0.01,
        w1=wmat(ks[2], (n_block, W, W), W),
        b1=jax.random.normal(ks[3], (n_block, 1, W), jnp.float32) * 0.01,
        g1=jnp.ones((n_block, 1, W), jnp.float32),
        be1=jnp.zeros((n_block, 1, W), jnp.float32),
        w2=wmat(ks[4], (n_block, W, W), W),
        b2=jax.random.normal(ks[5], (n_block, 1, W), jnp.float32) * 0.01,
        g2=jnp.ones((n_block, 1, W), jnp.float32),
        be2=jnp.zeros((n_block, 1, W), jnp.float32),
        wt=wmat(ks[6], (W, output_dim), W),
        bt=jax.random.normal(ks[7], (1, output_dim), jnp.float32) * 0.01,
    )


if __name__ == "__main__":
    # Small config consistent with R2L_body(input_dim=4, D, W, output_dim=3)
    input_dim, D, Wc, output_dim = 4, 6, 32, 3          # n_block = (D-2)//2 = 2
    n_block = (D - 2) // 2
    N, H, Wsp = 2, 16, 16

    key = jax.random.PRNGKey(0)
    kx, kp = jax.random.split(key)
    x = jax.random.normal(kx, (N, input_dim, H, Wsp), jnp.float32)
    params = init_params(kp, input_dim, Wc, output_dim, n_block)

    ref = jax.block_until_ready(r2l_body_ref(x, params, n_block))

    # Default (fast) path: bf16 activation storage + bf16 MXU operands.
    fwd_bf16 = jax.jit(lambda xx, pp: r2l_body_pallas(xx, pp, n_block))
    out = jax.block_until_ready(fwd_bf16(x, params))
    assert out.shape == (N, output_dim, H, Wsp)
    np.testing.assert_allclose(np.asarray(out), np.asarray(ref), rtol=3e-2, atol=3e-2)

    # f32 path (tight check of the BN-split / bias-drop / fusion structure).
    fwd_f32 = jax.jit(
        lambda xx, pp: r2l_body_pallas(xx, pp, n_block, act_dtype=jnp.float32))
    out32 = jax.block_until_ready(fwd_f32(x, params))
    np.testing.assert_allclose(np.asarray(out32), np.asarray(ref), rtol=1e-3, atol=1e-3)

    print("KERNEL_OK")
</pallas_src>

<mosaic_0001>
module attributes {stable_mosaic.version = 11 : i64} {
  func.func @_head_kernel(%arg0: i32, %arg1: memref<256x4xf32, #tpu.memory_space<vmem>>, %arg2: memref<4x128xbf16, #tpu.memory_space<vmem>>, %arg3: memref<1x128xf32, #tpu.memory_space<vmem>>, %arg4: memref<128x128xbf16, #tpu.memory_space<vmem>>, %arg5: memref<256x128xbf16, #tpu.memory_space<vmem>>, %arg6: memref<256x128xbf16, #tpu.memory_space<vmem>>, %arg7: memref<1x2x128xf32, #tpu.memory_space<vmem>>) attributes {dimension_semantics = [#tpu.dimension_semantics<parallel>], iteration_bounds = array<i64: 2>, scalar_prefetch = 0 : i64, scratch_operands = 0 : i64, tpu.core_type = #tpu.core_type<tc>, window_params = [{transform_indices = @transform_0, window_bounds = array<i64: 256, 4>}, {pipeline_mode = #tpu.pipeline_mode<synchronous>, transform_indices = @transform_1, window_bounds = array<i64: 4, 128>}, {pipeline_mode = #tpu.pipeline_mode<synchronous>, transform_indices = @transform_2, window_bounds = array<i64: 1, 128>}, {pipeline_mode = #tpu.pipeline_mode<synchronous>, transform_indices = @transform_3, window_bounds = array<i64: 128, 128>}, {transform_indices = @transform_4, window_bounds = array<i64: 256, 128>}, {transform_indices = @transform_5, window_bounds = array<i64: 256, 128>}, {transform_indices = @transform_6, window_bounds = array<i64: 1, 2, 128>}]} {
    %c0 = arith.constant 0 : index
    %c0_0 = arith.constant 0 : index
    %0 = vector.load %arg1[%c0, %c0_0] : memref<256x4xf32, #tpu.memory_space<vmem>>, vector<256x4xf32>
    %1 = arith.truncf %0 : vector<256x4xf32> to vector<256x4xbf16>
    %c0_1 = arith.constant 0 : index
    %c0_2 = arith.constant 0 : index
    %2 = vector.load %arg2[%c0_1, %c0_2] : memref<4x128xbf16, #tpu.memory_space<vmem>>, vector<4x128xbf16>
    %cst = arith.constant dense<0.000000e+00> : vector<256x128xf32>
    %3 = tpu.matmul %1, %2, %cst {dimension_numbers = #tpu.dot_dimension_numbers<[1], [0], [0], [1], [0, 0, 1, 1], [], []>} : vector<256x4xbf16>, vector<4x128xbf16>, vector<256x128xf32> -> vector<256x128xf32>
    %c0_3 = arith.constant 0 : index
    %c0_4 = arith.constant 0 : index
    %4 = vector.load %arg3[%c0_3, %c0_4] : memref<1x128xf32, #tpu.memory_space<vmem>>, vector<1x128xf32>
    %5 = vector.broadcast %4 : vector<1x128xf32> to vector<256x128xf32>
    %6 = arith.addf %3, %5 : vector<256x128xf32>
    %cst_5 = arith.constant 5.000000e-01 : f32
    %7 = vector.broadcast %cst_5 : f32 to vector<256x128xf32>
    %8 = arith.mulf %7, %6 : vector<256x128xf32>
    %cst_6 = arith.constant 0.707106769 : f32
    %9 = vector.broadcast %cst_6 : f32 to vector<256x128xf32>
    %10 = arith.mulf %6, %9 : vector<256x128xf32>
    %11 = math.absf %10 : vector<256x128xf32>
    %cst_7 = arith.constant 0.327591091 : f32
    %12 = vector.broadcast %cst_7 : f32 to vector<256x128xf32>
    %13 = arith.mulf %12, %11 : vector<256x128xf32>
    %cst_8 = arith.constant 1.000000e+00 : f32
    %14 = vector.broadcast %cst_8 : f32 to vector<256x128xf32>
    %15 = arith.addf %14, %13 : vector<256x128xf32>
    %cst_9 = arith.constant 1.000000e+00 : f32
    %16 = vector.broadcast %cst_9 : f32 to vector<256x128xf32>
    %17 = arith.divf %16, %15 : vector<256x128xf32>
    %cst_10 = arith.constant 1.06140542 : f32
    %18 = vector.broadcast %cst_10 : f32 to vector<256x128xf32>
    %19 = arith.mulf %18, %17 : vector<256x128xf32>
    %cst_11 = arith.constant -1.45315206 : f32
    %20 = vector.broadcast %cst_11 : f32 to vector<256x128xf32>
    %21 = arith.addf %19, %20 : vector<256x128xf32>
    %22 = arith.mulf %21, %17 : vector<256x128xf32>
    %cst_12 = arith.constant 1.42141378 : f32
    %23 = vector.broadcast %cst_12 : f32 to vector<256x128xf32>
    %24 = arith.addf %22, %23 : vector<256x128xf32>
    %25 = arith.mulf %24, %17 : vector<256x128xf32>
    %cst_13 = arith.constant -0.284496725 : f32
    %26 = vector.broadcast %cst_13 : f32 to vector<256x128xf32>
    %27 = arith.addf %25, %26 : vector<256x128xf32>
    %28 = arith.mulf %27, %17 : vector<256x128xf32>
    %cst_14 = arith.constant 0.254829586 : f32
    %29 = vector.broadcast %cst_14 : f32 to vector<256x128xf32>
    %30 = arith.addf %28, %29 : vector<256x128xf32>
    %31 = arith.mulf %30, %17 : vector<256x128xf32>
    %cst_15 = arith.constant 0.000000e+00 : f32
    %32 = vector.broadcast %cst_15 : f32 to vector<256x128xf32>
    %33 = arith.subf %32, %11 : vector<256x128xf32>
    %34 = arith.mulf %33, %11 : vector<256x128xf32>
    %35 = math.exp %34 : vector<256x128xf32>
    %36 = arith.mulf %31, %35 : vector<256x128xf32>
    %cst_16 = arith.constant 1.000000e+00 : f32
    %37 = vector.broadcast %cst_16 : f32 to vector<256x128xf32>
    %38 = arith.subf %37, %36 : vector<256x128xf32>
    %cst_17 = arith.constant 0.000000e+00 : f32
    %39 = vector.broadcast %cst_17 : f32 to vector<256x128xf32>
    %40 = arith.cmpf oge, %10, %39 : vector<256x128xf32>
    %cst_18 = arith.constant 0.000000e+00 : f32
    %41 = vector.broadcast %cst_18 : f32 to vector<256x128xf32>
    %42 = arith.subf %41, %38 : vector<256x128xf32>
    %43 = arith.select %40, %38, %42 : vector<256x128xi1>, vector<256x128xf32>
    %cst_19 = arith.constant 1.000000e+00 : f32
    %44 = vector.broadcast %cst_19 : f32 to vector<256x128xf32>
    %45 = arith.addf %44, %43 : vector<256x128xf32>
    %46 = arith.mulf %8, %45 : vector<256x128xf32>
    %47 = arith.truncf %46 : vector<256x128xf32> to vector<256x128xbf16>
    %c0_20 = arith.constant 0 : index
    %c0_21 = arith.constant 0 : index
    %48 = vector.load %arg4[%c0_20, %c0_21] : memref<128x128xbf16, #tpu.memory_space<vmem>>, vector<128x128xbf16>
    %cst_22 = arith.constant dense<0.000000e+00> : vector<256x128xf32>
    %49 = tpu.matmul %47, %48, %cst_22 {dimension_numbers = #tpu.dot_dimension_numbers<[1], [0], [0], [1], [0, 0, 1, 1], [], []>} : vector<256x128xbf16>, vector<128x128xbf16>, vector<256x128xf32> -> vector<256x128xf32>
    %50 = arith.truncf %46 : vector<256x128xf32> to vector<256x128xbf16>
    %c0_23 = arith.constant 0 : index
    %c0_24 = arith.constant 0 : index
    %51 = vector.load %arg5[%c0_23, %c0_24] : memref<256x128xbf16, #tpu.memory_space<vmem>>, vector<256x128xbf16>
    tpu.vector_store %arg5[%c0_23, %c0_24], %50 {strides = array<i32>} : memref<256x128xbf16, #tpu.memory_space<vmem>>, vector<256x128xbf16>,
    %52 = arith.truncf %49 : vector<256x128xf32> to vector<256x128xbf16>
    %c0_25 = arith.constant 0 : index
    %c0_26 = arith.constant 0 : index
    %53 = vector.load %arg6[%c0_25, %c0_26] : memref<256x128xbf16, #tpu.memory_space<vmem>>, vector<256x128xbf16>
    tpu.vector_store %arg6[%c0_25, %c0_26], %52 {strides = array<i32>} : memref<256x128xbf16, #tpu.memory_space<vmem>>, vector<256x128xbf16>,
    %cst_27 = arith.constant dense<0.000000e+00> : vector<128xf32>
    %54 = vector.multi_reduction <add>, %49, %cst_27 [0] : vector<256x128xf32> to vector<128xf32>
    %55 = vector.shape_cast %54 : vector<128xf32> to vector<1x128xf32>
    %56 = arith.mulf %49, %49 : vector<256x128xf32>
    %cst_28 = arith.constant dense<0.000000e+00> : vector<128xf32>
    %57 = vector.multi_reduction <add>, %56, %cst_28 [0] : vector<256x128xf32> to vector<128xf32>
    %58 = vector.shape_cast %57 : vector<128xf32> to vector<1x128xf32>
    %59 = tpu.concatenate %55, %58 in 0 : vector<1x128xf32>, vector<1x128xf32> -> vector<2x128xf32>
    %60 = vector.shape_cast %59 : vector<2x128xf32> to vector<1x2x128xf32>
    %c0_29 = arith.constant 0 : index
    %c0_30 = arith.constant 0 : index
    %c0_31 = arith.constant 0 : index
    %61 = vector.load %arg7[%c0_29, %c0_30, %c0_31] : memref<1x2x128xf32, #tpu.memory_space<vmem>>, vector<1x2x128xf32>
    tpu.vector_store %arg7[%c0_29, %c0_30, %c0_31], %60 {strides = array<i32>} : memref<1x2x128xf32, #tpu.memory_space<vmem>>, vector<1x2x128xf32>,
    return
  }
  func.func @transform_0(%arg0: i32) -> (i32, i32) {
    %c0_i32 = arith.constant 0 : i32
    %c0_i32_0 = arith.constant 0 : i32
    return %arg0, %c0_i32 : i32, i32
  }
  func.func @transform_1(%arg0: i32) -> (i32, i32) {
    %c0_i32 = arith.constant 0 : i32
    %c0_i32_0 = arith.constant 0 : i32
    %c0_i32_1 = arith.constant 0 : i32
    return %c0_i32, %c0_i32_0 : i32, i32
  }
  func.func @transform_2(%arg0: i32) -> (i32, i32) {
    %c0_i32 = arith.constant 0 : i32
    %c0_i32_0 = arith.constant 0 : i32
    %c0_i32_1 = arith.constant 0 : i32
    return %c0_i32, %c0_i32_0 : i32, i32
  }
  func.func @transform_3(%arg0: i32) -> (i32, i32) {
    %c0_i32 = arith.constant 0 : i32
    %c0_i32_0 = arith.constant 0 : i32
    %c0_i32_1 = arith.constant 0 : i32
    return %c0_i32, %c0_i32_0 : i32, i32
  }
  func.func @transform_4(%arg0: i32) -> (i32, i32) {
    %c0_i32 = arith.constant 0 : i32
    %c0_i32_0 = arith.constant 0 : i32
    return %arg0, %c0_i32 : i32, i32
  }
  func.func @transform_5(%arg0: i32) -> (i32, i32) {
    %c0_i32 = arith.constant 0 : i32
    %c0_i32_0 = arith.constant 0 : i32
    return %arg0, %c0_i32 : i32, i32
  }
  func.func @transform_6(%arg0: i32) -> (i32, i32, i32) {
    %c0_i32 = arith.constant 0 : i32
    %c0_i32_0 = arith.constant 0 : i32
    %c0_i32_1 = arith.constant 0 : i32
    return %arg0, %c0_i32, %c0_i32_0 : i32, i32, i32
  }
}

module attributes {stable_mosaic.version = 11 : i64} {
  func.func @_mid_kernel(%arg0: i32, %arg1: memref<256x128xbf16, #tpu.memory_space<vmem>>, %arg2: memref<1x128xf32, #tpu.memory_space<vmem>>, %arg3: memref<1x128xf32, #tpu.memory_space<vmem>>, %arg4: memref<128x128xbf16, #tpu.memory_space<vmem>>, %arg5: memref<256x128xbf16, #tpu.memory_space<vmem>>, %arg6: memref<1x2x128xf32, #tpu.memory_space<vmem>>) attributes {dimension_semantics = [#tpu.dimension_semantics<parallel>], iteration_bounds = array<i64: 2>, scalar_prefetch = 0 : i64, scratch_operands = 0 : i64, tpu.core_type = #tpu.core_type<tc>, window_params = [{transform_indices = @transform_0, window_bounds = array<i64: 256, 128>}, {pipeline_mode = #tpu.pipeline_mode<synchronous>, transform_indices = @transform_1, window_bounds = array<i64: 1, 128>}, {pipeline_mode = #tpu.pipeline_mode<synchronous>, transform_indices = @transform_2, window_bounds = array<i64: 1, 128>}, {pipeline_mode = #tpu.pipeline_mode<synchronous>, transform_indices = @transform_3, window_bounds = array<i64: 128, 128>}, {transform_indices = @transform_4, window_bounds = array<i64: 256, 128>}, {transform_indices = @transform_5, window_bounds = array<i64: 1, 2, 128>}]} {
    %c0 = arith.constant 0 : index
    %c0_0 = arith.constant 0 : index
    %0 = vector.load %arg1[%c0, %c0_0] : memref<256x128xbf16, #tpu.memory_space<vmem>>, vector<256x128xbf16>
    %1 = arith.extf %0 : vector<256x128xbf16> to vector<256x128xf32>
    %c0_1 = arith.constant 0 : index
    %c0_2 = arith.constant 0 : index
    %2 = vector.load %arg2[%c0_1, %c0_2] : memref<1x128xf32, #tpu.memory_space<vmem>>, vector<1x128xf32>
    %3 = vector.broadcast %2 : vector<1x128xf32> to vector<256x128xf32>
    %4 = arith.mulf %1, %3 : vector<256x128xf32>
    %c0_3 = arith.constant 0 : index
    %c0_4 = arith.constant 0 : index
    %5 = vector.load %arg3[%c0_3, %c0_4] : memref<1x128xf32, #tpu.memory_space<vmem>>, vector<1x128xf32>
    %6 = vector.broadcast %5 : vector<1x128xf32> to vector<256x128xf32>
    %7 = arith.addf %4, %6 : vector<256x128xf32>
    %cst = arith.constant 5.000000e-01 : f32
    %8 = vector.broadcast %cst : f32 to vector<256x128xf32>
    %9 = arith.mulf %8, %7 : vector<256x128xf32>
    %cst_5 = arith.constant 0.707106769 : f32
    %10 = vector.broadcast %cst_5 : f32 to vector<256x128xf32>
    %11 = arith.mulf %7, %10 : vector<256x128xf32>
    %12 = math.absf %11 : vector<256x128xf32>
    %cst_6 = arith.constant 0.327591091 : f32
    %13 = vector.broadcast %cst_6 : f32 to vector<256x128xf32>
    %14 = arith.mulf %13, %12 : vector<256x128xf32>
    %cst_7 = arith.constant 1.000000e+00 : f32
    %15 = vector.broadcast %cst_7 : f32 to vector<256x128xf32>
    %16 = arith.addf %15, %14 : vector<256x128xf32>
    %cst_8 = arith.constant 1.000000e+00 : f32
    %17 = vector.broadcast %cst_8 : f32 to vector<256x128xf32>
    %18 = arith.divf %17, %16 : vector<256x128xf32>
    %cst_9 = arith.constant 1.06140542 : f32
    %19 = vector.broadcast %cst_9 : f32 to vector<256x128xf32>
    %20 = arith.mulf %19, %18 : vector<256x128xf32>
    %cst_10 = arith.constant -1.45315206 : f32
    %21 = vector.broadcast %cst_10 : f32 to vector<256x128xf32>
    %22 = arith.addf %20, %21 : vector<256x128xf32>
    %23 = arith.mulf %22, %18 : vector<256x128xf32>
    %cst_11 = arith.constant 1.42141378 : f32
    %24 = vector.broadcast %cst_11 : f32 to vector<256x128xf32>
    %25 = arith.addf %23, %24 : vector<256x128xf32>
    %26 = arith.mulf %25, %18 : vector<256x128xf32>
    %cst_12 = arith.constant -0.284496725 : f32
    %27 = vector.broadcast %cst_12 : f32 to vector<256x128xf32>
    %28 = arith.addf %26, %27 : vector<256x128xf32>
    %29 = arith.mulf %28, %18 : vector<256x128xf32>
    %cst_13 = arith.constant 0.254829586 : f32
    %30 = vector.broadcast %cst_13 : f32 to vector<256x128xf32>
    %31 = arith.addf %29, %30 : vector<256x128xf32>
    %32 = arith.mulf %31, %18 : vector<256x128xf32>
    %cst_14 = arith.constant 0.000000e+00 : f32
    %33 = vector.broadcast %cst_14 : f32 to vector<256x128xf32>
    %34 = arith.subf %33, %12 : vector<256x128xf32>
    %35 = arith.mulf %34, %12 : vector<256x128xf32>
    %36 = math.exp %35 : vector<256x128xf32>
    %37 = arith.mulf %32, %36 : vector<256x128xf32>
    %cst_15 = arith.constant 1.000000e+00 : f32
    %38 = vector.broadcast %cst_15 : f32 to vector<256x128xf32>
    %39 = arith.subf %38, %37 : vector<256x128xf32>
    %cst_16 = arith.constant 0.000000e+00 : f32
    %40 = vector.broadcast %cst_16 : f32 to vector<256x128xf32>
    %41 = arith.cmpf oge, %11, %40 : vector<256x128xf32>
    %cst_17 = arith.constant 0.000000e+00 : f32
    %42 = vector.broadcast %cst_17 : f32 to vector<256x128xf32>
    %43 = arith.subf %42, %39 : vector<256x128xf32>
    %44 = arith.select %41, %39, %43 : vector<256x128xi1>, vector<256x128xf32>
    %cst_18 = arith.constant 1.000000e+00 : f32
    %45 = vector.broadcast %cst_18 : f32 to vector<256x128xf32>
    %46 = arith.addf %45, %44 : vector<256x128xf32>
    %47 = arith.mulf %9, %46 : vector<256x128xf32>
    %48 = arith.truncf %47 : vector<256x128xf32> to vector<256x128xbf16>
    %c0_19 = arith.constant 0 : index
    %c0_20 = arith.constant 0 : index
    %49 = vector.load %arg4[%c0_19, %c0_20] : memref<128x128xbf16, #tpu.memory_space<vmem>>, vector<128x128xbf16>
    %cst_21 = arith.constant dense<0.000000e+00> : vector<256x128xf32>
    %50 = tpu.matmul %48, %49, %cst_21 {dimension_numbers = #tpu.dot_dimension_numbers<[1], [0], [0], [1], [0, 0, 1, 1], [], []>} : vector<256x128xbf16>, vector<128x128xbf16>, vector<256x128xf32> -> vector<256x128xf32>
    %51 = arith.truncf %50 : vector<256x128xf32> to vector<256x128xbf16>
    %c0_22 = arith.constant 0 : index
    %c0_23 = arith.constant 0 : index
    %52 = vector.load %arg5[%c0_22, %c0_23] : memref<256x128xbf16, #tpu.memory_space<vmem>>, vector<256x128xbf16>
    tpu.vector_store %arg5[%c0_22, %c0_23], %51 {strides = array<i32>} : memref<256x128xbf16, #tpu.memory_space<vmem>>, vector<256x128xbf16>,
    %cst_24 = arith.constant dense<0.000000e+00> : vector<128xf32>
    %53 = vector.multi_reduction <add>, %50, %cst_24 [0] : vector<256x128xf32> to vector<128xf32>
    %54 = vector.shape_cast %53 : vector<128xf32> to vector<1x128xf32>
    %55 = arith.mulf %50, %50 : vector<256x128xf32>
    %cst_25 = arith.constant dense<0.000000e+00> : vector<128xf32>
    %56 = vector.multi_reduction <add>, %55, %cst_25 [0] : vector<256x128xf32> to vector<128xf32>
    %57 = vector.shape_cast %56 : vector<128xf32> to vector<1x128xf32>
    %58 = tpu.concatenate %54, %57 in 0 : vector<1x128xf32>, vector<1x128xf32> -> vector<2x128xf32>
    %59 = vector.shape_cast %58 : vector<2x128xf32> to vector<1x2x128xf32>
    %c0_26 = arith.constant 0 : index
    %c0_27 = arith.constant 0 : index
    %c0_28 = arith.constant 0 : index
    %60 = vector.load %arg6[%c0_26, %c0_27, %c0_28] : memref<1x2x128xf32, #tpu.memory_space<vmem>>, vector<1x2x128xf32>
    tpu.vector_store %arg6[%c0_26, %c0_27, %c0_28], %59 {strides = array<i32>} : memref<1x2x128xf32, #tpu.memory_space<vmem>>, vector<1x2x128xf32>,
    return
  }
  func.func @transform_0(%arg0: i32) -> (i32, i32) {
    %c0_i32 = arith.constant 0 : i32
    %c0_i32_0 = arith.constant 0 : i32
    return %arg0, %c0_i32 : i32, i32
  }
  func.func @transform_1(%arg0: i32) -> (i32, i32) {
    %c0_i32 = arith.constant 0 : i32
    %c0_i32_0 = arith.constant 0 : i32
    %c0_i32_1 = arith.constant 0 : i32
    return %c0_i32, %c0_i32_0 : i32, i32
  }
  func.func @transform_2(%arg0: i32) -> (i32, i32) {
    %c0_i32 = arith.constant 0 : i32
    %c0_i32_0 = arith.constant 0 : i32
    %c0_i32_1 = arith.constant 0 : i32
    return %c0_i32, %c0_i32_0 : i32, i32
  }
  func.func @transform_3(%arg0: i32) -> (i32, i32) {
    %c0_i32 = arith.constant 0 : i32
    %c0_i32_0 = arith.constant 0 : i32
    %c0_i32_1 = arith.constant 0 : i32
    return %c0_i32, %c0_i32_0 : i32, i32
  }
  func.func @transform_4(%arg0: i32) -> (i32, i32) {
    %c0_i32 = arith.constant 0 : i32
    %c0_i32_0 = arith.constant 0 : i32
    return %arg0, %c0_i32 : i32, i32
  }
  func.func @transform_5(%arg0: i32) -> (i32, i32, i32) {
    %c0_i32 = arith.constant 0 : i32
    %c0_i32_0 = arith.constant 0 : i32
    %c0_i32_1 = arith.constant 0 : i32
    return %arg0, %c0_i32, %c0_i32_0 : i32, i32, i32
  }
}

module attributes {stable_mosaic.version = 11 : i64} {
  func.func @_join_kernel(%arg0: i32, %arg1: memref<256x128xbf16, #tpu.memory_space<vmem>>, %arg2: memref<256x128xbf16, #tpu.memory_space<vmem>>, %arg3: memref<1x128xf32, #tpu.memory_space<vmem>>, %arg4: memref<1x128xf32, #tpu.memory_space<vmem>>, %arg5: memref<128x128xbf16, #tpu.memory_space<vmem>>, %arg6: memref<256x128xbf16, #tpu.memory_space<vmem>>, %arg7: memref<256x128xbf16, #tpu.memory_space<vmem>>, %arg8: memref<1x2x128xf32, #tpu.memory_space<vmem>>) attributes {dimension_semantics = [#tpu.dimension_semantics<parallel>], iteration_bounds = array<i64: 2>, scalar_prefetch = 0 : i64, scratch_operands = 0 : i64, tpu.core_type = #tpu.core_type<tc>, window_params = [{transform_indices = @transform_0, window_bounds = array<i64: 256, 128>}, {transform_indices = @transform_1, window_bounds = array<i64: 256, 128>}, {pipeline_mode = #tpu.pipeline_mode<synchronous>, transform_indices = @transform_2, window_bounds = array<i64: 1, 128>}, {pipeline_mode = #tpu.pipeline_mode<synchronous>, transform_indices = @transform_3, window_bounds = array<i64: 1, 128>}, {pipeline_mode = #tpu.pipeline_mode<synchronous>, transform_indices = @transform_4, window_bounds = array<i64: 128, 128>}, {transform_indices = @transform_5, window_bounds = array<i64: 256, 128>}, {transform_indices = @transform_6, window_bounds = array<i64: 256, 128>}, {transform_indices = @transform_7, window_bounds = array<i64: 1, 2, 128>}]} {
    %c0 = arith.constant 0 : index
    %c0_0 = arith.constant 0 : index
    %0 = vector.load %arg1[%c0, %c0_0] : memref<256x128xbf16, #tpu.memory_space<vmem>>, vector<256x128xbf16>
    %1 = arith.extf %0 : vector<256x128xbf16> to vector<256x128xf32>
    %c0_1 = arith.constant 0 : index
    %c0_2 = arith.constant 0 : index
    %2 = vector.load %arg2[%c0_1, %c0_2] : memref<256x128xbf16, #tpu.memory_space<vmem>>, vector<256x128xbf16>
    %3 = arith.extf %2 : vector<256x128xbf16> to vector<256x128xf32>
    %c0_3 = arith.constant 0 : index
    %c0_4 = arith.constant 0 : index
    %4 = vector.load %arg3[%c0_3, %c0_4] : memref<1x128xf32, #tpu.memory_space<vmem>>, vector<1x128xf32>
    %5 = vector.broadcast %4 : vector<1x128xf32> to vector<256x128xf32>
    %6 = arith.mulf %3, %5 : vector<256x128xf32>
    %7 = arith.addf %1, %6 : vector<256x128xf32>
    %c0_5 = arith.constant 0 : index
    %c0_6 = arith.constant 0 : index
    %8 = vector.load %arg4[%c0_5, %c0_6] : memref<1x128xf32, #tpu.memory_space<vmem>>, vector<1x128xf32>
    %9 = vector.broadcast %8 : vector<1x128xf32> to vector<256x128xf32>
    %10 = arith.addf %7, %9 : vector<256x128xf32>
    %11 = arith.truncf %10 : vector<256x128xf32> to vector<256x128xbf16>
    %c0_7 = arith.constant 0 : index
    %c0_8 = arith.constant 0 : index
    %12 = vector.load %arg5[%c0_7, %c0_8] : memref<128x128xbf16, #tpu.memory_space<vmem>>, vector<128x128xbf16>
    %cst = arith.constant dense<0.000000e+00> : vector<256x128xf32>
    %13 = tpu.matmul %11, %12, %cst {dimension_numbers = #tpu.dot_dimension_numbers<[1], [0], [0], [1], [0, 0, 1, 1], [], []>} : vector<256x128xbf16>, vector<128x128xbf16>, vector<256x128xf32> -> vector<256x128xf32>
    %14 = arith.truncf %10 : vector<256x128xf32> to vector<256x128xbf16>
    %c0_9 = arith.constant 0 : index
    %c0_10 = arith.constant 0 : index
    %15 = vector.load %arg6[%c0_9, %c0_10] : memref<256x128xbf16, #tpu.memory_space<vmem>>, vector<256x128xbf16>
    tpu.vector_store %arg6[%c0_9, %c0_10], %14 {strides = array<i32>} : memref<256x128xbf16, #tpu.memory_space<vmem>>, vector<256x128xbf16>,
    %16 = arith.truncf %13 : vector<256x128xf32> to vector<256x128xbf16>
    %c0_11 = arith.constant 0 : index
    %c0_12 = arith.constant 0 : index
    %17 = vector.load %arg7[%c0_11, %c0_12] : memref<256x128xbf16, #tpu.memory_space<vmem>>, vector<256x128xbf16>
    tpu.vector_store %arg7[%c0_11, %c0_12], %16 {strides = array<i32>} : memref<256x128xbf16, #tpu.memory_space<vmem>>, vector<256x128xbf16>,
    %cst_13 = arith.constant dense<0.000000e+00> : vector<128xf32>
    %18 = vector.multi_reduction <add>, %13, %cst_13 [0] : vector<256x128xf32> to vector<128xf32>
    %19 = vector.shape_cast %18 : vector<128xf32> to vector<1x128xf32>
    %20 = arith.mulf %13, %13 : vector<256x128xf32>
    %cst_14 = arith.constant dense<0.000000e+00> : vector<128xf32>
    %21 = vector.multi_reduction <add>, %20, %cst_14 [0] : vector<256x128xf32> to vector<128xf32>
    %22 = vector.shape_cast %21 : vector<128xf32> to vector<1x128xf32>
    %23 = tpu.concatenate %19, %22 in 0 : vector<1x128xf32>, vector<1x128xf32> -> vector<2x128xf32>
    %24 = vector.shape_cast %23 : vector<2x128xf32> to vector<1x2x128xf32>
    %c0_15 = arith.constant 0 : index
    %c0_16 = arith.constant 0 : index
    %c0_17 = arith.constant 0 : index
    %25 = vector.load %arg8[%c0_15, %c0_16, %c0_17] : memref<1x2x128xf32, #tpu.memory_space<vmem>>, vector<1x2x128xf32>
    tpu.vector_store %arg8[%c0_15, %c0_16, %c0_17], %24 {strides = array<i32>} : memref<1x2x128xf32, #tpu.memory_space<vmem>>, vector<1x2x128xf32>,
    return
  }
  func.func @transform_0(%arg0: i32) -> (i32, i32) {
    %c0_i32 = arith.constant 0 : i32
    %c0_i32_0 = arith.constant 0 : i32
    return %arg0, %c0_i32 : i32, i32
  }
  func.func @transform_1(%arg0: i32) -> (i32, i32) {
    %c0_i32 = arith.constant 0 : i32
    %c0_i32_0 = arith.constant 0 : i32
    return %arg0, %c0_i32 : i32, i32
  }
  func.func @transform_2(%arg0: i32) -> (i32, i32) {
    %c0_i32 = arith.constant 0 : i32
    %c0_i32_0 = arith.constant 0 : i32
    %c0_i32_1 = arith.constant 0 : i32
    return %c0_i32, %c0_i32_0 : i32, i32
  }
  func.func @transform_3(%arg0: i32) -> (i32, i32) {
    %c0_i32 = arith.constant 0 : i32
    %c0_i32_0 = arith.constant 0 : i32
    %c0_i32_1 = arith.constant 0 : i32
    return %c0_i32, %c0_i32_0 : i32, i32
  }
  func.func @transform_4(%arg0: i32) -> (i32, i32) {
    %c0_i32 = arith.constant 0 : i32
    %c0_i32_0 = arith.constant 0 : i32
    %c0_i32_1 = arith.constant 0 : i32
    return %c0_i32, %c0_i32_0 : i32, i32
  }
  func.func @transform_5(%arg0: i32) -> (i32, i32) {
    %c0_i32 = arith.constant 0 : i32
    %c0_i32_0 = arith.constant 0 : i32
    return %arg0, %c0_i32 : i32, i32
  }
  func.func @transform_6(%arg0: i32) -> (i32, i32) {
    %c0_i32 = arith.constant 0 : i32
    %c0_i32_0 = arith.constant 0 : i32
    return %arg0, %c0_i32 : i32, i32
  }
  func.func @transform_7(%arg0: i32) -> (i32, i32, i32) {
    %c0_i32 = arith.constant 0 : i32
    %c0_i32_0 = arith.constant 0 : i32
    %c0_i32_1 = arith.constant 0 : i32
    return %arg0, %c0_i32, %c0_i32_0 : i32, i32, i32
  }
}

module attributes {stable_mosaic.version = 11 : i64} {
  func.func @_tail_kernel(%arg0: i32, %arg1: memref<256x128xbf16, #tpu.memory_space<vmem>>, %arg2: memref<256x128xbf16, #tpu.memory_space<vmem>>, %arg3: memref<1x128xf32, #tpu.memory_space<vmem>>, %arg4: memref<1x128xf32, #tpu.memory_space<vmem>>, %arg5: memref<256x128xbf16, #tpu.memory_space<vmem>>, %arg6: memref<128x128xbf16, #tpu.memory_space<vmem>>, %arg7: memref<1x128xf32, #tpu.memory_space<vmem>>, %arg8: memref<256x128xf32, #tpu.memory_space<vmem>>) attributes {dimension_semantics = [#tpu.dimension_semantics<parallel>], iteration_bounds = array<i64: 2>, scalar_prefetch = 0 : i64, scratch_operands = 0 : i64, tpu.core_type = #tpu.core_type<tc>, window_params = [{transform_indices = @transform_0, window_bounds = array<i64: 256, 128>}, {transform_indices = @transform_1, window_bounds = array<i64: 256, 128>}, {pipeline_mode = #tpu.pipeline_mode<synchronous>, transform_indices = @transform_2, window_bounds = array<i64: 1, 128>}, {pipeline_mode = #tpu.pipeline_mode<synchronous>, transform_indices = @transform_3, window_bounds = array<i64: 1, 128>}, {transform_indices = @transform_4, window_bounds = array<i64: 256, 128>}, {pipeline_mode = #tpu.pipeline_mode<synchronous>, transform_indices = @transform_5, window_bounds = array<i64: 128, 128>}, {pipeline_mode = #tpu.pipeline_mode<synchronous>, transform_indices = @transform_6, window_bounds = array<i64: 1, 128>}, {transform_indices = @transform_7, window_bounds = array<i64: 256, 128>}]} {
    %c0 = arith.constant 0 : index
    %c0_0 = arith.constant 0 : index
    %0 = vector.load %arg1[%c0, %c0_0] : memref<256x128xbf16, #tpu.memory_space<vmem>>, vector<256x128xbf16>
    %1 = arith.extf %0 : vector<256x128xbf16> to vector<256x128xf32>
    %c0_1 = arith.constant 0 : index
    %c0_2 = arith.constant 0 : index
    %2 = vector.load %arg2[%c0_1, %c0_2] : memref<256x128xbf16, #tpu.memory_space<vmem>>, vector<256x128xbf16>
    %3 = arith.extf %2 : vector<256x128xbf16> to vector<256x128xf32>
    %c0_3 = arith.constant 0 : index
    %c0_4 = arith.constant 0 : index
    %4 = vector.load %arg3[%c0_3, %c0_4] : memref<1x128xf32, #tpu.memory_space<vmem>>, vector<1x128xf32>
    %5 = vector.broadcast %4 : vector<1x128xf32> to vector<256x128xf32>
    %6 = arith.mulf %3, %5 : vector<256x128xf32>
    %7 = arith.addf %1, %6 : vector<256x128xf32>
    %c0_5 = arith.constant 0 : index
    %c0_6 = arith.constant 0 : index
    %8 = vector.load %arg4[%c0_5, %c0_6] : memref<1x128xf32, #tpu.memory_space<vmem>>, vector<1x128xf32>
    %9 = vector.broadcast %8 : vector<1x128xf32> to vector<256x128xf32>
    %10 = arith.addf %7, %9 : vector<256x128xf32>
    %c0_7 = arith.constant 0 : index
    %c0_8 = arith.constant 0 : index
    %11 = vector.load %arg5[%c0_7, %c0_8] : memref<256x128xbf16, #tpu.memory_space<vmem>>, vector<256x128xbf16>
    %12 = arith.extf %11 : vector<256x128xbf16> to vector<256x128xf32>
    %13 = arith.addf %10, %12 : vector<256x128xf32>
    %14 = arith.truncf %13 : vector<256x128xf32> to vector<256x128xbf16>
    %c0_9 = arith.constant 0 : index
    %c0_10 = arith.constant 0 : index
    %15 = vector.load %arg6[%c0_9, %c0_10] : memref<128x128xbf16, #tpu.memory_space<vmem>>, vector<128x128xbf16>
    %cst = arith.constant dense<0.000000e+00> : vector<256x128xf32>
    %16 = tpu.matmul %14, %15, %cst {dimension_numbers = #tpu.dot_dimension_numbers<[1], [0], [0], [1], [0, 0, 1, 1], [], []>} : vector<256x128xbf16>, vector<128x128xbf16>, vector<256x128xf32> -> vector<256x128xf32>
    %c0_11 = arith.constant 0 : index
    %c0_12 = arith.constant 0 : index
    %17 = vector.load %arg7[%c0_11, %c0_12] : memref<1x128xf32, #tpu.memory_space<vmem>>, vector<1x128xf32>
    %18 = vector.broadcast %17 : vector<1x128xf32> to vector<256x128xf32>
    %19 = arith.addf %16, %18 : vector<256x128xf32>
    %cst_13 = arith.constant 0.000000e+00 : f32
    %20 = vector.broadcast %cst_13 : f32 to vector<256x128xf32>
    %21 = arith.subf %20, %19 : vector<256x128xf32>
    %22 = math.exp %21 : vector<256x128xf32>
    %cst_14 = arith.constant 1.000000e+00 : f32
    %23 = vector.broadcast %cst_14 : f32 to vector<256x128xf32>
    %24 = arith.addf %23, %22 : vector<256x128xf32>
    %cst_15 = arith.constant 1.000000e+00 : f32
    %25 = vector.broadcast %cst_15 : f32 to vector<256x128xf32>
    %26 = arith.divf %25, %24 : vector<256x128xf32>
    %c0_16 = arith.constant 0 : index
    %c0_17 = arith.constant 0 : index
    %27 = vector.load %arg8[%c0_16, %c0_17] : memref<256x128xf32, #tpu.memory_space<vmem>>, vector<256x128xf32>
    tpu.vector_store %arg8[%c0_16, %c0_17], %26 {strides = array<i32>} : memref<256x128xf32, #tpu.memory_space<vmem>>, vector<256x128xf32>,
    return
  }
  func.func @transform_0(%arg0: i32) -> (i32, i32) {
    %c0_i32 = arith.constant 0 : i32
    %c0_i32_0 = arith.constant 0 : i32
    return %arg0, %c0_i32 : i32, i32
  }
  func.func @transform_1(%arg0: i32) -> (i32, i32) {
    %c0_i32 = arith.constant 0 : i32
    %c0_i32_0 = arith.constant 0 : i32
    return %arg0, %c0_i32 : i32, i32
  }
  func.func @transform_2(%arg0: i32) -> (i32, i32) {
    %c0_i32 = arith.constant 0 : i32
    %c0_i32_0 = arith.constant 0 : i32
    %c0_i32_1 = arith.constant 0 : i32
    return %c0_i32, %c0_i32_0 : i32, i32
  }
  func.func @transform_3(%arg0: i32) -> (i32, i32) {
    %c0_i32 = arith.constant 0 : i32
    %c0_i32_0 = arith.constant 0 : i32
    %c0_i32_1 = arith.constant 0 : i32
    return %c0_i32, %c0_i32_0 : i32, i32
  }
  func.func @transform_4(%arg0: i32) -> (i32, i32) {
    %c0_i32 = arith.constant 0 : i32
    %c0_i32_0 = arith.constant 0 : i32
    return %arg0, %c0_i32 : i32, i32
  }
  func.func @transform_5(%arg0: i32) -> (i32, i32) {
    %c0_i32 = arith.constant 0 : i32
    %c0_i32_0 = arith.constant 0 : i32
    %c0_i32_1 = arith.constant 0 : i32
    return %c0_i32, %c0_i32_0 : i32, i32
  }
  func.func @transform_6(%arg0: i32) -> (i32, i32) {
    %c0_i32 = arith.constant 0 : i32
    %c0_i32_0 = arith.constant 0 : i32
    %c0_i32_1 = arith.constant 0 : i32
    return %c0_i32, %c0_i32_0 : i32, i32
  }
  func.func @transform_7(%arg0: i32) -> (i32, i32) {
    %c0_i32 = arith.constant 0 : i32
    %c0_i32_0 = arith.constant 0 : i32
    return %arg0, %c0_i32 : i32, i32
  }
}

</mosaic_0001>

<bundles_post_ra>
// kernel: _lambda_.9
= control target key start
LH: loop header
LB: loop body
LE: loop exit
PB: predicated region body
PF: predicated region fallthrough
CT: control target
= control target key end

     0   :  { %s1756_s24 = smov 0   ;;  %s2024_s0 = inlined_call_operand.vmem [shape: bf16[512,128], index: 0, kind: input, shape index: {}]   ;;  %s2025_s1 = inlined_call_operand.vmem [shape: bf16[512,128], index: 1, kind: input, shape index: {}]   ;;  %s2026_s2 = inlined_call_operand.vmem [shape: f32[1,128], index: 2, kind: input, shape index: {}]   ;;  %s2027_s3 = inlined_call_operand.vmem [shape: f32[1,128], index: 3, kind: input, shape index: {}]   ;;  %s2028_s4 = inlined_call_operand.vmem [shape: bf16[512,128], index: 4, kind: input, shape index: {}]   ;;  %s2029_s5 = inlined_call_operand.vmem [shape: bf16[128,128], index: 5, kind: input, shape index: {}]   ;;  %s2030_s6 = inlined_call_operand.vmem [shape: f32[1,128], index: 6, kind: input, shape index: {}]   ;;  %s2031_s7 = inlined_call_operand.vmem [shape: f32[512,128], index: 7, kind: output, shape index: {}]  }
   0x1 LB: > { %s1213_s25 = sadd.s32 4294967295, %s1714_s24   ;;  %p1217_p0 = scmp.ge.s32.totalorder %s1714_s24, 1  ;;  %s1714_s24 = sphi %s1756_s24, %s17_s24  }
   0x2   : > { %p260_p1 = scmp.lt.s32.totalorder %s1714_s24, 3 }
   0x4   : > { %p261_p2 = pnand %p1217_p0, %p260_p1 }
   0x5   : > { %v1572_v0 = vld [vmem:[%s2029_s5] sm:$0xff] (!%p261_p2)   ;;  %s1218_s28 = sshll.u32 (!%p261_p2), %s1213_s25, 5  ;;  %v1573_v1 = vld [vmem:[%s2029_s5 + $0x8] sm:$0xff] (!%p261_p2)   ;;  %v1574_v2 = vld [vmem:[%s2029_s5 + $0x10] sm:$0xff] (!%p261_p2)  }
   0x6   : > { %264 = sbr.rel (%p261_p2) target bundleno = 342 (0x156), region = 48  ;;  %p303_p3 = scmp.lt.s32.totalorder (!%p261_p2), %s1218_s28, 63  ;;  %1500 = vmatprep.subr.bf16.mxu0 (!%p261_p2), %v1572_v0  ;;  %1548 = vmatprep.subr.bf16.mxu1 (!%p261_p2), %v1572_v0  ;;  %v1575_v3 = vld [vmem:[%s2029_s5 + $0x18] sm:$0xff] (!%p261_p2)   ;;  %v1799_v6 = vld [vmem:[%s2026_s2] ss:$0 sm:$0xff] (!%p261_p2)  ;;  %v1577_v46 = vld [vmem:[%s2029_s5 + $0x28] sm:$0xff] (!%p261_p2)  }
   0x7   : > { %1501 = vmatpush3.bf16.msra.mxu0 (!%p261_p2), %v1572_v0  ;;  %1556 = vmatpush3.bf16.msra.mxu1 (!%p261_p2), %v1572_v0  ;;  %v1576_v26 = vld [vmem:[%s2029_s5 + $0x20] sm:$0xff] (!%p261_p2)  }
   0x8   : > { %1502 = vmatprep.subr.bf16.mxu0 (!%p261_p2), %v1573_v1  ;;  %1549 = vmatprep.subr.bf16.mxu1 (!%p261_p2), %v1573_v1  ;;  %v1818_v27 = vld [vmem:[%s2027_s3] ss:$0 sm:$0xff] (!%p261_p2) }
   0xb   : > { %1503 = vmatpush3.bf16.msra.mxu0 (!%p261_p2), %v1573_v1  ;;  %1557 = vmatpush3.bf16.msra.mxu1 (!%p261_p2), %v1573_v1 }
   0xc   : > { %1504 = vmatprep.subr.bf16.mxu0 (!%p261_p2), %v1574_v2  ;;  %1550 = vmatprep.subr.bf16.mxu1 (!%p261_p2), %v1574_v2 }
   0xd   : > { %s2033_s28 = smov (!%p303_p3, %s1218_s28), 63 }
   0xe   : > { %s1219_s10 = sshll.u32 %s2033_s28, 2  ;;  %s1225_s15 = sshll.u32 %s2033_s28, 3 }
   0xf   : > { %s1779_s13 = scalar_lea.vmem %s2024_s0, %s1219_s10  ;;  %s1784_s16 = scalar_lea.vmem %s2025_s1, %s1219_s10  ;;  %1505 = vmatpush3.bf16.msra.mxu0 %v1574_v2  ;;  %1558 = vmatpush3.bf16.msra.mxu1 %v1574_v2  ;;  %v1578_v2 = vld [vmem:[%s2029_s5 + $0x30] sm:$0xff]  }
  0x10   : > { %s1792_s21 = scalar_lea.vmem %s2028_s4, %s1219_s10  ;;  %v1240_v4 = vld [vmem:[%s1779_s13] sm:$0xff]   ;;  %v1431_v19 = vld [vmem:[%s1779_s13 + $0x8] sm:$0xff]   ;;  %1506 = vmatprep.subr.bf16.mxu0 %v1575_v3  ;;  %1551 = vmatprep.subr.bf16.mxu1 %v1575_v3  ;;  %v1432_v60 = vld [vmem:[%s1779_s13 + $0x10] sm:$0xff]   ;;  %s1973_s17 = scalar_lea.vmem %s2031_s7, %s1225_s15 }
  0x11   : > { %v1304_v5 = vld [vmem:[%s1784_s16] sm:$0xff]   ;;  %v1241_v7 = vunpack.c.l.bf16 %v1240_v4  ;;  %v1242_v8 = vunpack.c.h.bf16 %v1240_v4  ;;  %v1446_v24 = vld [vmem:[%s1784_s16 + $0x8] sm:$0xff]   ;;  %v1245_v30 = vunpack.c.l.bf16 %v1431_v19  ;;  %v1246_v31 = vunpack.c.h.bf16 %v1431_v19  ;;  %v1447_v1 = vld [vmem:[%s1784_s16 + $0x10] sm:$0xff]  }
  0x12   : > { %v1305_v9 = vunpack.c.l.bf16 %v1304_v5  ;;  %v1306_v10 = vunpack.c.h.bf16 %v1304_v5  ;;  %v1368_v11 = vld [vmem:[%s1792_s21] sm:$0xff]   ;;  %v1810_v25 = vld [vmem:[%s1792_s21 + $0x8] sm:$0xff]   ;;  %v1309_v37 = vunpack.c.l.bf16 %v1446_v24  ;;  %v1310_v38 = vunpack.c.h.bf16 %v1446_v24  ;;  %v1579_v24 = vld [vmem:[%s2029_s5 + $0x38] sm:$0xff]  }
  0x13   : > { %v1438_v12 = vld [vmem:[%s1779_s13 + $0x40] sm:$0xff]   ;;  %v1369_v13 = vunpack.c.l.bf16 %v1368_v11  ;;  %v1370_v14 = vunpack.c.h.bf16 %v1368_v11  ;;  %v1439_v32 = vld [vmem:[%s1779_s13 + $0x48] sm:$0xff]   ;;  %v1373_v39 = vunpack.c.l.bf16 %v1810_v25  ;;  %v1374_v40 = vunpack.c.h.bf16 %v1810_v25  ;;  %1507 = vmatpush3.bf16.msra.mxu0 %v1575_v3  ;;  %1559 = vmatpush3.bf16.msra.mxu1 %v1575_v3 }
  0x14   : > { %v1273_v15 = vunpack.c.l.bf16 %v1438_v12  ;;  %v1274_v16 = vunpack.c.h.bf16 %v1438_v12  ;;  %v1453_v17 = vld [vmem:[%s1784_s16 + $0x40] sm:$0xff]   ;;  %v462_v20 = vmul.f32 %v1305_v9, %v1799_v6  ;;  %v463_v21 = vmul.f32 %v1306_v10, %v1799_v6  ;;  %v1454_v41 = vld [vmem:[%s1784_s16 + $0x48] sm:$0xff]   ;;  %1508 = vmatprep.subr.bf16.mxu0 %v1576_v26  ;;  %1552 = vmatprep.subr.bf16.mxu1 %v1576_v26 }
  0x15   : > { %v1468_v18 = vld [vmem:[%s1792_s21 + $0x40] sm:$0xff]   ;;  %v1337_v22 = vunpack.c.l.bf16 %v1453_v17  ;;  %v1338_v23 = vunpack.c.h.bf16 %v1453_v17  ;;  %v1277_v45 = vunpack.c.l.bf16 %v1439_v32  ;;  %v464_v48 = vmul.f32 %v1309_v37, %v1799_v6  ;;  %v1834_v51 = vld [vmem:[%s1792_s21 + $0x48] sm:$0xff]  }
  0x16   : > { %v1401_v28 = vunpack.c.l.bf16 %v1468_v18  ;;  %v1402_v29 = vunpack.c.h.bf16 %v1468_v18  ;;  %v494_v33 = vadd.f32 %v1241_v7, %v462_v20  ;;  %v495_v34 = vadd.f32 %v1242_v8, %v463_v21  ;;  %v1849_v8 = vld [vmem:[%s1792_s21 + $0x10] sm:$0xff]  }
  0x17   : > { %v478_v35 = vmul.f32 %v1337_v22, %v1799_v6  ;;  %v479_v36 = vmul.f32 %v1338_v23, %v1799_v6  ;;  %v465_v49 = vmul.f32 %v1310_v38, %v1799_v6  ;;  %v1278_v50 = vunpack.c.h.bf16 %v1439_v32  ;;  %1509 = vmatpush3.bf16.msra.mxu0 %v1576_v26  ;;  %1560 = vmatpush3.bf16.msra.mxu1 %v1576_v26  ;;  %v1455_v22 = vld [vmem:[%s1784_s16 + $0x50] sm:$0xff]  }
  0x18   : > { %v533_v42 = vadd.f32 %v1818_v27, %v494_v33  ;;  %v534_v43 = vadd.f32 %v1818_v27, %v495_v34  ;;  %v1341_v55 = vunpack.c.l.bf16 %v1454_v41  ;;  %v496_v57 = vadd.f32 %v1245_v30, %v464_v48  ;;  %1510 = vmatprep.subr.bf16.mxu0 %v1577_v46  ;;  %1553 = vmatprep.subr.bf16.mxu1 %v1577_v46  ;;  %v1470_v23 = vld [vmem:[%s1792_s21 + $0x50] sm:$0xff]   ;;  %v1433_v30 = vld [vmem:[%s1779_s13 + $0x18] sm:$0xff]  }
  0x19   : > { %v510_v44 = vadd.f32 %v1273_v15, %v478_v35  ;;  %v511_v47 = vadd.f32 %v1274_v16, %v479_v36  ;;  %v497_v58 = vadd.f32 %v1246_v31, %v465_v49  ;;  %v1342_v59 = vunpack.c.h.bf16 %v1454_v41 }
  0x1a   : > { %v629_v52 = vadd.f32 %v1369_v13, %v533_v42  ;;  %v630_v53 = vadd.f32 %v1370_v14, %v534_v43  ;;  %v480_v63 = vmul.f32 %v1341_v55, %v1799_v6  ;;  %v1405_v0 = vunpack.c.l.bf16 %v1834_v51  ;;  %v1440_v13 = vld [vmem:[%s1779_s13 + $0x50] sm:$0xff]  }
  0x1b   : > { %v549_v54 = vadd.f32 %v1818_v27, %v510_v44  ;;  %v550_v56 = vadd.f32 %v1818_v27, %v511_v47  ;;  %v535_v4 = vadd.f32 %v1818_v27, %v496_v57  ;;  %v536_v5 = vadd.f32 %v1818_v27, %v497_v58  ;;  %1511 = vmatpush3.bf16.msra.mxu0 %v1577_v46  ;;  %v1463_v44 = vld [vmem:[%s1792_s21 + $0x18] sm:$0xff]  }
  0x1c   : > { %v661_v61 = vpack.c.bf16 %v630_v53, %v629_v52  ;;  %v1406_v7 = vunpack.c.h.bf16 %v1834_v51  ;;  %v481_v9 = vmul.f32 %v1342_v59, %v1799_v6  ;;  %v512_v10 = vadd.f32 %v1277_v45, %v480_v63  ;;  %1561 = vmatpush3.bf16.msra.mxu1 %v1577_v46  ;;  %1512 = vmatprep.subr.bf16.mxu0 %v1578_v2  ;;  %v1441_v53 = vld [vmem:[%s1779_s13 + $0x58] sm:$0xff]  }
  0x1d   : > { %v645_v62 = vadd.f32 %v1401_v28, %v549_v54  ;;  %v646_v3 = vadd.f32 %v1402_v29, %v550_v56  ;;  %v1249_v11 = vunpack.c.l.bf16 %v1432_v60  ;;  %v1250_v12 = vunpack.c.h.bf16 %v1432_v60  ;;  %1554 = vmatprep.subr.bf16.mxu1 %v1578_v2  ;;  %v1456_v58 = vld [vmem:[%s1784_s16 + $0x58] sm:$0xff]  }
  0x1e   : > { %1516 = vmatprep.mubr.bf16.mxu0 %v661_v61  ;;  %v1853_v15 = vadd.f32 %v1373_v39, %v535_v4  ;;  %v1855_v16 = vadd.f32 %v1374_v40, %v536_v5  ;;  %v1313_v17 = vunpack.c.l.bf16 %v1447_v1  ;;  %v513_v18 = vadd.f32 %v1278_v50, %v481_v9  ;;  %v1448_v39 = vld [vmem:[%s1784_s16 + $0x18] sm:$0xff]   ;;  %v1434_v9 = vld [vmem:[%s1779_s13 + $0x20] sm:$0xff]  }
  0x1f   : > { %v669_v14 = vpack.c.bf16 %v646_v3, %v645_v62  ;;  %v551_v19 = vadd.f32 %v1818_v27, %v512_v10  ;;  %v1314_v20 = vunpack.c.h.bf16 %v1447_v1  ;;  %v1377_v21 = vunpack.c.l.bf16 %v1849_v8  ;;  %1513 = vmatpush3.bf16.msra.mxu0 %v1578_v2  ;;  %v1471_v63 = vld [vmem:[%s1792_s21 + $0x58] sm:$0xff]  }
  0x20   : > { %v662_v25 = vpack.c.bf16 %v1855_v16, %v1853_v15  ;;  %v466_v26 = vmul.f32 %v1313_v17, %v1799_v6  ;;  %v1378_v28 = vunpack.c.h.bf16 %v1849_v8  ;;  %v1281_v29 = vunpack.c.l.bf16 %v1440_v13  ;;  %1562 = vmatpush3.bf16.msra.mxu1 %v1578_v2  ;;  %1514 = vmatprep.subr.bf16.mxu0 %v1579_v24 }
  0x21   : > { %1532 = vmatprep.mubr.bf16.mxu1 %v669_v14  ;;  %v552_v31 = vadd.f32 %v1818_v27, %v513_v18  ;;  %v647_v32 = vadd.f32 %v1405_v0, %v551_v19  ;;  %v467_v33 = vmul.f32 %v1314_v20, %v1799_v6  ;;  %v1282_v34 = vunpack.c.h.bf16 %v1440_v13  ;;  %1555 = vmatprep.subr.bf16.mxu1 %v1579_v24  ;;  %v1449_v14 = vld [vmem:[%s1784_s16 + $0x20] sm:$0xff]  }
  0x22   : > { %v498_v35 = vadd.f32 %v1249_v11, %v466_v26  ;;  %v1345_v36 = vunpack.c.l.bf16 %v1455_v22  ;;  %v1346_v37 = vunpack.c.h.bf16 %v1455_v22  ;;  %v1409_v38 = vunpack.c.l.bf16 %v1470_v23  ;;  %v1464_v19 = vld [vmem:[%s1792_s21 + $0x20] sm:$0xff]  }
  0x23   : > { %v648_v40 = vadd.f32 %v1406_v7, %v552_v31  ;;  %v499_v41 = vadd.f32 %v1250_v12, %v467_v33  ;;  %v1410_v42 = vunpack.c.h.bf16 %v1470_v23  ;;  %v1253_v43 = vunpack.c.l.bf16 %v1433_v30  ;;  %1515 = vmatpush3.bf16.msra.mxu0 %v1579_v24 }
  0x24   : > { %v537_v45 = vadd.f32 %v1818_v27, %v498_v35  ;;  %v482_v46 = vmul.f32 %v1345_v36, %v1799_v6  ;;  %v483_v47 = vmul.f32 %v1346_v37, %v1799_v6  ;;  %v1254_v48 = vunpack.c.h.bf16 %v1433_v30  ;;  %1563 = vmatpush3.bf16.msra.mxu1 %v1579_v24  ;;  %v1442_v24 = vld [vmem:[%s1779_s13 + $0x60] sm:$0xff]  }
  0x25   : > { %v670_v49 = vpack.c.bf16 %v648_v40, %v647_v32  ;;  %v538_v50 = vadd.f32 %v1818_v27, %v499_v41  ;;  %v1317_v51 = vunpack.c.l.bf16 %v1448_v39  ;;  %v1318_v52 = vunpack.c.h.bf16 %v1448_v39  ;;  %v1457_v30 = vld [vmem:[%s1784_s16 + $0x60] sm:$0xff]  }
  0x26   : > { %v633_v54 = vadd.f32 %v1377_v21, %v537_v45  ;;  %v514_v55 = vadd.f32 %v1281_v29, %v482_v46  ;;  %v515_v56 = vadd.f32 %v1282_v34, %v483_v47  ;;  %v1381_v57 = vunpack.c.l.bf16 %v1463_v44  ;;  %1517 = vmatmul.mubr.bf16.vlgmr.msra.gmra.mrb[0].mxu0 %v662_v25  ;;  %v1472_v35 = vld [vmem:[%s1792_s21 + $0x60] sm:$0xff]  }
  0x27   : > { %v634_v59 = vadd.f32 %v1378_v28, %v538_v50  ;;  %v468_v60 = vmul.f32 %v1317_v51, %v1799_v6  ;;  %v469_v61 = vmul.f32 %v1318_v52, %v1799_v6  ;;  %v1382_v62 = vunpack.c.h.bf16 %v1463_v44  ;;  %1533 = vmatmul.mubr.bf16.vlgmr.msra.gmra.mrb[0].mxu1 %v670_v49  ;;  %v1435_v44 = vld [vmem:[%s1779_s13 + $0x28] sm:$0xff]  }
  0x28   : > { %v553_v0 = vadd.f32 %v1818_v27, %v514_v55  ;;  %v554_v1 = vadd.f32 %v1818_v27, %v515_v56  ;;  %v1285_v2 = vunpack.c.l.bf16 %v1441_v53  ;;  %v1286_v3 = vunpack.c.h.bf16 %v1441_v53  ;;  %v1450_v49 = vld [vmem:[%s1784_s16 + $0x28] sm:$0xff]  }
  0x29   : > { %v663_v4 = vpack.c.bf16 %v634_v59, %v633_v54  ;;  %v500_v5 = vadd.f32 %v1253_v43, %v468_v60  ;;  %v501_v7 = vadd.f32 %v1254_v48, %v469_v61  ;;  %v1349_v8 = vunpack.c.l.bf16 %v1456_v58  ;;  %v1465_v54 = vld [vmem:[%s1792_s21 + $0x28] sm:$0xff]  }
  0x2a   : > { %v649_v10 = vadd.f32 %v1409_v38, %v553_v0  ;;  %v650_v11 = vadd.f32 %v1410_v42, %v554_v1  ;;  %v1350_v12 = vunpack.c.h.bf16 %v1456_v58  ;;  %v1413_v13 = vunpack.c.l.bf16 %v1471_v63 }
  0x2b   : > { %1520 = vmatprep.mubr.bf16.mxu0 %v663_v4  ;;  %v539_v15 = vadd.f32 %v1818_v27, %v500_v5  ;;  %v540_v16 = vadd.f32 %v1818_v27, %v501_v7  ;;  %v484_v17 = vmul.f32 %v1349_v8, %v1799_v6  ;;  %v1414_v18 = vunpack.c.h.bf16 %v1471_v63  ;;  %v1443_v63 = vld [vmem:[%s1779_s13 + $0x68] sm:$0xff]  }
  0x2c   : > { %v671_v20 = vpack.c.bf16 %v650_v11, %v649_v10  ;;  %v485_v21 = vmul.f32 %v1350_v12, %v1799_v6  ;;  %v1257_v22 = vunpack.c.l.bf16 %v1434_v9  ;;  %v1258_v23 = vunpack.c.h.bf16 %v1434_v9  ;;  %v1458_v4 = vld [vmem:[%s1784_s16 + $0x68] sm:$0xff]  }
  0x2d   : > { %v635_v25 = vadd.f32 %v1381_v57, %v539_v15  ;;  %v636_v26 = vadd.f32 %v1382_v62, %v540_v16  ;;  %v516_v28 = vadd.f32 %v1285_v2, %v484_v17  ;;  %v1321_v29 = vunpack.c.l.bf16 %v1449_v14  ;;  %v1473_v10 = vld [vmem:[%s1792_s21 + $0x68] sm:$0xff]   ;;  %v1436_v15 = vld [vmem:[%s1779_s13 + $0x30] sm:$0xff]  }
  0x2e   : > { %1536 = vmatprep.mubr.bf16.mxu1 %v671_v20  ;;  %v517_v31 = vadd.f32 %v1286_v3, %v485_v21  ;;  %v1322_v32 = vunpack.c.h.bf16 %v1449_v14  ;;  %v1385_v33 = vunpack.c.l.bf16 %v1464_v19  ;;  %v1386_v34 = vunpack.c.h.bf16 %v1464_v19 }
  0x2f   : > { %v664_v36 = vpack.c.bf16 %v636_v26, %v635_v25  ;;  %v555_v37 = vadd.f32 %v1818_v27, %v516_v28  ;;  %v470_v38 = vmul.f32 %v1321_v29, %v1799_v6  ;;  %v1289_v39 = vunpack.c.l.bf16 %v1442_v24 }
  0x30   : > { %v556_v40 = vadd.f32 %v1818_v27, %v517_v31  ;;  %v471_v41 = vmul.f32 %v1322_v32, %v1799_v6  ;;  %v1290_v42 = vunpack.c.h.bf16 %v1442_v24  ;;  %v1353_v43 = vunpack.c.l.bf16 %v1457_v30  ;;  %v1451_v24 = vld [vmem:[%s1784_s16 + $0x30] sm:$0xff]  }
  0x31   : > { %v651_v45 = vadd.f32 %v1413_v13, %v555_v37  ;;  %v502_v46 = vadd.f32 %v1257_v22, %v470_v38  ;;  %v1354_v47 = vunpack.c.h.bf16 %v1457_v30  ;;  %v1417_v48 = vunpack.c.l.bf16 %v1472_v35  ;;  %1521 = vmatmul.mubr.bf16.gmra.mrb[4].mxu0 %v664_v36  ;;  %v1466_v30 = vld [vmem:[%s1792_s21 + $0x30] sm:$0xff]  }
  0x32   : > { %v652_v50 = vadd.f32 %v1414_v18, %v556_v40  ;;  %v503_v51 = vadd.f32 %v1258_v23, %v471_v41  ;;  %v486_v52 = vmul.f32 %v1353_v43, %v1799_v6  ;;  %v1418_v53 = vunpack.c.h.bf16 %v1472_v35  ;;  %v1444_v35 = vld [vmem:[%s1779_s13 + $0x70] sm:$0xff]  }
  0x33   : > { %v541_v55 = vadd.f32 %v1818_v27, %v502_v46  ;;  %v487_v56 = vmul.f32 %v1354_v47, %v1799_v6  ;;  %v1261_v57 = vunpack.c.l.bf16 %v1435_v44  ;;  %v1262_v58 = vunpack.c.h.bf16 %v1435_v44  ;;  %v1459_v40 = vld [vmem:[%s1784_s16 + $0x70] sm:$0xff]  }
  0x34   : > { %v672_v59 = vpack.c.bf16 %v652_v50, %v651_v45  ;;  %v542_v60 = vadd.f32 %v1818_v27, %v503_v51  ;;  %v518_v61 = vadd.f32 %v1289_v39, %v486_v52  ;;  %v1325_v62 = vunpack.c.l.bf16 %v1450_v49 }
  0x35   : > { %v637_v0 = vadd.f32 %v1385_v33, %v541_v55  ;;  %v519_v1 = vadd.f32 %v1290_v42, %v487_v56  ;;  %v1326_v2 = vunpack.c.h.bf16 %v1450_v49  ;;  %v1389_v3 = vunpack.c.l.bf16 %v1465_v54  ;;  %v1474_v49 = vld [vmem:[%s1792_s21 + $0x70] sm:$0xff]  }
  0x36   : > { %1537 = vmatmul.mubr.bf16.gmra.mrb[4].mxu1 %v672_v59  ;;  %v638_v5 = vadd.f32 %v1386_v34, %v542_v60  ;;  %v557_v7 = vadd.f32 %v1818_v27, %v518_v61  ;;  %v472_v8 = vmul.f32 %v1325_v62, %v1799_v6  ;;  %v1390_v9 = vunpack.c.h.bf16 %v1465_v54  ;;  %v1437_v54 = vld [vmem:[%s1779_s13 + $0x38] sm:$0xff]  }
  0x37   : > { %v558_v11 = vadd.f32 %v1818_v27, %v519_v1  ;;  %v473_v12 = vmul.f32 %v1326_v2, %v1799_v6  ;;  %v1293_v13 = vunpack.c.l.bf16 %v1443_v63  ;;  %v1294_v14 = vunpack.c.h.bf16 %v1443_v63  ;;  %v1452_v59 = vld [vmem:[%s1784_s16 + $0x38] sm:$0xff]  }
  0x38   : > { %v665_v16 = vpack.c.bf16 %v638_v5, %v637_v0  ;;  %v653_v17 = vadd.f32 %v1417_v48, %v557_v7  ;;  %v504_v18 = vadd.f32 %v1261_v57, %v472_v8  ;;  %v1357_v19 = vunpack.c.l.bf16 %v1458_v4 }
  0x39   : > { %v654_v20 = vadd.f32 %v1418_v53, %v558_v11  ;;  %v505_v21 = vadd.f32 %v1262_v58, %v473_v12  ;;  %v1358_v22 = vunpack.c.h.bf16 %v1458_v4  ;;  %v1421_v23 = vunpack.c.l.bf16 %v1473_v10  ;;  %v1467_v4 = vld [vmem:[%s1792_s21 + $0x38] sm:$0xff]  }
  0x3a   : > { %1524 = vmatprep.mubr.bf16.mxu0 %v665_v16  ;;  %v543_v25 = vadd.f32 %v1818_v27, %v504_v18  ;;  %v488_v26 = vmul.f32 %v1357_v19, %v1799_v6  ;;  %v1422_v28 = vunpack.c.h.bf16 %v1473_v10  ;;  %v1265_v29 = vunpack.c.l.bf16 %v1436_v15 }
  0x3b   : > { %v673_v31 = vpack.c.bf16 %v654_v20, %v653_v17  ;;  %v544_v32 = vadd.f32 %v1818_v27, %v505_v21  ;;  %v489_v33 = vmul.f32 %v1358_v22, %v1799_v6  ;;  %v1266_v34 = vunpack.c.h.bf16 %v1436_v15  ;;  %v1460_v15 = vld [vmem:[%s1784_s16 + $0x78] sm:$0xff]  }
  0x3c   : > { %v639_v36 = vadd.f32 %v1389_v3, %v543_v25  ;;  %v520_v37 = vadd.f32 %v1293_v13, %v488_v26  ;;  %v1329_v38 = vunpack.c.l.bf16 %v1451_v24  ;;  %v1330_v39 = vunpack.c.h.bf16 %v1451_v24 }
  0x3d   : > { %1540 = vmatprep.mubr.bf16.mxu1 %v673_v31  ;;  %v640_v41 = vadd.f32 %v1390_v9, %v544_v32  ;;  %v521_v42 = vadd.f32 %v1294_v14, %v489_v33  ;;  %v1393_v43 = vunpack.c.l.bf16 %v1466_v30  ;;  %v1394_v44 = vunpack.c.h.bf16 %v1466_v30  ;;  %v1445_v14 = vld [vmem:[%s1779_s13 + $0x78] sm:$0xff]  }
  0x3e   : > { %v559_v45 = vadd.f32 %v1818_v27, %v520_v37  ;;  %v474_v46 = vmul.f32 %v1329_v38, %v1799_v6  ;;  %v475_v47 = vmul.f32 %v1330_v39, %v1799_v6  ;;  %v1297_v48 = vunpack.c.l.bf16 %v1444_v35  ;;  %v1475_v32 = vld [vmem:[%s1792_s21 + $0x78] sm:$0xff]  }
  0x3f   : > { %v666_v50 = vpack.c.bf16 %v640_v41, %v639_v36  ;;  %v560_v51 = vadd.f32 %v1818_v27, %v521_v42  ;;  %v1298_v52 = vunpack.c.h.bf16 %v1444_v35  ;;  %v1361_v53 = vunpack.c.l.bf16 %v1459_v40 }
  0x40   : > { %v655_v55 = vadd.f32 %v1421_v23, %v559_v45  ;;  %v506_v56 = vadd.f32 %v1265_v29, %v474_v46  ;;  %v507_v57 = vadd.f32 %v1266_v34, %v475_v47  ;;  %v1362_v58 = vunpack.c.h.bf16 %v1459_v40 }
  0x41   : > { %1525 = vmatmul.mubr.bf16.gmra.mrb[8].mxu0 %v666_v50  ;;  %v656_v60 = vadd.f32 %v1422_v28, %v560_v51  ;;  %v490_v61 = vmul.f32 %v1361_v53, %v1799_v6  ;;  %v1425_v62 = vunpack.c.l.bf16 %v1474_v49  ;;  %v1426_v63 = vunpack.c.h.bf16 %v1474_v49 }
  0x42   : > { %v545_v0 = vadd.f32 %v1818_v27, %v506_v56  ;;  %v546_v1 = vadd.f32 %v1818_v27, %v507_v57  ;;  %v491_v2 = vmul.f32 %v1362_v58, %v1799_v6  ;;  %v1269_v3 = vunpack.c.l.bf16 %v1437_v54 }
  0x43   : > { %v674_v5 = vpack.c.bf16 %v656_v60, %v655_v55  ;;  %v522_v7 = vadd.f32 %v1297_v48, %v490_v61  ;;  %v1270_v8 = vunpack.c.h.bf16 %v1437_v54  ;;  %v1333_v9 = vunpack.c.l.bf16 %v1452_v59 }
  0x44   : > { %v641_v10 = vadd.f32 %v1393_v43, %v545_v0  ;;  %v642_v11 = vadd.f32 %v1394_v44, %v546_v1  ;;  %v523_v12 = vadd.f32 %v1298_v52, %v491_v2  ;;  %v1334_v13 = vunpack.c.h.bf16 %v1452_v59 }
  0x45   : > { %1541 = vmatmul.mubr.bf16.gmra.mrb[8].mxu1 %v674_v5  ;;  %v561_v16 = vadd.f32 %v1818_v27, %v522_v7  ;;  %v476_v17 = vmul.f32 %v1333_v9, %v1799_v6  ;;  %v1397_v18 = vunpack.c.l.bf16 %v1467_v4  ;;  %v1398_v22 = vunpack.c.h.bf16 %v1467_v4 }
  0x46   : > { %v667_v19 = vpack.c.bf16 %v642_v11, %v641_v10  ;;  %v562_v20 = vadd.f32 %v1818_v27, %v523_v12  ;;  %v477_v21 = vmul.f32 %v1334_v13, %v1799_v6  ;;  %v1301_v25 = vunpack.c.l.bf16 %v1445_v14 }
  0x47   : > { %v657_v23 = vadd.f32 %v1425_v62, %v561_v16  ;;  %v508_v24 = vadd.f32 %v1269_v3, %v476_v17  ;;  %v1365_v26 = vunpack.c.l.bf16 %v1460_v15  ;;  %v1302_v30 = vunpack.c.h.bf16 %v1445_v14 }
  0x48   : > { %1528 = vmatprep.mubr.bf16.mxu0 %v667_v19  ;;  %v658_v28 = vadd.f32 %v1426_v63, %v562_v20  ;;  %v509_v29 = vadd.f32 %v1270_v8, %v477_v21  ;;  %v1366_v31 = vunpack.c.h.bf16 %v1460_v15  ;;  %v1429_v40 = vunpack.c.l.bf16 %v1475_v32 }
  0x49   : > { %v547_v33 = vadd.f32 %v1818_v27, %v508_v24  ;;  %v492_v34 = vmul.f32 %v1365_v26, %v1799_v6  ;;  %v1430_v43 = vunpack.c.h.bf16 %v1475_v32 }
  0x4a   : > { %v675_v35 = vpack.c.bf16 %v658_v28, %v657_v23  ;;  %v548_v36 = vadd.f32 %v1818_v27, %v509_v29  ;;  %v493_v37 = vmul.f32 %v1366_v31, %v1799_v6  ;;  %v1949_v6 = vld [vmem:[%s2030_s6] ss:$0 sm:$0xff] }
  0x4b   : > { %v643_v38 = vadd.f32 %v1397_v18, %v547_v33  ;;  %v524_v39 = vadd.f32 %v1301_v25, %v492_v34 }
  0x4c   : > { %1544 = vmatprep.mubr.bf16.mxu1 %v675_v35  ;;  %v644_v41 = vadd.f32 %v1398_v22, %v548_v36  ;;  %v525_v42 = vadd.f32 %v1302_v30, %v493_v37 }
  0x4d   : > { %v563_v44 = vadd.f32 %v1818_v27, %v524_v39 }
  0x4e   : > { %v668_v45 = vpack.c.bf16 %v644_v41, %v643_v38  ;;  %v564_v46 = vadd.f32 %v1818_v27, %v525_v42 }
  0x4f   : > { %v659_v47 = vadd.f32 %v1429_v40, %v563_v44 }
  0x50   : > { %1529 = vmatmul.mubr.bf16.gmra.mrb[12].mxu0 %v668_v45  ;;  %v660_v48 = vadd.f32 %v1430_v43, %v564_v46 }
  0x52   : > { %v676_v49 = vpack.c.bf16 %v660_v48, %v659_v47 }
  0x54   : > { %1545 = vmatmul.mubr.bf16.gmra.mrb[12].mxu1 %v676_v49 }
  0xf9   : > { %v1518_v50 = vpop.f32.mrb[0].mxu0 }
  0xfa   : > { %v1534_v51 = vpop.f32.mrb[0].mxu1  ;;  %v791_v52 = vadd.f32 %v1518_v50, %v1949_v6  ;;  %v782_v54 = vpop.f32.mrb[1].mxu0 }
  0xfb   : > { %v855_v53 = vadd.f32 %v1534_v51, %v1949_v6  ;;  %v846_v55 = vpop.f32.mrb[1].mxu1  ;;  %v783_v27 = vadd.f32 %v1949_v6, %v782_v54  ;;  %v1519_v57 = vpop.f32.mrb[2].mxu0 }
  0xfc   : > { %v847_v56 = vadd.f32 %v1949_v6, %v846_v55  ;;  %v1535_v58 = vpop.f32.mrb[2].mxu1  ;;  %v911_v59 = vsub.f32 0.0, %v791_v52  ;;  %v794_v61 = vadd.f32 %v1519_v57, %v1949_v6  ;;  %v785_v63 = vpop.f32.mrb[3].mxu0 }
  0xfd   : > { %v927_v60 = vsub.f32 0.0, %v855_v53  ;;  %v858_v62 = vadd.f32 %v1535_v58, %v1949_v6  ;;  %v849_v0 = vpop.f32.mrb[3].mxu1  ;;  %v909_v1 = vsub.f32 0.0, %v783_v27  ;;  %v786_v3 = vadd.f32 %v1949_v6, %v785_v63 }
  0xfe   : > { %v925_v2 = vsub.f32 0.0, %v847_v56  ;;  %v850_v4 = vadd.f32 %v1949_v6, %v849_v0  ;;  %v945_v5 = vmul.f32 1.442695, %v911_v59  ;;  %v912_v8 = vsub.f32 0.0, %v794_v61 }
  0xff   : > { %v977_v7 = vmul.f32 1.442695, %v927_v60  ;;  %v928_v9 = vsub.f32 0.0, %v858_v62  ;;  %v941_v10 = vmul.f32 1.442695, %v909_v1  ;;  %v910_v12 = vsub.f32 0.0, %v786_v3 }
 0x100   : > { %v973_v11 = vmul.f32 1.442695, %v925_v2  ;;  %v926_v13 = vsub.f32 0.0, %v850_v4  ;;  %1580 = vpow2.f32 %v945_v5  ;;  %v947_v14 = vmul.f32 1.442695, %v912_v8 }
 0x101   : > { %1582 = vpow2.f32 %v977_v7  ;;  %v979_v15 = vmul.f32 1.442695, %v928_v9  ;;  %v943_v17 = vmul.f32 1.442695, %v910_v12 }
 0x102   : > { %1584 = vpow2.f32 %v941_v10  ;;  %v975_v20 = vmul.f32 1.442695, %v926_v13 }
 0x103   : > { %1586 = vpow2.f32 %v973_v11 }
 0x104   : > { %v1522_v16 = vpop.f32.mrb[4].mxu0  ;;  %1588 = vpow2.f32 %v947_v14 }
 0x105   : > { %v807_v18 = vadd.f32 %v1522_v16, %v1949_v6  ;;  %v798_v19 = vpop.f32.mrb[5].mxu0  ;;  %1590 = vpow2.f32 %v979_v15 }
 0x106   : > { %v799_v21 = vadd.f32 %v1949_v6, %v798_v19  ;;  %v1523_v22 = vpop.f32.mrb[6].mxu0  ;;  %1592 = vpow2.f32 %v943_v17 }
 0x107   : > { %v915_v23 = vsub.f32 0.0, %v807_v18  ;;  %v810_v24 = vadd.f32 %v1523_v22, %v1949_v6  ;;  %v801_v25 = vpop.f32.mrb[7].mxu0  ;;  %1594 = vpow2.f32 %v975_v20 }
 0x108   : > { %v913_v28 = vsub.f32 0.0, %v799_v21  ;;  %v802_v29 = vadd.f32 %v1949_v6, %v801_v25 }
 0x109   : > { %v1538_v26 = vpop.f32.mrb[4].mxu1  ;;  %v953_v30 = vmul.f32 1.442695, %v915_v23  ;;  %v916_v33 = vsub.f32 0.0, %v810_v24 }
 0x10a   : > { %v871_v31 = vadd.f32 %v1538_v26, %v1949_v6  ;;  %v862_v32 = vpop.f32.mrb[5].mxu1  ;;  %v949_v34 = vmul.f32 1.442695, %v913_v28  ;;  %v914_v36 = vsub.f32 0.0, %v802_v29  ;;  %v1581_v41 = vpop.eup %1580 }
 0x10b   : > { %v1539_v35 = vpop.f32.mrb[6].mxu1  ;;  %1596 = vpow2.f32 %v953_v30  ;;  %v955_v38 = vmul.f32 1.442695, %v916_v33  ;;  %v1583_v43 = vpop.eup %1582  ;;  %v1007_v44 = vadd.f32 1.0, %v1581_v41  ;;  %v863_v45 = vadd.f32 %v1949_v6, %v862_v32 }
 0x10c   : > { %v931_v37 = vsub.f32 0.0, %v871_v31  ;;  %v865_v39 = vpop.f32.mrb[7].mxu1  ;;  %1598 = vpow2.f32 %v949_v34  ;;  %v951_v40 = vmul.f32 1.442695, %v914_v36  ;;  %v1585_v46 = vpop.eup %1584  ;;  %v1023_v47 = vadd.f32 1.0, %v1583_v43 }
 0x10d   : > { %1600 = vpow2.f32 %v955_v38  ;;  %v874_v48 = vadd.f32 %v1539_v35, %v1949_v6  ;;  %v1587_v49 = vpop.eup %1586  ;;  %v1005_v50 = vadd.f32 1.0, %v1585_v46  ;;  %v929_v55 = vsub.f32 0.0, %v863_v45 }
 0x10e   : > { %v985_v42 = vmul.f32 1.442695, %v931_v37  ;;  %1602 = vpow2.f32 %v951_v40  ;;  %v1589_v51 = vpop.eup %1588  ;;  %v1021_v52 = vadd.f32 1.0, %v1587_v49  ;;  %v866_v27 = vadd.f32 %v1949_v6, %v865_v39 }
 0x10f   : > { %v1591_v53 = vpop.eup %1590  ;;  %v1008_v54 = vadd.f32 1.0, %v1589_v51  ;;  %v932_v58 = vsub.f32 0.0, %v874_v48  ;;  %v981_v7 = vmul.f32 1.442695, %v929_v55 }
 0x110   : > { %1604 = vpow2.f32 %v985_v42  ;;  %v1593_v56 = vpop.eup %1592  ;;  %v1024_v57 = vadd.f32 1.0, %v1591_v53  ;;  %v930_v8 = vsub.f32 0.0, %v866_v27 }
 0x111   : > { %1606 = vrcp.f32 %v1007_v44  ;;  %v1595_v60 = vpop.eup %1594  ;;  %v1006_v61 = vadd.f32 1.0, %v1593_v56  ;;  %v987_v12 = vmul.f32 1.442695, %v932_v58 }
 0x112   : > { %1608 = vrcp.f32 %v1023_v47  ;;  %v1022_v1 = vadd.f32 1.0, %v1595_v60  ;;  %v983_v32 = vmul.f32 1.442695, %v930_v8 }
 0x113   : > { %1610 = vrcp.f32 %v1005_v50 }
 0x114   : > { %1612 = vrcp.f32 %v1021_v52  ;;  %v1526_v59 = vpop.f32.mrb[8].mxu0 }
 0x115   : > { %1614 = vrcp.f32 %v1008_v54  ;;  %v823_v62 = vadd.f32 %v1526_v59, %v1949_v6  ;;  %v814_v63 = vpop.f32.mrb[9].mxu0  ;;  %v1597_v0 = vpop.eup %1596 }
 0x116   : > { %1616 = vrcp.f32 %v1024_v57  ;;  %v815_v2 = vadd.f32 %v1949_v6, %v814_v63  ;;  %v1527_v3 = vpop.f32.mrb[10].mxu0  ;;  %v1599_v4 = vpop.eup %1598  ;;  %v1011_v5 = vadd.f32 1.0, %v1597_v0 }
 0x117   : > { %1618 = vrcp.f32 %v1006_v61  ;;  %v817_v9 = vpop.f32.mrb[11].mxu0  ;;  %v1601_v10 = vpop.eup %1600  ;;  %v1009_v11 = vadd.f32 1.0, %v1599_v4  ;;  %v919_v13 = vsub.f32 0.0, %v823_v62  ;;  %v826_v19 = vadd.f32 %v1527_v3, %v1949_v6 }
 0x118   : > { %1620 = vrcp.f32 %v1022_v1  ;;  %v1542_v14 = vpop.f32.mrb[8].mxu1  ;;  %v1603_v15 = vpop.eup %1602  ;;  %v1012_v16 = vadd.f32 1.0, %v1601_v10  ;;  %v917_v21 = vsub.f32 0.0, %v815_v2  ;;  %v818_v24 = vadd.f32 %v1949_v6, %v817_v9 }
 0x119   : > { %1622 = vrcp.f32 %v1011_v5  ;;  %v887_v17 = vadd.f32 %v1542_v14, %v1949_v6  ;;  %v878_v18 = vpop.f32.mrb[9].mxu1  ;;  %v1010_v28 = vadd.f32 1.0, %v1603_v15  ;;  %v961_v36 = vmul.f32 1.442695, %v919_v13 }
 0x11a   : > { %v1605_v20 = vpop.eup %1604  ;;  %1624 = vrcp.f32 %v1009_v11  ;;  %v879_v22 = vadd.f32 %v1949_v6, %v878_v18  ;;  %v1543_v23 = vpop.f32.mrb[10].mxu1  ;;  %v920_v37 = vsub.f32 0.0, %v826_v19  ;;  %v957_v43 = vmul.f32 1.442695, %v917_v21 }
 0x11b   : > { %v1607_v25 = vpop.eup %1606  ;;  %v1027_v26 = vadd.f32 1.0, %v1605_v20  ;;  %1626 = vpow2.f32 %v981_v7  ;;  %v935_v29 = vsub.f32 0.0, %v887_v17  ;;  %v881_v30 = vpop.f32.mrb[11].mxu1  ;;  %v890_v34 = vadd.f32 %v1543_v23, %v1949_v6 }
 0x11c   : > { %v1609_v31 = vpop.eup %1608  ;;  %1103 = vst [vmem:[%s1973_s17 + $0x10] sm:$0xff] %v1607_v25  ;;  %1628 = vrcp.f32 %v1012_v16  ;;  %v933_v33 = vsub.f32 0.0, %v879_v22  ;;  %v882_v38 = vadd.f32 %v1949_v6, %v881_v30  ;;  %v918_v44 = vsub.f32 0.0, %v818_v24 }
 0x11d   : > { %v1611_v35 = vpop.eup %1610  ;;  %1119 = vst [vmem:[%s1973_s17 + $0x90] sm:$0xff] %v1609_v31  ;;  %1630 = vrcp.f32 %v1027_v26  ;;  %v993_v40 = vmul.f32 1.442695, %v935_v29  ;;  %v936_v41 = vsub.f32 0.0, %v890_v34  ;;  %v963_v48 = vmul.f32 1.442695, %v920_v37 }
 0x11e   : > { %v1613_v39 = vpop.eup %1612  ;;  %1101 = vst [vmem:[%s1973_s17] sm:$0xff] %v1611_v35  ;;  %1632 = vpow2.f32 %v987_v12  ;;  %v989_v46 = vmul.f32 1.442695, %v933_v33  ;;  %v934_v49 = vsub.f32 0.0, %v882_v38  ;;  %v959_v53 = vmul.f32 1.442695, %v918_v44 }
 0x11f   : > { %v1615_v42 = vpop.eup %1614  ;;  %1117 = vst [vmem:[%s1973_s17 + $0x80] sm:$0xff] %v1613_v39  ;;  %1634 = vrcp.f32 %v1010_v28  ;;  %v995_v51 = vmul.f32 1.442695, %v936_v41 }
 0x120   : > { %v1617_v45 = vpop.eup %1616  ;;  %1104 = vst [vmem:[%s1973_s17 + $0x18] sm:$0xff] %v1615_v42  ;;  %1636 = vpow2.f32 %v983_v32  ;;  %v991_v58 = vmul.f32 1.442695, %v934_v49 }
 0x121   : > { %v1619_v47 = vpop.eup %1618  ;;  %1120 = vst [vmem:[%s1973_s17 + $0x98] sm:$0xff] %v1617_v45  ;;  %1638 = vpow2.f32 %v961_v36 }
 0x122   : > { %v1621_v50 = vpop.eup %1620  ;;  %1102 = vst [vmem:[%s1973_s17 + $0x8] sm:$0xff] %v1619_v47  ;;  %1640 = vpow2.f32 %v993_v40 }
 0x123   : > { %v1623_v52 = vpop.eup %1622  ;;  %1118 = vst [vmem:[%s1973_s17 + $0x88] sm:$0xff] %v1621_v50  ;;  %1642 = vpow2.f32 %v957_v43  ;;  %v1530_v54 = vpop.f32.mrb[12].mxu0 }
 0x124   : > { %v1625_v55 = vpop.eup %1624  ;;  %1107 = vst [vmem:[%s1973_s17 + $0x30] sm:$0xff] %v1623_v52  ;;  %1644 = vpow2.f32 %v989_v46  ;;  %v839_v27 = vadd.f32 %v1530_v54, %v1949_v6  ;;  %v830_v56 = vpop.f32.mrb[13].mxu0 }
 0x125   : > { %v1627_v57 = vpop.eup %1626  ;;  %1105 = vst [vmem:[%s1973_s17 + $0x20] sm:$0xff] %v1625_v55  ;;  %1646 = vpow2.f32 %v963_v48  ;;  %v831_v59 = vadd.f32 %v1949_v6, %v830_v56  ;;  %v1531_v60 = vpop.f32.mrb[14].mxu0 }
 0x126   : > { %v1629_v61 = vpop.eup %1628  ;;  %v1025_v62 = vadd.f32 1.0, %v1627_v57  ;;  %1648 = vpow2.f32 %v995_v51  ;;  %v923_v63 = vsub.f32 0.0, %v839_v27  ;;  %v833_v0 = vpop.f32.mrb[15].mxu0  ;;  %v842_v25 = vadd.f32 %v1531_v60, %v1949_v6 }
 0x127   : > { %v1631_v1 = vpop.eup %1630  ;;  %1108 = vst [vmem:[%s1973_s17 + $0x38] sm:$0xff] %v1629_v61  ;;  %1650 = vpow2.f32 %v959_v53  ;;  %v1546_v2 = vpop.f32.mrb[12].mxu1  ;;  %v921_v3 = vsub.f32 0.0, %v831_v59  ;;  %v834_v33 = vadd.f32 %v1949_v6, %v833_v0 }
 0x128   : > { %v1633_v4 = vpop.eup %1632  ;;  %1123 = vst [vmem:[%s1973_s17 + $0xb0] sm:$0xff] %v1631_v1  ;;  %1652 = vrcp.f32 %v1025_v62  ;;  %v969_v5 = vmul.f32 1.442695, %v923_v63  ;;  %v894_v7 = vpop.f32.mrb[13].mxu1  ;;  %v903_v10 = vadd.f32 %v1546_v2, %v1949_v6  ;;  %v924_v40 = vsub.f32 0.0, %v842_v25 }
 0x129   : > { %v1635_v8 = vpop.eup %1634  ;;  %v1028_v9 = vadd.f32 1.0, %v1633_v4  ;;  %1654 = vpow2.f32 %v991_v58  ;;  %v965_v11 = vmul.f32 1.442695, %v921_v3  ;;  %v1547_v12 = vpop.f32.mrb[14].mxu1  ;;  %v895_v19 = vadd.f32 %v1949_v6, %v894_v7 }
 0x12a   : > { %v1637_v13 = vpop.eup %1636  ;;  %1106 = vst [vmem:[%s1973_s17 + $0x28] sm:$0xff] %v1635_v8  ;;  %1656 = vpow2.f32 %v969_v5  ;;  %v897_v14 = vpop.f32.mrb[15].mxu1  ;;  %v939_v22 = vsub.f32 0.0, %v903_v10  ;;  %v906_v29 = vadd.f32 %v1547_v12, %v1949_v6  ;;  %v922_v46 = vsub.f32 0.0, %v834_v33 }
 0x12b   : > { %v1639_v15 = vpop.eup %1638  ;;  %1658 = vrcp.f32 %v1028_v9  ;;  %v1026_v16 = vadd.f32 1.0, %v1637_v13  ;;  %v937_v32 = vsub.f32 0.0, %v895_v19  ;;  %v898_v37 = vadd.f32 %v1949_v6, %v897_v14 }
 0x12c   : > { %v1641_v17 = vpop.eup %1640  ;;  %v1015_v18 = vadd.f32 1.0, %v1639_v15  ;;  %1660 = vpow2.f32 %v965_v11  ;;  %v1001_v36 = vmul.f32 1.442695, %v939_v22  ;;  %v940_v42 = vsub.f32 0.0, %v906_v29 }
 0x12d   : > { %v1643_v20 = vpop.eup %1642  ;;  %1662 = vrcp.f32 %v1026_v16  ;;  %v1031_v21 = vadd.f32 1.0, %v1641_v17  ;;  %v997_v45 = vmul.f32 1.442695, %v937_v32  ;;  %v938_v6 = vsub.f32 0.0, %v898_v37 }
 0x12e   : > { %v1645_v23 = vpop.eup %1644  ;;  %1664 = vrcp.f32 %v1015_v18  ;;  %v1013_v24 = vadd.f32 1.0, %v1643_v20  ;;  %v971_v50 = vmul.f32 1.442695, %v924_v40  ;;  %v1003_v53 = vmul.f32 1.442695, %v940_v42 }
 0x12f   : > { %v1647_v26 = vpop.eup %1646  ;;  %1666 = vrcp.f32 %v1031_v21  ;;  %v1029_v28 = vadd.f32 1.0, %v1645_v23  ;;  %v967_v55 = vmul.f32 1.442695, %v922_v46  ;;  %v999_v56 = vmul.f32 1.442695, %v938_v6 }
 0x130   : > { %v1649_v30 = vpop.eup %1648  ;;  %1668 = vrcp.f32 %v1013_v24  ;;  %v1016_v31 = vadd.f32 1.0, %v1647_v26 }
 0x131   : > { %v1651_v34 = vpop.eup %1650  ;;  %1670 = vrcp.f32 %v1029_v28  ;;  %v1032_v35 = vadd.f32 1.0, %v1649_v30 }
 0x132   : > { %v1653_v38 = vpop.eup %1652  ;;  %1672 = vrcp.f32 %v1016_v31  ;;  %v1014_v39 = vadd.f32 1.0, %v1651_v34 }
 0x133   : > { %v1655_v41 = vpop.eup %1654  ;;  %1121 = vst [vmem:[%s1973_s17 + $0xa0] sm:$0xff] %v1653_v38  ;;  %1674 = vrcp.f32 %v1032_v35 }
 0x134   : > { %v1657_v43 = vpop.eup %1656  ;;  %1676 = vrcp.f32 %v1014_v39  ;;  %v1030_v44 = vadd.f32 1.0, %v1655_v41 }
 0x135   : > { %v1659_v47 = vpop.eup %1658  ;;  %v1019_v48 = vadd.f32 1.0, %v1657_v43  ;;  %1678 = vpow2.f32 %v1001_v36 }
 0x136   : > { %v1661_v49 = vpop.eup %1660  ;;  %1124 = vst [vmem:[%s1973_s17 + $0xb8] sm:$0xff] %v1659_v47  ;;  %1680 = vrcp.f32 %v1030_v44 }
 0x137   : > { %v1663_v51 = vpop.eup %1662  ;;  %1682 = vrcp.f32 %v1019_v48  ;;  %v1017_v52 = vadd.f32 1.0, %v1661_v49 }
 0x138   : > { %v1665_v54 = vpop.eup %1664  ;;  %1122 = vst [vmem:[%s1973_s17 + $0xa8] sm:$0xff] %v1663_v51  ;;  %1684 = vpow2.f32 %v997_v45 }
 0x139   : > { %v1667_v27 = vpop.eup %1666  ;;  %1111 = vst [vmem:[%s1973_s17 + $0x50] sm:$0xff] %v1665_v54  ;;  %1686 = vrcp.f32 %v1017_v52 }
 0x13a   : > { %v1669_v57 = vpop.eup %1668  ;;  %1127 = vst [vmem:[%s1973_s17 + $0xd0] sm:$0xff] %v1667_v27  ;;  %1688 = vpow2.f32 %v971_v50 }
 0x13b   : > { %v1671_v58 = vpop.eup %1670  ;;  %1109 = vst [vmem:[%s1973_s17 + $0x40] sm:$0xff] %v1669_v57  ;;  %1690 = vpow2.f32 %v1003_v53 }
 0x13c   : > { %v1673_v59 = vpop.eup %1672  ;;  %1125 = vst [vmem:[%s1973_s17 + $0xc0] sm:$0xff] %v1671_v58  ;;  %1692 = vpow2.f32 %v967_v55 }
 0x13d   : > { %v1675_v60 = vpop.eup %1674  ;;  %1112 = vst [vmem:[%s1973_s17 + $0x58] sm:$0xff] %v1673_v59  ;;  %1694 = vpow2.f32 %v999_v56 }
 0x13e   : > { %v1677_v61 = vpop.eup %1676  ;;  %1128 = vst [vmem:[%s1973_s17 + $0xd8] sm:$0xff] %v1675_v60 }
 0x13f   : > { %v1679_v62 = vpop.eup %1678  ;;  %1110 = vst [vmem:[%s1973_s17 + $0x48] sm:$0xff] %v1677_v61 }
 0x140   : > { %v1681_v63 = vpop.eup %1680  ;;  %v1035_v0 = vadd.f32 1.0, %v1679_v62 }
 0x141   : > { %v1683_v1 = vpop.eup %1682  ;;  %1126 = vst [vmem:[%s1973_s17 + $0xc8] sm:$0xff] %v1681_v63 }
 0x142   : > { %v1685_v2 = vpop.eup %1684  ;;  %1115 = vst [vmem:[%s1973_s17 + $0x70] sm:$0xff] %v1683_v1  ;;  %1696 = vrcp.f32 %v1035_v0 }
 0x143   : > { %v1687_v3 = vpop.eup %1686  ;;  %v1033_v4 = vadd.f32 1.0, %v1685_v2 }
 0x144   : > { %v1689_v5 = vpop.eup %1688  ;;  %1113 = vst [vmem:[%s1973_s17 + $0x60] sm:$0xff] %v1687_v3 }
 0x145   : > { %v1691_v7 = vpop.eup %1690  ;;  %1698 = vrcp.f32 %v1033_v4  ;;  %v1020_v8 = vadd.f32 1.0, %v1689_v5 }
 0x146   : > { %v1693_v9 = vpop.eup %1692  ;;  %v1036_v10 = vadd.f32 1.0, %v1691_v7 }
 0x147   : > { %v1695_v11 = vpop.eup %1694  ;;  %1700 = vrcp.f32 %v1020_v8  ;;  %v1018_v12 = vadd.f32 1.0, %v1693_v9 }
 0x148   : > { %1702 = vrcp.f32 %v1036_v10  ;;  %v1034_v13 = vadd.f32 1.0, %v1695_v11 }
 0x149   : > { %1704 = vrcp.f32 %v1018_v12 }
 0x14a   : > { %1706 = vrcp.f32 %v1034_v13 }
 0x14c   : > { %v1697_v14 = vpop.eup %1696 }
 0x14d   : > { %1131 = vst [vmem:[%s1973_s17 + $0xf0] sm:$0xff] %v1697_v14 }
 0x14f   : > { %v1699_v15 = vpop.eup %1698 }
 0x150   : > { %1129 = vst [vmem:[%s1973_s17 + $0xe0] sm:$0xff] %v1699_v15 }
 0x151   : > { %v1701_v16 = vpop.eup %1700 }
 0x152   : > { %v1703_v17 = vpop.eup %1702  ;;  %1116 = vst [vmem:[%s1973_s17 + $0x78] sm:$0xff] %v1701_v16 }
 0x153   : > { %v1705_v18 = vpop.eup %1704  ;;  %1132 = vst [vmem:[%s1973_s17 + $0xf8] sm:$0xff] %v1703_v17 }
 0x154   : > { %v1707_v19 = vpop.eup %1706  ;;  %1114 = vst [vmem:[%s1973_s17 + $0x68] sm:$0xff] %v1705_v18 }
 0x155   : > { %1130 = vst [vmem:[%s1973_s17 + $0xe8] sm:$0xff] %v1707_v19 }
 0x156 PF: > { %s17_s24 = sadd.s32 1, %s1714_s24  }
 0x157   : > { %p14_p4 = scmp.ge.s32.totalorder %s17_s24, 4  }
 0x159   :  { %16 = sbr.rel (!%p14_p4) target bundleno = 1 (0x1), region = 84 }

// kernel: _lambda_.6
= control target key start
LH: loop header
LB: loop body
LE: loop exit
PB: predicated region body
PF: predicated region fallthrough
CT: control target
= control target key end

     0   :  { %s2375_s18 = smov 0   ;;  %s3148_s0 = inlined_call_operand.vmem [shape: bf16[512,128], index: 0, kind: input, shape index: {}]   ;;  %s3149_s1 = inlined_call_operand.vmem [shape: f32[1,128], index: 1, kind: input, shape index: {}]   ;;  %s3150_s2 = inlined_call_operand.vmem [shape: f32[1,128], index: 2, kind: input, shape index: {}]   ;;  %s3151_s3 = inlined_call_operand.vmem [shape: bf16[128,128], index: 3, kind: input, shape index: {}]   ;;  %s3152_s4 = inlined_call_operand.vmem [shape: bf16[512,128], index: 4, kind: output, shape index: {0}]   ;;  %s3153_s5 = inlined_call_operand.vmem [shape: f32[2,2,128], index: 5, kind: output, shape index: {1}]  }
   0x1 LB: > { %s2381_s19 = sadd.s32 4294967295, %s2343_s18   ;;  %p1847_p0 = scmp.ge.s32.totalorder %s2343_s18, 1  ;;  %s2343_s18 = sphi %s2375_s18, %s16_s18  }
   0x2   : > { %p191_p1 = scmp.lt.s32.totalorder %s2343_s18, 3 }
   0x4   : > { %p192_p2 = pnand %p1847_p0, %p191_p1 }
   0x5   : > { %v2199_v0 = vld [vmem:[%s3151_s3] sm:$0xff] (!%p192_p2)   ;;  %s1848_s22 = sshll.u32 (!%p192_p2), %s2381_s19, 5  ;;  %v2200_v1 = vld [vmem:[%s3151_s3 + $0x8] sm:$0xff] (!%p192_p2)   ;;  %v2201_v2 = vld [vmem:[%s3151_s3 + $0x10] sm:$0xff] (!%p192_p2)   ;;  %p235_p4 = scmp.lt.s32.totalorder (!%p192_p2), %s2381_s19, 1 }
   0x6   : > { %195 = sbr.rel (%p192_p2) target bundleno = 510 (0x1fe), region = 36  ;;  %p224_p3 = scmp.lt.s32.totalorder (!%p192_p2), %s1848_s22, 63  ;;  %2127 = vmatprep.subr.bf16.mxu0 (!%p192_p2), %v2199_v0  ;;  %2175 = vmatprep.subr.bf16.mxu1 (!%p192_p2), %v2199_v0  ;;  %v2202_v3 = vld [vmem:[%s3151_s3 + $0x18] sm:$0xff] (!%p192_p2)   ;;  %v2412_v5 = vld [vmem:[%s3149_s1] ss:$0 sm:$0xff] (!%p192_p2)  ;;  %v2204_v29 = vld [vmem:[%s3151_s3 + $0x28] sm:$0xff] (!%p192_p2)  }
   0x7   : > { %2128 = vmatpush3.bf16.msra.mxu0 (!%p192_p2), %v2199_v0  ;;  %2183 = vmatpush3.bf16.msra.mxu1 (!%p192_p2), %v2199_v0  ;;  %v2419_v10 = vld [vmem:[%s3150_s2] ss:$0 sm:$0xff] (!%p192_p2)  ;;  %v2205_v36 = vld [vmem:[%s3151_s3 + $0x30] sm:$0xff] (!%p192_p2)   ;;  %v2206_v59 = vld [vmem:[%s3151_s3 + $0x38] sm:$0xff] (!%p192_p2)  }
   0x8   : > { %2129 = vmatprep.subr.bf16.mxu0 (!%p192_p2), %v2200_v1  ;;  %2176 = vmatprep.subr.bf16.mxu1 (!%p192_p2), %v2200_v1  ;;  %v2203_v17 = vld [vmem:[%s3151_s3 + $0x20] sm:$0xff] (!%p192_p2)  }
   0xb   : > { %2130 = vmatpush3.bf16.msra.mxu0 (!%p192_p2), %v2200_v1  ;;  %2184 = vmatpush3.bf16.msra.mxu1 (!%p192_p2), %v2200_v1 }
   0xc   : > { %2131 = vmatprep.subr.bf16.mxu0 (!%p192_p2), %v2201_v2  ;;  %2177 = vmatprep.subr.bf16.mxu1 (!%p192_p2), %v2201_v2 }
   0xd   : > { %s3155_s22 = smov (!%p224_p3, %s1848_s22), 63  ;;  %s3157_s19 = smov (!%p235_p4, %s2381_s19), 1 }
   0xe   : > { %s1849_s27 = sshll.u32 %s3155_s22, 2  ;;  %s1852_s22 = sshll.u32 %s3157_s19, 1 }
   0xf   : > { %s2403_s30 = scalar_lea.vmem %s3148_s0, %s1849_s27  ;;  %2132 = vmatpush3.bf16.msra.mxu0 %v2201_v2  ;;  %2185 = vmatpush3.bf16.msra.mxu1 %v2201_v2  ;;  %s238_s7 = scalar_lea.vmem %s3153_s5, %s1852_s22 }
  0x10   : > { %v1930_v4 = vld [vmem:[%s2403_s30] sm:$0xff]   ;;  %v2073_v8 = vld [vmem:[%s2403_s30 + $0x8] sm:$0xff]   ;;  %v2074_v9 = vld [vmem:[%s2403_s30 + $0x10] sm:$0xff]   ;;  %2133 = vmatprep.subr.bf16.mxu0 %v2202_v3  ;;  %2178 = vmatprep.subr.bf16.mxu1 %v2202_v3 }
  0x11   : > { %v1931_v6 = vunpack.c.l.bf16 %v1930_v4  ;;  %v1932_v7 = vunpack.c.h.bf16 %v1930_v4  ;;  %v1935_v11 = vunpack.c.l.bf16 %v2073_v8  ;;  %v1936_v12 = vunpack.c.h.bf16 %v2073_v8  ;;  %v2075_v26 = vld [vmem:[%s2403_s30 + $0x18] sm:$0xff]  }
  0x12   : > { %v1939_v13 = vunpack.c.l.bf16 %v2074_v9  ;;  %v1940_v14 = vunpack.c.h.bf16 %v2074_v9  ;;  %v1943_v34 = vunpack.c.l.bf16 %v2075_v26  ;;  %v1944_v35 = vunpack.c.h.bf16 %v2075_v26 }
  0x13   : > { %v311_v15 = vmul.f32 %v1931_v6, %v2412_v5  ;;  %v312_v16 = vmul.f32 %v1932_v7, %v2412_v5  ;;  %v313_v18 = vmul.f32 %v1935_v11, %v2412_v5  ;;  %v314_v19 = vmul.f32 %v1936_v12, %v2412_v5  ;;  %2134 = vmatpush3.bf16.msra.mxu0 %v2202_v3 }
  0x14   : > { %v315_v24 = vmul.f32 %v1939_v13, %v2412_v5  ;;  %v316_v25 = vmul.f32 %v1940_v14, %v2412_v5  ;;  %2186 = vmatpush3.bf16.msra.mxu1 %v2202_v3  ;;  %2135 = vmatprep.subr.bf16.mxu0 %v2203_v17  ;;  %v317_v54 = vmul.f32 %v1943_v34, %v2412_v5  ;;  %v2076_v3 = vld [vmem:[%s2403_s30 + $0x20] sm:$0xff]  }
  0x15   : > { %v350_v20 = vadd.f32 %v2419_v10, %v311_v15  ;;  %v2430_v21 = vadd.f32 %v2419_v10, %v312_v16  ;;  %v2433_v22 = vadd.f32 %v2419_v10, %v313_v18  ;;  %v2436_v23 = vadd.f32 %v2419_v10, %v314_v19  ;;  %2179 = vmatprep.subr.bf16.mxu1 %v2203_v17 }
  0x16   : > { %v2463_v39 = vadd.f32 %v2419_v10, %v315_v24  ;;  %v2466_v40 = vadd.f32 %v2419_v10, %v316_v25  ;;  %v318_v55 = vmul.f32 %v1944_v35, %v2412_v5  ;;  %v2482_v1 = vadd.f32 %v2419_v10, %v317_v54 }
  0x17   : > { %v2441_v27 = vmul.f32 0.70710677, %v350_v20  ;;  %v2444_v28 = vmul.f32 0.70710677, %v2430_v21  ;;  %v2450_v30 = vmul.f32 0.70710677, %v2433_v22  ;;  %2136 = vmatpush3.bf16.msra.mxu0 %v2203_v17  ;;  %v1947_v15 = vunpack.c.l.bf16 %v2076_v3 }
  0x18   : > { %v2453_v31 = vmul.f32 0.70710677, %v2436_v23  ;;  %2187 = vmatpush3.bf16.msra.mxu1 %v2203_v17  ;;  %2137 = vmatprep.subr.bf16.mxu0 %v2204_v29  ;;  %v2474_v62 = vmul.f32 0.70710677, %v2463_v39  ;;  %v2477_v63 = vmul.f32 0.70710677, %v2466_v40  ;;  %v2485_v2 = vadd.f32 %v2419_v10, %v318_v55 }
  0x19   : > { %v446_v32 = vand.u32 2147483647, %v2441_v27  ;;  %v447_v33 = vand.u32 2147483647, %v2444_v28  ;;  %v448_v37 = vand.u32 2147483647, %v2450_v30  ;;  %2180 = vmatprep.subr.bf16.mxu1 %v2204_v29  ;;  %v1948_v19 = vunpack.c.h.bf16 %v2076_v3 }
  0x1a   : > { %v449_v38 = vand.u32 2147483647, %v2453_v31  ;;  %v2479_v0 = vmul.f32 0.5, %v350_v20  ;;  %v450_v6 = vand.u32 2147483647, %v2474_v62  ;;  %v2491_v8 = vmul.f32 0.5, %v2430_v21 }
  0x1b   : > { %v478_v41 = vmul.f32 0.3275911, %v446_v32  ;;  %v479_v42 = vmul.f32 0.3275911, %v447_v33  ;;  %v894_v43 = vsub.f32 0.0, %v446_v32  ;;  %v895_v44 = vsub.f32 0.0, %v447_v33  ;;  %2138 = vmatpush3.bf16.msra.mxu0 %v2204_v29 }
  0x1c   : > { %v480_v45 = vmul.f32 0.3275911, %v448_v37  ;;  %v481_v46 = vmul.f32 0.3275911, %v449_v38  ;;  %v896_v47 = vsub.f32 0.0, %v448_v37  ;;  %v897_v48 = vsub.f32 0.0, %v449_v38  ;;  %2188 = vmatpush3.bf16.msra.mxu1 %v2204_v29  ;;  %2139 = vmatprep.subr.bf16.mxu0 %v2205_v36 }
  0x1d   : > { %v510_v49 = vadd.f32 1.0, %v478_v41  ;;  %v511_v50 = vadd.f32 1.0, %v479_v42  ;;  %v926_v51 = vmul.f32 %v894_v43, %v446_v32  ;;  %v927_v52 = vmul.f32 %v895_v44, %v447_v33  ;;  %2181 = vmatprep.subr.bf16.mxu1 %v2205_v36 }
  0x1e   : > { %v512_v53 = vadd.f32 1.0, %v480_v45  ;;  %v928_v58 = vmul.f32 %v896_v47, %v448_v37  ;;  %v513_v60 = vadd.f32 1.0, %v481_v46  ;;  %v929_v61 = vmul.f32 %v897_v48, %v449_v38 }
  0x1f   : > { %2207 = vrcp.f32 %v510_v49  ;;  %v958_v56 = vmul.f32 1.442695, %v926_v51  ;;  %v960_v57 = vmul.f32 1.442695, %v927_v52  ;;  %2140 = vmatpush3.bf16.msra.mxu0 %v2205_v36  ;;  %v451_v7 = vand.u32 2147483647, %v2477_v63 }
  0x20   : > { %2209 = vrcp.f32 %v511_v50  ;;  %v962_v4 = vmul.f32 1.442695, %v928_v58  ;;  %2189 = vmatpush3.bf16.msra.mxu1 %v2205_v36  ;;  %2141 = vmatprep.subr.bf16.mxu0 %v2206_v59  ;;  %v2494_v9 = vmul.f32 0.5, %v2433_v22  ;;  %v964_v11 = vmul.f32 1.442695, %v929_v61 }
  0x21   : > { %2211 = vpow2.f32 %v958_v56  ;;  %2182 = vmatprep.subr.bf16.mxu1 %v2206_v59  ;;  %v482_v12 = vmul.f32 0.3275911, %v450_v6  ;;  %v483_v13 = vmul.f32 0.3275911, %v451_v7  ;;  %v898_v14 = vsub.f32 0.0, %v450_v6 }
  0x22   : > { %2213 = vpow2.f32 %v960_v57  ;;  %v899_v16 = vsub.f32 0.0, %v451_v7  ;;  %v2497_v17 = vmul.f32 0.70710677, %v2482_v1  ;;  %v2500_v18 = vmul.f32 0.70710677, %v2485_v2 }
  0x23   : > { %2215 = vrcp.f32 %v512_v53  ;;  %2142 = vmatpush3.bf16.msra.mxu0 %v2206_v59  ;;  %v514_v20 = vadd.f32 1.0, %v482_v12  ;;  %v515_v21 = vadd.f32 1.0, %v483_v13  ;;  %v930_v22 = vmul.f32 %v898_v14, %v450_v6 }
  0x24   : > { %2217 = vrcp.f32 %v513_v60  ;;  %2190 = vmatpush3.bf16.msra.mxu1 %v2206_v59  ;;  %v931_v24 = vmul.f32 %v899_v16, %v451_v7  ;;  %v452_v25 = vand.u32 2147483647, %v2497_v17  ;;  %v453_v26 = vand.u32 2147483647, %v2500_v18 }
  0x25   : > { %2219 = vpow2.f32 %v962_v4  ;;  %v2507_v32 = vmul.f32 0.5, %v2436_v23  ;;  %v966_v33 = vmul.f32 1.442695, %v930_v22  ;;  %v319_v34 = vmul.f32 %v1947_v15, %v2412_v5 }
  0x26   : > { %2221 = vpow2.f32 %v964_v11  ;;  %v968_v37 = vmul.f32 1.442695, %v931_v24  ;;  %v484_v38 = vmul.f32 0.3275911, %v452_v25  ;;  %v485_v43 = vmul.f32 0.3275911, %v453_v26 }
  0x27   : > { %2223 = vrcp.f32 %v514_v20  ;;  %v900_v44 = vsub.f32 0.0, %v452_v25  ;;  %v320_v23 = vmul.f32 %v1948_v19, %v2412_v5  ;;  %v901_v48 = vsub.f32 0.0, %v453_v26  ;;  %v2546_v20 = vld [vmem:[%s2403_s30 + $0x28] sm:$0xff]  }
  0x28   : > { %2225 = vrcp.f32 %v515_v21  ;;  %v516_v47 = vadd.f32 1.0, %v484_v38  ;;  %v517_v51 = vadd.f32 1.0, %v485_v43  ;;  %v2522_v53 = vadd.f32 %v2419_v10, %v319_v34 }
  0x29   : > { %v2504_v29 = vpop.eup %2207  ;;  %2227 = vpow2.f32 %v966_v33  ;;  %v932_v52 = vmul.f32 %v900_v44, %v452_v25  ;;  %v933_v57 = vmul.f32 %v901_v48, %v453_v26  ;;  %v2531_v6 = vadd.f32 %v2419_v10, %v320_v23 }
  0x2a   : > { %v2510_v35 = vpop.eup %2209  ;;  %v606_v36 = vmul.f32 1.0614054, %v2504_v29  ;;  %2229 = vrcp.f32 %v516_v47  ;;  %v2536_v13 = vmul.f32 0.5, %v2463_v39  ;;  %v2543_v19 = vmul.f32 0.5, %v2466_v40 }
  0x2b   : > { %v2513_v41 = vpop.eup %2211  ;;  %v607_v42 = vmul.f32 1.0614054, %v2510_v35  ;;  %2231 = vrcp.f32 %v517_v51  ;;  %v970_v60 = vmul.f32 1.442695, %v932_v52  ;;  %v972_v4 = vmul.f32 1.442695, %v933_v57 }
  0x2c   : > { %v2517_v45 = vpop.eup %2213  ;;  %v638_v46 = vadd.f32 -1.4531521, %v606_v36  ;;  %2233 = vpow2.f32 %v968_v37  ;;  %v2553_v24 = vmul.f32 0.70710677, %v2522_v53  ;;  %v2556_v25 = vmul.f32 0.70710677, %v2531_v6 }
  0x2d   : > { %v2519_v49 = vpop.eup %2215  ;;  %v639_v50 = vadd.f32 -1.4531521, %v607_v42  ;;  %2235 = vpow2.f32 %v970_v60  ;;  %v1951_v42 = vunpack.c.l.bf16 %v2546_v20  ;;  %vm1086_vm0 = vcmp.ge.f32.partialorder %v2441_v27, 0.0 }
  0x2e   : > { %v2524_v54 = vpop.eup %2217  ;;  %v670_v55 = vmul.f32 %v2504_v29, %v638_v46  ;;  %v608_v56 = vmul.f32 1.0614054, %v2519_v49  ;;  %2237 = vpow2.f32 %v972_v4  ;;  %v2568_v47 = vand.u32 2147483647, %v2553_v24 }
  0x2f   : > { %v671_v58 = vmul.f32 %v2510_v35, %v639_v50  ;;  %v609_v59 = vmul.f32 1.0614054, %v2524_v54  ;;  %v2533_v7 = vpop.eup %2219  ;;  %v2574_v52 = vand.u32 2147483647, %v2556_v25  ;;  %vm1087_vm1 = vcmp.ge.f32.partialorder %v2444_v28, 0.0 }
  0x30   : > { %v702_v61 = vadd.f32 1.4214138, %v670_v55  ;;  %v640_v3 = vadd.f32 -1.4531521, %v608_v56  ;;  %v2538_v14 = vpop.eup %2221  ;;  %vm1088_vm2 = vcmp.ge.f32.partialorder %v2450_v30, 0.0  ;;  %vm1089_vm3 = vcmp.ge.f32.partialorder %v2453_v31, 0.0 }
  0x31   : > { %v703_v11 = vadd.f32 1.4214138, %v671_v58  ;;  %v641_v12 = vadd.f32 -1.4531521, %v609_v59  ;;  %v2548_v21 = vpop.eup %2223  ;;  %v2581_v59 = vmul.f32 0.3275911, %v2568_v47 }
  0x32   : > { %v734_v15 = vmul.f32 %v2504_v29, %v702_v61  ;;  %v672_v16 = vmul.f32 %v2519_v49, %v640_v3  ;;  %v2558_v26 = vpop.eup %2225  ;;  %v610_v34 = vmul.f32 1.0614054, %v2548_v21  ;;  %vm1090_vm4 = vcmp.ge.f32.partialorder %v2474_v62, 0.0 }
  0x33   : > { %v735_v22 = vmul.f32 %v2510_v35, %v703_v11  ;;  %v673_v39 = vmul.f32 %v2524_v54, %v641_v12  ;;  %v611_v38 = vmul.f32 1.0614054, %v2558_v26  ;;  %v2563_v43 = vpop.eup %2227  ;;  %vm1091_vm5 = vcmp.ge.f32.partialorder %v2477_v63, 0.0 }
  0x34   : > { %v766_v33 = vadd.f32 -0.28449672, %v734_v15  ;;  %v704_v40 = vadd.f32 1.4214138, %v672_v16  ;;  %v642_v46 = vadd.f32 -1.4531521, %v610_v34  ;;  %v2576_v55 = vpop.eup %2229 }
  0x35   : > { %v767_v36 = vadd.f32 -0.28449672, %v735_v22  ;;  %v705_v37 = vadd.f32 1.4214138, %v673_v39  ;;  %v643_v51 = vadd.f32 -1.4531521, %v611_v38  ;;  %v2583_v60 = vpop.eup %2231 }
  0x36   : > { %v798_v44 = vmul.f32 %v2504_v29, %v766_v33  ;;  %v736_v23 = vmul.f32 %v2519_v49, %v704_v40  ;;  %v674_v58 = vmul.f32 %v2548_v21, %v642_v46  ;;  %v612_v11 = vmul.f32 1.0614054, %v2576_v55  ;;  %v2234_v39 = vpop.eup %2233 }
  0x37   : > { %v799_v48 = vmul.f32 %v2510_v35, %v767_v36  ;;  %v737_v50 = vmul.f32 %v2524_v54, %v705_v37  ;;  %v675_v4 = vmul.f32 %v2558_v26, %v643_v51  ;;  %v613_v22 = vmul.f32 1.0614054, %v2583_v60  ;;  %v2593_v37 = vpop.eup %2235 }
  0x38   : > { %v830_v56 = vadd.f32 0.2548296, %v798_v44  ;;  %v768_v57 = vadd.f32 -0.28449672, %v736_v23  ;;  %v706_v16 = vadd.f32 1.4214138, %v674_v58  ;;  %v2601_v51 = vpop.eup %2237 }
  0x39   : > { %v831_v61 = vadd.f32 0.2548296, %v799_v48  ;;  %v769_v3 = vadd.f32 -0.28449672, %v737_v50  ;;  %v707_v34 = vadd.f32 1.4214138, %v675_v4 }
  0x3a   : > { %v862_v12 = vmul.f32 %v2504_v29, %v830_v56  ;;  %v800_v15 = vmul.f32 %v2519_v49, %v768_v57  ;;  %v644_v36 = vadd.f32 -1.4531521, %v612_v11  ;;  %v738_v29 = vmul.f32 %v2548_v21, %v706_v16 }
  0x3b   : > { %v863_v33 = vmul.f32 %v2510_v35, %v831_v61  ;;  %v801_v40 = vmul.f32 %v2524_v54, %v769_v3  ;;  %v645_v23 = vadd.f32 -1.4531521, %v613_v22  ;;  %v739_v35 = vmul.f32 %v2558_v26, %v707_v34 }
  0x3c   : > { %v1022_v38 = vmul.f32 %v2513_v41, %v862_v12  ;;  %v832_v44 = vadd.f32 0.2548296, %v800_v15  ;;  %v676_v50 = vmul.f32 %v2576_v55, %v644_v36  ;;  %v770_v58 = vadd.f32 -0.28449672, %v738_v29 }
  0x3d   : > { %v1023_v46 = vmul.f32 %v2517_v45, %v863_v33  ;;  %v833_v48 = vadd.f32 0.2548296, %v801_v40  ;;  %v677_v41 = vmul.f32 %v2583_v60, %v645_v23  ;;  %v771_v4 = vadd.f32 -0.28449672, %v739_v35 }
  0x3e   : > { %v1054_v56 = vsub.f32 1.0, %v1022_v38  ;;  %v864_v57 = vmul.f32 %v2519_v49, %v832_v44  ;;  %v708_v11 = vadd.f32 1.4214138, %v676_v50  ;;  %v802_v15 = vmul.f32 %v2548_v21, %v770_v58 }
  0x3f   : > { %v1055_v61 = vsub.f32 1.0, %v1023_v46  ;;  %v865_v3 = vmul.f32 %v2524_v54, %v833_v48  ;;  %v709_v16 = vadd.f32 1.4214138, %v677_v41  ;;  %v803_v40 = vmul.f32 %v2558_v26, %v771_v4 }
  0x40   : > { %v1118_v12 = vsub.f32 0.0, %v1054_v56  ;;  %v1024_v45 = vmul.f32 %v2533_v7, %v864_v57  ;;  %v740_v49 = vmul.f32 %v2576_v55, %v708_v11  ;;  %v834_v36 = vadd.f32 0.2548296, %v802_v15 }
  0x41   : > { %v1119_v22 = vsub.f32 0.0, %v1055_v61  ;;  %v1025_v33 = vmul.f32 %v2538_v14, %v865_v3  ;;  %v741_v7 = vmul.f32 %v2583_v60, %v709_v16  ;;  %v835_v29 = vadd.f32 0.2548296, %v803_v40 }
  0x42   : > { %v1150_v54 = vsel %vm1086_vm0, %v1054_v56, %v1118_v12  ;;  %v1056_v34 = vsub.f32 1.0, %v1024_v45  ;;  %v866_v48 = vmul.f32 %v2548_v21, %v834_v36  ;;  %v772_v35 = vadd.f32 -0.28449672, %v740_v49 }
  0x43   : > { %v1151_v38 = vsel %vm1087_vm1, %v1055_v61, %v1119_v22  ;;  %v1182_v44 = vadd.f32 1.0, %v1150_v54  ;;  %v1057_v14 = vsub.f32 1.0, %v1025_v33  ;;  %v867_v56 = vmul.f32 %v2558_v26, %v835_v29 }
  0x44   : > { %v1183_v23 = vadd.f32 1.0, %v1151_v38  ;;  %v1120_v46 = vsub.f32 0.0, %v1056_v34  ;;  %v773_v57 = vadd.f32 -0.28449672, %v741_v7  ;;  %v1026_v41 = vmul.f32 %v2563_v43, %v866_v48 }
  0x45   : > { %v1214_v27 = vmul.f32 %v1182_v44, %v2479_v0  ;;  %v1121_v50 = vsub.f32 0.0, %v1057_v14  ;;  %v804_v61 = vmul.f32 %v2576_v55, %v772_v35  ;;  %v1027_v4 = vmul.f32 %v2234_v39, %v867_v56 }
  0x46   : > { %v1215_v58 = vmul.f32 %v1183_v23, %v2491_v8  ;;  %v1152_v28 = vsel %vm1088_vm2, %v1056_v34, %v1120_v46  ;;  %v805_v0 = vmul.f32 %v2583_v60, %v773_v57  ;;  %v1058_v26 = vsub.f32 1.0, %v1026_v41 }
  0x47   : > { %v1153_v3 = vsel %vm1089_vm3, %v1057_v14, %v1121_v50  ;;  %v1184_v21 = vadd.f32 1.0, %v1152_v28  ;;  %v836_v45 = vadd.f32 0.2548296, %v804_v61  ;;  %v1059_v15 = vsub.f32 1.0, %v1027_v4  ;;  %v2078_v14 = vld [vmem:[%s2403_s30 + $0x30] sm:$0xff]  }
  0x48   : > { %v1246_v11 = vpack.c.bf16 %v1215_v58, %v1214_v27  ;;  %v1185_v12 = vadd.f32 1.0, %v1153_v3  ;;  %v837_v30 = vadd.f32 0.2548296, %v805_v0  ;;  %v487_v16 = vmul.f32 0.3275911, %v2574_v52 }
  0x49   : > { %v1216_v8 = vmul.f32 %v1184_v21, %v2494_v9  ;;  %v1122_v22 = vsub.f32 0.0, %v1058_v26  ;;  %v868_v31 = vmul.f32 %v2576_v55, %v836_v45  ;;  %v518_v39 = vadd.f32 1.0, %v2581_v59 }
  0x4a   : > { %2143 = vmatprep.mubr.bf16.mxu0 %v1246_v11  ;;  %v1217_v43 = vmul.f32 %v1185_v12, %v2507_v32  ;;  %v1123_v33 = vsub.f32 0.0, %v1059_v15  ;;  %v869_v40 = vmul.f32 %v2583_v60, %v837_v30  ;;  %v519_v49 = vadd.f32 1.0, %v487_v16 }
  0x4b   : > { %v1952_v54 = vunpack.c.h.bf16 %v2546_v20  ;;  %v1154_v34 = vsel %vm1090_vm4, %v1058_v26, %v1122_v22  ;;  %v1028_v36 = vmul.f32 %v2593_v37, %v868_v31  ;;  %2239 = vrcp.f32 %v518_v39 }
  0x4c   : > { %v1247_v9 = vpack.c.bf16 %v1217_v43, %v1216_v8  ;;  %v1155_v32 = vsel %vm1091_vm5, %v1059_v15, %v1123_v33  ;;  %v1186_v55 = vadd.f32 1.0, %v1154_v34  ;;  %v1029_v59 = vmul.f32 %v2601_v51, %v869_v40  ;;  %v2079_v34 = vld [vmem:[%s2403_s30 + $0x38] sm:$0xff]  }
  0x4d   : > { %2241 = vrcp.f32 %v519_v49  ;;  %v1187_v60 = vadd.f32 1.0, %v1155_v32  ;;  %v1060_v7 = vsub.f32 1.0, %v1028_v36  ;;  %v902_v38 = vsub.f32 0.0, %v2568_v47 }
  0x4e   : > { %2144 = vmatmul.mubr.bf16.vlgmr.msra.gmra.mrb[0].mxu0 %v1247_v9  ;;  %v903_v44 = vsub.f32 0.0, %v2574_v52  ;;  %v1218_v62 = vmul.f32 %v1186_v55, %v2536_v13  ;;  %v388_v37 = vmul.f32 0.5, %v2482_v1  ;;  %v1061_v29 = vsub.f32 1.0, %v1029_v59 }
  0x4f   : > { %vm1092_vm6 = vcmp.ge.f32.partialorder %v2497_v17, 0.0  ;;  %v1219_v63 = vmul.f32 %v1187_v60, %v2543_v19  ;;  %v389_v51 = vmul.f32 0.5, %v2485_v2  ;;  %vm1093_vm7 = vcmp.ge.f32.partialorder %v2500_v18, 0.0 }
  0x50   : > { %v1124_v23 = vsub.f32 0.0, %v1060_v7  ;;  %v1125_v46 = vsub.f32 0.0, %v1061_v29  ;;  %v321_v48 = vmul.f32 %v1951_v42, %v2412_v5  ;;  %v322_v35 = vmul.f32 %v1952_v54, %v2412_v5 }
  0x51   : > { %v1955_v13 = vunpack.c.l.bf16 %v2078_v14  ;;  %v1248_v27 = vpack.c.bf16 %v1219_v63, %v1218_v62  ;;  %v934_v50 = vmul.f32 %v902_v38, %v2568_v47  ;;  %v935_v17 = vmul.f32 %v903_v44, %v2574_v52 }
  0x52   : > { %v1156_v1 = vsel %vm1092_vm6, %v1060_v7, %v1124_v23  ;;  %v1157_v19 = vsel %vm1093_vm7, %v1061_v29, %v1125_v46  ;;  %v2658_v2 = vadd.f32 %v2419_v10, %v321_v48  ;;  %v2661_v18 = vadd.f32 %v2419_v10, %v322_v35 }
  0x53   : > { %v1188_v56 = vadd.f32 1.0, %v1156_v1  ;;  %2147 = vmatprep.mubr.bf16.mxu0 %v1248_v27  ;;  %v1189_v20 = vadd.f32 1.0, %v1157_v19  ;;  %v1956_v42 = vunpack.c.h.bf16 %v2078_v14  ;;  %v323_v57 = vmul.f32 %v1955_v13, %v2412_v5 }
  0x54   : > { %v2665_v28 = vmul.f32 0.70710677, %v2658_v2  ;;  %v974_v41 = vmul.f32 1.442695, %v934_v50  ;;  %v2670_v61 = vmul.f32 0.70710677, %v2661_v18  ;;  %v1959_v14 = vunpack.c.l.bf16 %v2079_v34 }
  0x55   : > { %v1220_v58 = vmul.f32 %v1188_v56, %v388_v37  ;;  %v2667_v47 = vpop.eup %2239  ;;  %v1221_v52 = vmul.f32 %v1189_v20, %v389_v51  ;;  %v324_v3 = vmul.f32 %v1956_v42, %v2412_v5  ;;  %v976_v0 = vmul.f32 1.442695, %v935_v17 }
  0x56   : > { %v614_v4 = vmul.f32 1.0614054, %v2667_v47  ;;  %v456_v11 = vand.u32 2147483647, %v2665_v28  ;;  %v457_v45 = vand.u32 2147483647, %v2670_v61  ;;  %v2680_v8 = vadd.f32 %v2419_v10, %v323_v57 }
  0x57   : > { %v2673_v21 = vpop.eup %2241  ;;  %v1249_v12 = vpack.c.bf16 %v1221_v52, %v1220_v58  ;;  %v2683_v16 = vadd.f32 %v2419_v10, %v324_v3  ;;  %2243 = vpow2.f32 %v974_v41  ;;  %v2695_v55 = vmul.f32 0.5, %v2522_v53 }
  0x58   : > { %v615_v26 = vmul.f32 1.0614054, %v2673_v21  ;;  %v646_v15 = vadd.f32 -1.4531521, %v614_v4  ;;  %v488_v30 = vmul.f32 0.3275911, %v456_v11  ;;  %2245 = vpow2.f32 %v976_v0 }
  0x59   : > { %2148 = vmatmul.mubr.bf16.gmra.mrb[4].mxu0 %v1249_v12  ;;  %v489_v22 = vmul.f32 0.3275911, %v457_v45  ;;  %v904_v33 = vsub.f32 0.0, %v456_v11  ;;  %v905_v54 = vsub.f32 0.0, %v457_v45  ;;  %v2688_v9 = vmul.f32 0.70710677, %v2680_v8 }
  0x5a   : > { %v647_v43 = vadd.f32 -1.4531521, %v615_v26  ;;  %v678_v31 = vmul.f32 %v2667_v47, %v646_v15  ;;  %v520_v39 = vadd.f32 1.0, %v488_v30  ;;  %v2692_v32 = vmul.f32 0.70710677, %v2683_v16 }
  0x5b   : > { %v521_v49 = vadd.f32 1.0, %v489_v22  ;;  %v458_v60 = vand.u32 2147483647, %v2688_v9  ;;  %v936_v38 = vmul.f32 %v904_v33, %v456_v11  ;;  %v937_v37 = vmul.f32 %v905_v54, %v457_v45 }
  0x5c   : > { %v679_v40 = vmul.f32 %v2673_v21, %v647_v43  ;;  %v710_v36 = vadd.f32 1.4214138, %v678_v31  ;;  %2247 = vrcp.f32 %v520_v39  ;;  %v459_v44 = vand.u32 2147483647, %v2692_v32 }
  0x5d   : > { %2249 = vrcp.f32 %v521_v49  ;;  %v490_v29 = vmul.f32 0.3275911, %v458_v60  ;;  %v906_v63 = vsub.f32 0.0, %v458_v60  ;;  %v2702_v51 = vmul.f32 0.5, %v2531_v6 }
  0x5e   : > { %v711_v59 = vadd.f32 1.4214138, %v679_v40  ;;  %v742_v7 = vmul.f32 %v2667_v47, %v710_v36  ;;  %v491_v23 = vmul.f32 0.3275911, %v459_v44  ;;  %v907_v46 = vsub.f32 0.0, %v459_v44 }
  0x5f   : > { %v522_v35 = vadd.f32 1.0, %v490_v29  ;;  %v938_v13 = vmul.f32 %v906_v63, %v458_v60  ;;  %v1960_v27 = vunpack.c.h.bf16 %v2079_v34  ;;  %v978_v50 = vmul.f32 1.442695, %v936_v38 }
  0x60   : > { %v743_v62 = vmul.f32 %v2673_v21, %v711_v59  ;;  %v774_v53 = vadd.f32 -0.28449672, %v742_v7  ;;  %v523_v17 = vadd.f32 1.0, %v491_v23  ;;  %v325_v19 = vmul.f32 %v1959_v14, %v2412_v5 }
  0x61   : > { %v2244_v56 = vpop.eup %2243  ;;  %vm1094_vm8 = vcmp.ge.f32.partialorder %v2553_v24, 0.0  ;;  %v980_v6 = vmul.f32 1.442695, %v937_v37  ;;  %2251 = vrcp.f32 %v522_v35  ;;  %v326_v42 = vmul.f32 %v1960_v27, %v2412_v5 }
  0x62   : > { %v775_v48 = vadd.f32 -0.28449672, %v743_v62  ;;  %v806_v1 = vmul.f32 %v2667_v47, %v774_v53  ;;  %v2246_v57 = vpop.eup %2245  ;;  %vm1095_vm9 = vcmp.ge.f32.partialorder %v2556_v25, 0.0  ;;  %2253 = vrcp.f32 %v523_v17 }
  0x63   : > { %v939_v52 = vmul.f32 %v907_v46, %v459_v44  ;;  %v2711_v41 = vadd.f32 %v2419_v10, %v325_v19  ;;  %v2714_v4 = vmul.f32 0.5, %v2658_v2  ;;  %v982_v0 = vmul.f32 1.442695, %v938_v13 }
  0x64   : > { %v807_v20 = vmul.f32 %v2673_v21, %v775_v48  ;;  %v838_v58 = vadd.f32 0.2548296, %v806_v1  ;;  %v2717_v11 = vadd.f32 %v2419_v10, %v326_v42  ;;  %v2723_v45 = vmul.f32 0.5, %v2661_v18  ;;  %v2080_v1 = vld [vmem:[%s2403_s30 + $0x40] sm:$0xff]  }
  0x65   : > { %2255 = vpow2.f32 %v978_v50  ;;  %v2726_v15 = vmul.f32 0.70710677, %v2711_v41  ;;  %v984_v39 = vmul.f32 1.442695, %v939_v52  ;;  %vm1096_vm10 = vcmp.ge.f32.partialorder %v2665_v28, 0.0 }
  0x66   : > { %v839_v3 = vadd.f32 0.2548296, %v807_v20  ;;  %v2719_v12 = vpop.eup %2247  ;;  %v870_v26 = vmul.f32 %v2667_v47, %v838_v58  ;;  %2257 = vpow2.f32 %v980_v6  ;;  %v2733_v22 = vmul.f32 0.70710677, %v2717_v11 }
  0x67   : > { %v2728_v30 = vpop.eup %2249  ;;  %v616_v43 = vmul.f32 1.0614054, %v2719_v12  ;;  %v460_v18 = vand.u32 2147483647, %v2726_v15  ;;  %2259 = vpow2.f32 %v982_v0  ;;  %v1963_v0 = vunpack.c.l.bf16 %v2080_v1 }
  0x68   : > { %v871_v2 = vmul.f32 %v2673_v21, %v839_v3  ;;  %v1030_v31 = vmul.f32 %v2244_v56, %v870_v26  ;;  %v617_v47 = vmul.f32 1.0614054, %v2728_v30  ;;  %v461_v49 = vand.u32 2147483647, %v2733_v22 }
  0x69   : > { %v648_v40 = vadd.f32 -1.4531521, %v616_v43  ;;  %v492_v21 = vmul.f32 0.3275911, %v460_v18  ;;  %v908_v36 = vsub.f32 0.0, %v460_v18  ;;  %vm1097_vm11 = vcmp.ge.f32.partialorder %v2670_v61, 0.0 }
  0x6a   : > { %v1031_v33 = vmul.f32 %v2246_v57, %v871_v2  ;;  %v1062_v54 = vsub.f32 1.0, %v1030_v31  ;;  %v649_v34 = vadd.f32 -1.4531521, %v617_v47  ;;  %v493_v7 = vmul.f32 0.3275911, %v461_v49 }
  0x6b   : > { %v680_v60 = vmul.f32 %v2719_v12, %v648_v40  ;;  %v909_v38 = vsub.f32 0.0, %v461_v49  ;;  %v524_v62 = vadd.f32 1.0, %v492_v21  ;;  %v940_v37 = vmul.f32 %v908_v36, %v460_v18  ;;  %v2740_v29 = vpop.eup %2251  ;;  %v2766_v36 = vld [vmem:[%s2403_s30 + $0x48] sm:$0xff]  }
  0x6c   : > { %v1063_v59 = vsub.f32 1.0, %v1031_v33  ;;  %v1126_v44 = vsub.f32 0.0, %v1062_v54  ;;  %v681_v14 = vmul.f32 %v2728_v30, %v649_v34  ;;  %v525_v23 = vadd.f32 1.0, %v493_v7  ;;  %v2742_v48 = vpop.eup %2253 }
  0x6d   : > { %v712_v53 = vadd.f32 1.4214138, %v680_v60  ;;  %v941_v46 = vmul.f32 %v909_v38, %v461_v49  ;;  %v618_v27 = vmul.f32 1.0614054, %v2740_v29  ;;  %2261 = vrcp.f32 %v524_v62 }
  0x6e   : > { %v1127_v63 = vsub.f32 0.0, %v1063_v59  ;;  %v1158_v35 = vsel %vm1094_vm8, %v1062_v54, %v1126_v44  ;;  %v713_v13 = vadd.f32 1.4214138, %v681_v14  ;;  %v619_v56 = vmul.f32 1.0614054, %v2742_v48 }
  0x6f   : > { %v1190_v17 = vadd.f32 1.0, %v1158_v35  ;;  %v744_v19 = vmul.f32 %v2719_v12, %v712_v53  ;;  %v2256_v20 = vpop.eup %2255  ;;  %v650_v57 = vadd.f32 -1.4531521, %v618_v27  ;;  %2263 = vrcp.f32 %v525_v23 }
  0x70   : > { %v1159_v50 = vsel %vm1095_vm9, %v1063_v59, %v1127_v63  ;;  %v745_v42 = vmul.f32 %v2728_v30, %v713_v13  ;;  %v2258_v24 = vpop.eup %2257  ;;  %v651_v3 = vadd.f32 -1.4531521, %v619_v56  ;;  %2265 = vpow2.f32 %v984_v39 }
  0x71   : > { %v1191_v6 = vadd.f32 1.0, %v1159_v50  ;;  %v1222_v58 = vmul.f32 %v1190_v17, %v2695_v55  ;;  %v776_v52 = vadd.f32 -0.28449672, %v744_v19  ;;  %v682_v2 = vmul.f32 %v2740_v29, %v650_v57  ;;  %v2756_v43 = vpop.eup %2259 }
  0x72   : > { %v777_v26 = vadd.f32 -0.28449672, %v745_v42  ;;  %v683_v47 = vmul.f32 %v2742_v48, %v651_v3  ;;  %v986_v18 = vmul.f32 1.442695, %v940_v37  ;;  %v1964_v33 = vunpack.c.h.bf16 %v2080_v1 }
  0x73   : > { %v1223_v25 = vmul.f32 %v1191_v6, %v2702_v51  ;;  %v808_v31 = vmul.f32 %v2719_v12, %v776_v52  ;;  %v714_v49 = vadd.f32 1.4214138, %v682_v2  ;;  %v988_v51 = vmul.f32 1.442695, %v941_v46 }
  0x74   : > { %v809_v55 = vmul.f32 %v2728_v30, %v777_v26  ;;  %v715_v39 = vadd.f32 1.4214138, %v683_v47  ;;  %v327_v34 = vmul.f32 %v1963_v0, %v2412_v5  ;;  %v328_v21 = vmul.f32 %v1964_v33, %v2412_v5 }
  0x75   : > { %v1250_v40 = vpack.c.bf16 %v1223_v25, %v1222_v58  ;;  %v840_v54 = vadd.f32 0.2548296, %v808_v31  ;;  %v2769_v60 = vmul.f32 0.5, %v2680_v8  ;;  %v2772_v7 = vmul.f32 0.5, %v2683_v16 }
  0x76   : > { %v841_v59 = vadd.f32 0.2548296, %v809_v55  ;;  %v746_v38 = vmul.f32 %v2740_v29, %v714_v49  ;;  %v747_v14 = vmul.f32 %v2742_v48, %v715_v39  ;;  %2267 = vpow2.f32 %v986_v18 }
  0x77   : > { %2151 = vmatprep.mubr.bf16.mxu0 %v1250_v40  ;;  %v872_v44 = vmul.f32 %v2719_v12, %v840_v54  ;;  %v2778_v62 = vadd.f32 %v2419_v10, %v327_v34  ;;  %v2780_v37 = vpop.eup %2261  ;;  %v2784_v8 = vadd.f32 %v2419_v10, %v328_v21  ;;  %v1967_v16 = vunpack.c.l.bf16 %v2766_v36 }
  0x78   : > { %v873_v63 = vmul.f32 %v2728_v30, %v841_v59  ;;  %v778_v53 = vadd.f32 -0.28449672, %v746_v38  ;;  %v779_v46 = vadd.f32 -0.28449672, %v747_v14  ;;  %v620_v12 = vmul.f32 1.0614054, %v2780_v37 }
  0x79   : > { %v1032_v23 = vmul.f32 %v2256_v20, %v872_v44  ;;  %2269 = vpow2.f32 %v988_v51  ;;  %v2788_v35 = vpop.eup %2263  ;;  %v2792_v1 = vmul.f32 0.70710677, %v2778_v62  ;;  %v1968_v30 = vunpack.c.h.bf16 %v2766_v36 }
  0x7a   : > { %v1033_v13 = vmul.f32 %v2258_v24, %v873_v63  ;;  %v810_v27 = vmul.f32 %v2740_v29, %v778_v53  ;;  %v811_v10 = vmul.f32 %v2742_v48, %v779_v46  ;;  %vm1098_vm12 = vcmp.ge.f32.partialorder %v2688_v9, 0.0  ;;  %v2266_v56 = vpop.eup %2265 }
  0x7b   : > { %v1064_v50 = vsub.f32 1.0, %v1032_v23  ;;  %v621_v17 = vmul.f32 1.0614054, %v2788_v35  ;;  %v652_v19 = vadd.f32 -1.4531521, %v620_v12  ;;  %vm1099_vm13 = vcmp.ge.f32.partialorder %v2692_v32, 0.0 }
  0x7c   : > { %v1065_v20 = vsub.f32 1.0, %v1033_v13  ;;  %v842_v6 = vadd.f32 0.2548296, %v810_v27  ;;  %v2800_v42 = vmul.f32 0.70710677, %v2784_v8  ;;  %v329_v57 = vmul.f32 %v1967_v16, %v2412_v5 }
  0x7d   : > { %v1128_v24 = vsub.f32 0.0, %v1064_v50  ;;  %v843_v58 = vadd.f32 0.2548296, %v811_v10  ;;  %v653_v52 = vadd.f32 -1.4531521, %v621_v17  ;;  %v684_v3 = vmul.f32 %v2780_v37, %v652_v19 }
  0x7e   : > { %v1129_v0 = vsub.f32 0.0, %v1065_v20  ;;  %v874_v25 = vmul.f32 %v2740_v29, %v842_v6  ;;  %v462_v26 = vand.u32 2147483647, %v2792_v1  ;;  %v463_v2 = vand.u32 2147483647, %v2800_v42 }
  0x7f   : > { %v1160_v31 = vsel %vm1096_vm10, %v1064_v50, %v1128_v24  ;;  %v875_v47 = vmul.f32 %v2742_v48, %v843_v58  ;;  %v685_v18 = vmul.f32 %v2788_v35, %v653_v52  ;;  %v716_v5 = vadd.f32 1.4214138, %v684_v3 }
  0x80   : > { %v1161_v33 = vsel %vm1097_vm11, %v1065_v20, %v1129_v0  ;;  %v1192_v40 = vadd.f32 1.0, %v1160_v31  ;;  %v1034_v55 = vmul.f32 %v2756_v43, %v874_v25  ;;  %v494_v49 = vmul.f32 0.3275911, %v462_v26  ;;  %v2268_v29 = vpop.eup %2267 }
  0x81   : > { %v1193_v51 = vadd.f32 1.0, %v1161_v33  ;;  %v1035_v54 = vmul.f32 %v2266_v56, %v875_v47  ;;  %v717_v39 = vadd.f32 1.4214138, %v685_v18  ;;  %v748_v34 = vmul.f32 %v2780_v37, %v716_v5 }
  0x82   : > { %v1224_v28 = vmul.f32 %v1192_v40, %v2714_v4  ;;  %v1066_v21 = vsub.f32 1.0, %v1034_v55  ;;  %v495_v48 = vmul.f32 0.3275911, %v463_v2  ;;  %v526_v36 = vadd.f32 1.0, %v494_v49 }
  0x83   : > { %v2270_v59 = vpop.eup %2269  ;;  %v1225_v38 = vmul.f32 %v1193_v51, %v2723_v45  ;;  %v1067_v61 = vsub.f32 1.0, %v1035_v54  ;;  %v749_v44 = vmul.f32 %v2788_v35, %v717_v39  ;;  %v780_v14 = vadd.f32 -0.28449672, %v748_v34  ;;  %v2824_v45 = vld [vmem:[%s3149_s1] ss:$0 sm:$0xff] }
  0x84   : > { %v1130_v43 = vsub.f32 0.0, %v1066_v21  ;;  %v527_v63 = vadd.f32 1.0, %v495_v48  ;;  %2271 = vrcp.f32 %v526_v36  ;;  %v910_v53 = vsub.f32 0.0, %v462_v26 }
  0x85   : > { %v1251_v16 = vpack.c.bf16 %v1225_v38, %v1224_v28  ;;  %v1131_v23 = vsub.f32 0.0, %v1067_v61  ;;  %v781_v46 = vadd.f32 -0.28449672, %v749_v44  ;;  %v812_v12 = vmul.f32 %v2780_v37, %v780_v14 }
  0x86   : > { %v1162_v4 = vsel %vm1098_vm12, %v1066_v21, %v1130_v43  ;;  %2273 = vrcp.f32 %v527_v63  ;;  %v911_v13 = vsub.f32 0.0, %v463_v2  ;;  %v330_v27 = vmul.f32 %v2824_v45, %v1968_v30  ;;  %v2835_v30 = vld [vmem:[%s3150_s2] ss:$0 sm:$0xff]  ;;  %v2083_v63 = vld [vmem:[%s2403_s30 + $0x58] sm:$0xff]  }
  0x87   : > { %2152 = vmatmul.mubr.bf16.gmra.mrb[8].mxu0 %v1251_v16  ;;  %v1163_v50 = vsel %vm1099_vm13, %v1067_v61, %v1131_v23  ;;  %v1194_v10 = vadd.f32 1.0, %v1162_v4  ;;  %v813_v17 = vmul.f32 %v2788_v35, %v781_v46  ;;  %v844_v19 = vadd.f32 0.2548296, %v812_v12 }
  0x88   : > { %v1195_v9 = vadd.f32 1.0, %v1163_v50  ;;  %v942_v56 = vmul.f32 %v910_v53, %v462_v26  ;;  %v2838_v32 = vadd.f32 %v2835_v30, %v329_v57  ;;  %v943_v52 = vmul.f32 %v911_v13, %v463_v2 }
  0x89   : > { %v1226_v20 = vmul.f32 %v1194_v10, %v2769_v60  ;;  %v845_v6 = vadd.f32 0.2548296, %v813_v17  ;;  %v876_v24 = vmul.f32 %v2780_v37, %v844_v19  ;;  %v2842_v3 = vadd.f32 %v2835_v30, %v330_v27  ;;  %v2082_v37 = vld [vmem:[%s2403_s30 + $0x50] sm:$0xff]  }
  0x8a   : > { %v1227_v58 = vmul.f32 %v1195_v9, %v2772_v7  ;;  %v2846_v25 = vmul.f32 0.70710677, %v2838_v32  ;;  %v396_v31 = vmul.f32 0.5, %v2711_v41  ;;  %v990_v47 = vmul.f32 1.442695, %v942_v56 }
  0x8b   : > { %v877_v0 = vmul.f32 %v2788_v35, %v845_v6  ;;  %v1036_v60 = vmul.f32 %v2268_v29, %v876_v24  ;;  %v2851_v57 = vmul.f32 0.70710677, %v2842_v3  ;;  %v397_v7 = vmul.f32 0.5, %v2717_v11 }
  0x8c   : > { %v1252_v26 = vpack.c.bf16 %v1227_v58, %v1226_v20  ;;  %v464_v5 = vand.u32 2147483647, %v2846_v25  ;;  %vm1100_vm14 = vcmp.ge.f32.partialorder %v2726_v15, 0.0  ;;  %v992_v35 = vmul.f32 1.442695, %v943_v52 }
  0x8d   : > { %v1037_v2 = vmul.f32 %v2270_v59, %v877_v0  ;;  %v1068_v18 = vsub.f32 1.0, %v1036_v60  ;;  %v465_v40 = vand.u32 2147483647, %v2851_v57  ;;  %v1971_v55 = vunpack.c.l.bf16 %v2082_v37 }
  0x8e   : > { %v2855_v33 = vpop.eup %2271  ;;  %2155 = vmatprep.mubr.bf16.mxu0 %v1252_v26  ;;  %v496_v51 = vmul.f32 0.3275911, %v464_v5  ;;  %vm1101_vm15 = vcmp.ge.f32.partialorder %v2733_v22, 0.0  ;;  %2275 = vpow2.f32 %v990_v47  ;;  %v1972_v39 = vunpack.c.h.bf16 %v2082_v37 }
  0x8f   : > { %v1069_v41 = vsub.f32 1.0, %v1037_v2  ;;  %v1132_v49 = vsub.f32 0.0, %v1068_v18  ;;  %v622_v29 = vmul.f32 1.0614054, %v2855_v33  ;;  %v497_v11 = vmul.f32 0.3275911, %v465_v40 }
  0x90   : > { %v2860_v54 = vpop.eup %2273  ;;  %v528_v36 = vadd.f32 1.0, %v496_v51  ;;  %v331_v38 = vmul.f32 %v2824_v45, %v1971_v55  ;;  %2277 = vpow2.f32 %v992_v35  ;;  %v912_v46 = vsub.f32 0.0, %v464_v5 }
  0x91   : > { %v1133_v34 = vsub.f32 0.0, %v1069_v41  ;;  %v1164_v28 = vsel %vm1100_vm14, %v1068_v18, %v1132_v49  ;;  %v623_v15 = vmul.f32 1.0614054, %v2860_v54  ;;  %v654_v21 = vadd.f32 -1.4531521, %v622_v29 }
  0x92   : > { %v1196_v48 = vadd.f32 1.0, %v1164_v28  ;;  %v529_v59 = vadd.f32 1.0, %v497_v11  ;;  %2279 = vrcp.f32 %v528_v36  ;;  %v332_v12 = vmul.f32 %v2824_v45, %v1972_v39 }
  0x93   : > { %v1165_v61 = vsel %vm1101_vm15, %v1069_v41, %v1133_v34  ;;  %v655_v44 = vadd.f32 -1.4531521, %v623_v15  ;;  %v686_v14 = vmul.f32 %v2855_v33, %v654_v21  ;;  %v2870_v4 = vadd.f32 %v2835_v30, %v331_v38 }
  0x94   : > { %v1197_v22 = vadd.f32 1.0, %v1165_v61  ;;  %v1228_v43 = vmul.f32 %v1196_v48, %v396_v31  ;;  %2281 = vrcp.f32 %v529_v59  ;;  %v913_v50 = vsub.f32 0.0, %v465_v40 }
  0x95   : > { %v687_v53 = vmul.f32 %v2860_v54, %v655_v44  ;;  %v718_v16 = vadd.f32 1.4214138, %v686_v14  ;;  %v1975_v10 = vunpack.c.l.bf16 %v2083_v63  ;;  %v2874_v19 = vadd.f32 %v2835_v30, %v332_v12 }
  0x96   : > { %v1229_v23 = vmul.f32 %v1197_v22, %v397_v7  ;;  %v2877_v9 = vmul.f32 0.70710677, %v2870_v4  ;;  %v2880_v56 = vmul.f32 0.5, %v2778_v62  ;;  %v1976_v24 = vunpack.c.h.bf16 %v2083_v63 }
  0x97   : > { %v719_v13 = vadd.f32 1.4214138, %v687_v53  ;;  %v750_v27 = vmul.f32 %v2855_v33, %v718_v16  ;;  %v944_v52 = vmul.f32 %v912_v46, %v464_v5  ;;  %v2884_v0 = vmul.f32 0.70710677, %v2874_v19  ;;  %v2084_v46 = vld [vmem:[%s2403_s30 + $0x60] sm:$0xff]  }
  0x98   : > { %v1253_v17 = vpack.c.bf16 %v1229_v23, %v1228_v43  ;;  %v2276_v58 = vpop.eup %2275  ;;  %v466_v60 = vand.u32 2147483647, %v2877_v9  ;;  %v333_v37 = vmul.f32 %v2824_v45, %v1975_v10  ;;  %v2889_v26 = vmul.f32 0.5, %v2784_v8 }
  0x99   : > { %v751_v20 = vmul.f32 %v2860_v54, %v719_v13  ;;  %v782_v6 = vadd.f32 -0.28449672, %v750_v27  ;;  %v945_v47 = vmul.f32 %v913_v50, %v465_v40  ;;  %vm1102_vm0 = vcmp.ge.f32.partialorder %v2792_v1, 0.0 }
  0x9a   : > { %2156 = vmatmul.mubr.bf16.gmra.mrb[12].mxu0 %v1253_v17  ;;  %v2894_v7 = vmul.f32 0.5, %v2838_v32  ;;  %v467_v2 = vand.u32 2147483647, %v2884_v0  ;;  %v498_v18 = vmul.f32 0.3275911, %v466_v60  ;;  %v334_v5 = vmul.f32 %v2824_v45, %v1976_v24  ;;  %v2278_v35 = vpop.eup %2277 }
  0x9b   : > { %v783_v31 = vadd.f32 -0.28449672, %v751_v20  ;;  %v814_v62 = vmul.f32 %v2855_v33, %v782_v6  ;;  %v2900_v8 = vmul.f32 0.5, %v2842_v3  ;;  %v914_v49 = vsub.f32 0.0, %v466_v60 }
  0x9c   : > { %v2902_v29 = vpop.eup %2279  ;;  %vm1103_vm1 = vcmp.ge.f32.partialorder %v2800_v42, 0.0  ;;  %v994_v40 = vmul.f32 1.442695, %v944_v52  ;;  %v499_v32 = vmul.f32 0.3275911, %v467_v2  ;;  %v530_v51 = vadd.f32 1.0, %v498_v18 }
  0x9d   : > { %v815_v55 = vmul.f32 %v2860_v54, %v783_v31  ;;  %v846_v41 = vadd.f32 0.2548296, %v814_v62  ;;  %v2906_v11 = vadd.f32 %v2835_v30, %v333_v37  ;;  %v624_v15 = vmul.f32 1.0614054, %v2902_v29 }
  0x9e   : > { %v2908_v39 = vpop.eup %2281  ;;  %v996_v3 = vmul.f32 1.442695, %v945_v47  ;;  %v531_v48 = vadd.f32 1.0, %v499_v32  ;;  %2283 = vrcp.f32 %v530_v51  ;;  %v2914_v36 = vadd.f32 %v2835_v30, %v334_v5 }
  0x9f   : > { %v847_v34 = vadd.f32 0.2548296, %v815_v55  ;;  %v878_v28 = vmul.f32 %v2855_v33, %v846_v41  ;;  %v625_v21 = vmul.f32 1.0614054, %v2908_v39  ;;  %v656_v61 = vadd.f32 -1.4531521, %v624_v15 }
  0xa0   : > { %v946_v44 = vmul.f32 %v914_v49, %v466_v60  ;;  %2285 = vrcp.f32 %v531_v48  ;;  %v915_v22 = vsub.f32 0.0, %v467_v2  ;;  %v2918_v33 = vmul.f32 0.70710677, %v2906_v11 }
  0xa1   : > { %v879_v59 = vmul.f32 %v2860_v54, %v847_v34  ;;  %v1038_v38 = vmul.f32 %v2276_v58, %v878_v28  ;;  %v657_v14 = vadd.f32 -1.4531521, %v625_v21  ;;  %v688_v53 = vmul.f32 %v2902_v29, %v656_v61 }
  0xa2   : > { %2287 = vpow2.f32 %v994_v40  ;;  %v2923_v54 = vmul.f32 0.70710677, %v2914_v36  ;;  %v468_v23 = vand.u32 2147483647, %v2918_v33  ;;  %v998_v50 = vmul.f32 1.442695, %v946_v44 }
  0xa3   : > { %v1039_v43 = vmul.f32 %v2278_v35, %v879_v59  ;;  %v1070_v63 = vsub.f32 1.0, %v1038_v38  ;;  %v689_v16 = vmul.f32 %v2908_v39, %v657_v14  ;;  %2289 = vpow2.f32 %v996_v3 }
  0xa4   : > { %v720_v27 = vadd.f32 1.4214138, %v688_v53  ;;  %v947_v17 = vmul.f32 %v915_v22, %v467_v2  ;;  %v469_v20 = vand.u32 2147483647, %v2923_v54  ;;  %v500_v6 = vmul.f32 0.3275911, %v468_v23 }
  0xa5   : > { %v1071_v12 = vsub.f32 1.0, %v1039_v43  ;;  %v1134_v13 = vsub.f32 0.0, %v1070_v63  ;;  %v721_v10 = vadd.f32 1.4214138, %v689_v16  ;;  %v916_v60 = vsub.f32 0.0, %v468_v23 }
  0xa6   : > { %v752_v52 = vmul.f32 %v2902_v29, %v720_v27  ;;  %v501_v62 = vmul.f32 0.3275911, %v469_v20  ;;  %v532_v47 = vadd.f32 1.0, %v500_v6  ;;  %v917_v2 = vsub.f32 0.0, %v469_v20 }
  0xa7   : > { %v1135_v24 = vsub.f32 0.0, %v1071_v12  ;;  %v1166_v58 = vsel %vm1102_vm0, %v1070_v63, %v1134_v13  ;;  %v753_v31 = vmul.f32 %v2908_v39, %v721_v10  ;;  %v1979_v35 = vunpack.c.l.bf16 %v2084_v46 }
  0xa8   : > { %v1198_v37 = vadd.f32 1.0, %v1166_v58  ;;  %v784_v5 = vadd.f32 -0.28449672, %v752_v52  ;;  %v2934_v55 = vpop.eup %2283  ;;  %v533_v40 = vadd.f32 1.0, %v501_v62  ;;  %2291 = vrcp.f32 %v532_v47 }
  0xa9   : > { %v1167_v18 = vsel %vm1103_vm1, %v1071_v12, %v1135_v24  ;;  %v785_v49 = vadd.f32 -0.28449672, %v753_v31  ;;  %v626_v51 = vmul.f32 1.0614054, %v2934_v55  ;;  %v948_v34 = vmul.f32 %v916_v60, %v468_v23  ;;  %v2960_v24 = vld [vmem:[%s2403_s30 + $0x68] sm:$0xff]  }
  0xaa   : > { %v1199_v41 = vadd.f32 1.0, %v1167_v18  ;;  %v1230_v1 = vmul.f32 %v1198_v37, %v2880_v56  ;;  %v816_v32 = vmul.f32 %v2902_v29, %v784_v5  ;;  %v2939_v28 = vpop.eup %2285  ;;  %vm1104_vm2 = vcmp.ge.f32.partialorder %v2846_v25, 0.0 }
  0xab   : > { %v817_v15 = vmul.f32 %v2908_v39, %v785_v49  ;;  %2293 = vrcp.f32 %v533_v40  ;;  %v949_v3 = vmul.f32 %v917_v2, %v469_v20  ;;  %v627_v48 = vmul.f32 1.0614054, %v2939_v28 }
  0xac   : > { %v1231_v42 = vmul.f32 %v1199_v41, %v2889_v26  ;;  %v2288_v21 = vpop.eup %2287  ;;  %v848_v56 = vadd.f32 0.2548296, %v816_v32  ;;  %v658_v59 = vadd.f32 -1.4531521, %v626_v51  ;;  %v1980_v38 = vunpack.c.h.bf16 %v2084_v46 }
  0xad   : > { %v2290_v61 = vpop.eup %2289  ;;  %v849_v14 = vadd.f32 0.2548296, %v817_v15  ;;  %2295 = vpow2.f32 %v998_v50  ;;  %v1000_v22 = vmul.f32 1.442695, %v947_v17  ;;  %v659_v26 = vadd.f32 -1.4531521, %v627_v48 }
  0xae   : > { %v1254_v44 = vpack.c.bf16 %v1231_v42, %v1230_v1  ;;  %v880_v43 = vmul.f32 %v2902_v29, %v848_v56  ;;  %v690_v63 = vmul.f32 %v2934_v55, %v658_v59  ;;  %v1002_v53 = vmul.f32 1.442695, %v948_v34 }
  0xaf   : > { %v881_v16 = vmul.f32 %v2908_v39, %v849_v14  ;;  %v1004_v23 = vmul.f32 1.442695, %v949_v3  ;;  %v335_v12 = vmul.f32 %v2824_v45, %v1979_v35  ;;  %v336_v46 = vmul.f32 %v2824_v45, %v1980_v38 }
  0xb0   : > { %2159 = vmatprep.mubr.bf16.mxu1 %v1254_v44  ;;  %v1040_v13 = vmul.f32 %v2288_v21, %v880_v43  ;;  %vm1105_vm3 = vcmp.ge.f32.partialorder %v2851_v57, 0.0  ;;  %v691_v27 = vmul.f32 %v2939_v28, %v659_v26  ;;  %v722_v50 = vadd.f32 1.4214138, %v690_v63 }
  0xb1   : > { %v1041_v29 = vmul.f32 %v2290_v61, %v881_v16  ;;  %2297 = vpow2.f32 %v1000_v22  ;;  %v2953_v10 = vadd.f32 %v2835_v30, %v335_v12  ;;  %v2956_v17 = vadd.f32 %v2835_v30, %v336_v46 }
  0xb2   : > { %v1072_v39 = vsub.f32 1.0, %v1040_v13  ;;  %v723_v20 = vadd.f32 1.4214138, %v691_v27  ;;  %v754_v6 = vmul.f32 %v2934_v55, %v722_v50  ;;  %2299 = vpow2.f32 %v1002_v53  ;;  %v2968_v37 = vpop.eup %2291 }
  0xb3   : > { %v1073_v58 = vsub.f32 1.0, %v1041_v29  ;;  %v2963_v52 = vmul.f32 0.5, %v2870_v4  ;;  %2301 = vpow2.f32 %v1004_v23  ;;  %v2966_v60 = vmul.f32 0.70710677, %v2953_v10 }
  0xb4   : > { %v1136_v31 = vsub.f32 0.0, %v1072_v39  ;;  %v755_v62 = vmul.f32 %v2939_v28, %v723_v20  ;;  %v786_v47 = vadd.f32 -0.28449672, %v754_v6  ;;  %v2972_v18 = vmul.f32 0.70710677, %v2956_v17 }
  0xb5   : > { %v2974_v5 = vpop.eup %2293  ;;  %v1137_v2 = vsub.f32 0.0, %v1073_v58  ;;  %v628_v35 = vmul.f32 1.0614054, %v2968_v37  ;;  %v470_v4 = vand.u32 2147483647, %v2966_v60  ;;  %v1983_v41 = vunpack.c.l.bf16 %v2960_v24 }
  0xb6   : > { %v1168_v1 = vsel %vm1104_vm2, %v1072_v39, %v1136_v31  ;;  %v787_v49 = vadd.f32 -0.28449672, %v755_v62  ;;  %v818_v40 = vmul.f32 %v2934_v55, %v786_v47  ;;  %v629_v32 = vmul.f32 1.0614054, %v2974_v5 }
  0xb7   : > { %v2296_v51 = vpop.eup %2295  ;;  %v1169_v34 = vsel %vm1105_vm3, %v1073_v58, %v1137_v2  ;;  %v1200_v42 = vadd.f32 1.0, %v1168_v1  ;;  %v660_v15 = vadd.f32 -1.4531521, %v628_v35  ;;  %v471_v3 = vand.u32 2147483647, %v2972_v18 }
  0xb8   : > { %v1201_v21 = vadd.f32 1.0, %v1169_v34  ;;  %v819_v56 = vmul.f32 %v2939_v28, %v787_v49  ;;  %v850_v48 = vadd.f32 0.2548296, %v818_v40  ;;  %v661_v59 = vadd.f32 -1.4531521, %v629_v32 }
  0xb9   : > { %v1232_v25 = vmul.f32 %v1200_v42, %v2894_v7  ;;  %v692_v38 = vmul.f32 %v2968_v37, %v660_v15  ;;  %v502_v61 = vmul.f32 0.3275911, %v470_v4  ;;  %v503_v44 = vmul.f32 0.3275911, %v471_v3 }
  0xba   : > { %v1233_v14 = vmul.f32 %v1201_v21, %v2900_v8  ;;  %v851_v22 = vadd.f32 0.2548296, %v819_v56  ;;  %v882_v57 = vmul.f32 %v2934_v55, %v850_v48  ;;  %v693_v43 = vmul.f32 %v2974_v5, %v661_v59 }
  0xbb   : > { %v2298_v26 = vpop.eup %2297  ;;  %v724_v63 = vadd.f32 1.4214138, %v692_v38  ;;  %v534_v53 = vadd.f32 1.0, %v502_v61  ;;  %v535_v16 = vadd.f32 1.0, %v503_v44  ;;  %v1984_v23 = vunpack.c.h.bf16 %v2960_v24 }
  0xbc   : > { %v2300_v12 = vpop.eup %2299  ;;  %v1255_v46 = vpack.c.bf16 %v1233_v14, %v1232_v25  ;;  %v883_v7 = vmul.f32 %v2939_v28, %v851_v22  ;;  %v1042_v13 = vmul.f32 %v2296_v51, %v882_v57  ;;  %v725_v27 = vadd.f32 1.4214138, %v693_v43 }
  0xbd   : > { %v2302_v50 = vpop.eup %2301  ;;  %v756_v8 = vmul.f32 %v2968_v37, %v724_v63  ;;  %2303 = vrcp.f32 %v534_v53  ;;  %v918_v29 = vsub.f32 0.0, %v470_v4  ;;  %v337_v55 = vmul.f32 %v2824_v45, %v1983_v41 }
  0xbe   : > { %2160 = vmatmul.mubr.bf16.vlgmr.msra.gmra.mrb[0].mxu1 %v1255_v46  ;;  %v1043_v39 = vmul.f32 %v2298_v26, %v883_v7  ;;  %v1074_v20 = vsub.f32 1.0, %v1042_v13  ;;  %v757_v6 = vmul.f32 %v2974_v5, %v725_v27  ;;  %2305 = vrcp.f32 %v535_v16  ;;  %v2086_v16 = vld [vmem:[%s2403_s30 + $0x70] sm:$0xff]  }
  0xbf   : > { %v403_v24 = vmul.f32 0.5, %v2874_v19  ;;  %vm1106_vm4 = vcmp.ge.f32.partialorder %v2877_v9, 0.0  ;;  %v788_v28 = vadd.f32 -0.28449672, %v756_v8  ;;  %v919_v58 = vsub.f32 0.0, %v471_v3 }
  0xc0   : > { %v1075_v31 = vsub.f32 1.0, %v1043_v39  ;;  %v1138_v62 = vsub.f32 0.0, %v1074_v20  ;;  %v789_v47 = vadd.f32 -0.28449672, %v757_v6  ;;  %v338_v2 = vmul.f32 %v2824_v45, %v1984_v23 }
  0xc1   : > { %vm1107_vm5 = vcmp.ge.f32.partialorder %v2884_v0, 0.0  ;;  %v820_v35 = vmul.f32 %v2968_v37, %v788_v28  ;;  %v950_v41 = vmul.f32 %v918_v29, %v470_v4  ;;  %v3003_v1 = vadd.f32 %v2835_v30, %v337_v55 }
  0xc2   : > { %v1139_v49 = vsub.f32 0.0, %v1075_v31  ;;  %v1170_v40 = vsel %vm1106_vm4, %v1074_v20, %v1138_v62  ;;  %v821_v19 = vmul.f32 %v2974_v5, %v789_v47  ;;  %v3007_v9 = vadd.f32 %v2835_v30, %v338_v2 }
  0xc3   : > { %v1202_v32 = vadd.f32 1.0, %v1170_v40  ;;  %v404_v51 = vmul.f32 0.5, %v2906_v11  ;;  %v852_v34 = vadd.f32 0.2548296, %v820_v35  ;;  %v951_v42 = vmul.f32 %v919_v58, %v471_v3 }
  0xc4   : > { %v1171_v15 = vsel %vm1107_vm5, %v1075_v31, %v1139_v49  ;;  %v405_v0 = vmul.f32 0.5, %v2914_v36  ;;  %v853_v21 = vadd.f32 0.2548296, %v821_v19  ;;  %v3012_v4 = vmul.f32 0.70710677, %v3003_v1 }
  0xc5   : > { %v1203_v56 = vadd.f32 1.0, %v1171_v15  ;;  %v1234_v48 = vmul.f32 %v1202_v32, %v2963_v52  ;;  %v884_v59 = vmul.f32 %v2968_v37, %v852_v34  ;;  %v3017_v25 = vmul.f32 0.70710677, %v3007_v9  ;;  %v2087_v32 = vld [vmem:[%s2403_s30 + $0x78] sm:$0xff]   ;;  %s3122_s30 = scalar_lea.vmem %s3152_s4, %s1849_s27 }
  0xc6   : > { %v885_v38 = vmul.f32 %v2974_v5, %v853_v21  ;;  %vm1108_vm6 = vcmp.ge.f32.partialorder %v2918_v33, 0.0  ;;  %v1006_v11 = vmul.f32 1.442695, %v950_v41  ;;  %v472_v36 = vand.u32 2147483647, %v3012_v4 }
  0xc7   : > { %v3022_v3 = vpop.eup %2303  ;;  %v1235_v61 = vmul.f32 %v1203_v56, %v403_v24  ;;  %v1044_v44 = vmul.f32 %v2300_v12, %v884_v59  ;;  %v1008_v14 = vmul.f32 1.442695, %v951_v42  ;;  %v473_v52 = vand.u32 2147483647, %v3017_v25 }
  0xc8   : > { %v3025_v22 = vpop.eup %2305  ;;  %v1045_v37 = vmul.f32 %v2302_v50, %v885_v38  ;;  %vm1109_vm7 = vcmp.ge.f32.partialorder %v2923_v54, 0.0  ;;  %v630_v5 = vmul.f32 1.0614054, %v3022_v3  ;;  %v504_v57 = vmul.f32 0.3275911, %v472_v36 }
  0xc9   : > { %v1256_v43 = vpack.c.bf16 %v1235_v61, %v1234_v48  ;;  %v1076_v26 = vsub.f32 1.0, %v1044_v44  ;;  %v631_v63 = vmul.f32 1.0614054, %v3025_v22  ;;  %v505_v53 = vmul.f32 0.3275911, %v473_v52 }
  0xca   : > { %v1077_v23 = vsub.f32 1.0, %v1045_v37  ;;  %v662_v46 = vadd.f32 -1.4531521, %v630_v5  ;;  %2307 = vpow2.f32 %v1006_v11  ;;  %v536_v12 = vadd.f32 1.0, %v504_v57 }
  0xcb   : > { %2163 = vmatprep.mubr.bf16.mxu1 %v1256_v43  ;;  %v1140_v7 = vsub.f32 0.0, %v1076_v26  ;;  %v663_v13 = vadd.f32 -1.4531521, %v631_v63  ;;  %2309 = vpow2.f32 %v1008_v14  ;;  %v537_v27 = vadd.f32 1.0, %v505_v53 }
  0xcc   : > { %v1141_v50 = vsub.f32 0.0, %v1077_v23  ;;  %v694_v8 = vmul.f32 %v3022_v3, %v662_v46  ;;  %2311 = vrcp.f32 %v536_v12  ;;  %v1987_v29 = vunpack.c.l.bf16 %v2086_v16 }
  0xcd   : > { %v1172_v55 = vsel %vm1108_vm6, %v1076_v26, %v1140_v7  ;;  %v695_v39 = vmul.f32 %v3025_v22, %v663_v13  ;;  %2313 = vrcp.f32 %v537_v27  ;;  %v920_v20 = vsub.f32 0.0, %v472_v36 }
  0xce   : > { %v1173_v6 = vsel %vm1109_vm7, %v1077_v23, %v1141_v50  ;;  %v1204_v24 = vadd.f32 1.0, %v1172_v55  ;;  %v726_v28 = vadd.f32 1.4214138, %v694_v8  ;;  %v921_v58 = vsub.f32 0.0, %v473_v52 }
  0xcf   : > { %v1205_v31 = vadd.f32 1.0, %v1173_v6  ;;  %v727_v62 = vadd.f32 1.4214138, %v695_v39  ;;  %v1988_v47 = vunpack.c.h.bf16 %v2086_v16  ;;  %v339_v33 = vmul.f32 %v2824_v45, %v1987_v29 }
  0xd0   : > { %v1236_v2 = vmul.f32 %v1204_v24, %v404_v51  ;;  %v758_v35 = vmul.f32 %v3022_v3, %v726_v28  ;;  %v952_v40 = vmul.f32 %v920_v20, %v472_v36  ;;  %v953_v34 = vmul.f32 %v921_v58, %v473_v52 }
  0xd1   : > { %v1237_v41 = vmul.f32 %v1205_v31, %v405_v0  ;;  %v759_v49 = vmul.f32 %v3025_v22, %v727_v62  ;;  %v340_v19 = vmul.f32 %v2824_v45, %v1988_v47  ;;  %v3043_v42 = vadd.f32 %v2835_v30, %v339_v33 }
  0xd2   : > { %v790_v54 = vadd.f32 -0.28449672, %v758_v35  ;;  %v1991_v59 = vunpack.c.l.bf16 %v2087_v32  ;;  %vm1110_vm8 = vcmp.ge.f32.partialorder %v2966_v60, 0.0  ;;  %v1010_v36 = vmul.f32 1.442695, %v952_v40 }
  0xd3   : > { %v1257_v15 = vpack.c.bf16 %v1237_v41, %v1236_v2  ;;  %v791_v21 = vadd.f32 -0.28449672, %v759_v49  ;;  %v3046_v51 = vadd.f32 %v2835_v30, %v340_v19  ;;  %v3050_v0 = vmul.f32 0.70710677, %v3043_v42 }
  0xd4   : > { %v2308_v56 = vpop.eup %2307  ;;  %v822_v48 = vmul.f32 %v3022_v3, %v790_v54  ;;  %v1992_v44 = vunpack.c.h.bf16 %v2087_v32  ;;  %v1012_v37 = vmul.f32 1.442695, %v953_v34  ;;  %v341_v46 = vmul.f32 %v2824_v45, %v1991_v59 }
  0xd5   : > { %v2310_v38 = vpop.eup %2309  ;;  %2164 = vmatmul.mubr.bf16.gmra.mrb[4].mxu1 %v1257_v15  ;;  %v823_v11 = vmul.f32 %v3025_v22, %v791_v21  ;;  %v3055_v61 = vmul.f32 0.70710677, %v3046_v51  ;;  %v474_v5 = vand.u32 2147483647, %v3050_v0  ;;  %2315 = vpow2.f32 %v1010_v36 }
  0xd6   : > { %v3057_v14 = vpop.eup %2311  ;;  %v854_v52 = vadd.f32 0.2548296, %v822_v48  ;;  %v342_v27 = vmul.f32 %v2824_v45, %v1992_v44  ;;  %2317 = vpow2.f32 %v1012_v37  ;;  %v3072_v24 = vadd.f32 %v2835_v30, %v341_v46 }
  0xd7   : > { %v3060_v57 = vpop.eup %2313  ;;  %v855_v43 = vadd.f32 0.2548296, %v823_v11  ;;  %v632_v26 = vmul.f32 1.0614054, %v3057_v14  ;;  %v475_v63 = vand.u32 2147483647, %v3055_v61 }
  0xd8   : > { %v886_v53 = vmul.f32 %v3022_v3, %v854_v52  ;;  %v633_v16 = vmul.f32 1.0614054, %v3060_v57  ;;  %v506_v23 = vmul.f32 0.3275911, %v474_v5  ;;  %v3075_v45 = vadd.f32 %v2835_v30, %v342_v27 }
  0xd9   : > { %v887_v12 = vmul.f32 %v3025_v22, %v855_v43  ;;  %v664_v7 = vadd.f32 -1.4531521, %v632_v26  ;;  %v507_v13 = vmul.f32 0.3275911, %v475_v63  ;;  %v406_v58 = vmul.f32 0.5, %v2953_v10 }
  0xda   : > { %v1046_v50 = vmul.f32 %v2308_v56, %v886_v53  ;;  %v665_v8 = vadd.f32 -1.4531521, %v633_v16  ;;  %v538_v29 = vadd.f32 1.0, %v506_v23  ;;  %vm1111_vm9 = vcmp.ge.f32.partialorder %v2972_v18, 0.0 }
  0xdb   : > { %v1047_v55 = vmul.f32 %v2310_v38, %v887_v12  ;;  %v696_v39 = vmul.f32 %v3057_v14, %v664_v7  ;;  %v539_v3 = vadd.f32 1.0, %v507_v13  ;;  %v407_v47 = vmul.f32 0.5, %v2956_v17 }
  0xdc   : > { %v1078_v20 = vsub.f32 1.0, %v1046_v50  ;;  %v697_v6 = vmul.f32 %v3060_v57, %v665_v8  ;;  %2319 = vrcp.f32 %v538_v29  ;;  %v922_v33 = vsub.f32 0.0, %v474_v5 }
  0xdd   : > { %v1079_v22 = vsub.f32 1.0, %v1047_v55  ;;  %v728_v28 = vadd.f32 1.4214138, %v696_v39  ;;  %2321 = vrcp.f32 %v539_v3  ;;  %v923_v40 = vsub.f32 0.0, %v475_v63 }
  0xde   : > { %v1142_v31 = vsub.f32 0.0, %v1078_v20  ;;  %v729_v62 = vadd.f32 1.4214138, %v697_v6  ;;  %v3085_v30 = vmul.f32 0.70710677, %v3072_v24  ;;  %v954_v38 = vmul.f32 %v922_v33, %v474_v5 }
  0xdf   : > { %v1143_v2 = vsub.f32 0.0, %v1079_v22  ;;  %v760_v35 = vmul.f32 %v3057_v14, %v728_v28  ;;  %v3088_v32 = vmul.f32 0.70710677, %v3075_v45  ;;  %v2316_v56 = vpop.eup %2315  ;;  %v955_v52 = vmul.f32 %v923_v40, %v475_v63 }
  0xe0   : > { %v1174_v41 = vsel %vm1110_vm8, %v1078_v20, %v1142_v31  ;;  %v761_v49 = vmul.f32 %v3060_v57, %v729_v62  ;;  %v476_v34 = vand.u32 2147483647, %v3085_v30  ;;  %v2318_v36 = vpop.eup %2317  ;;  %v1014_v27 = vmul.f32 1.442695, %v954_v38 }
  0xe1   : > { %v1175_v10 = vsel %vm1111_vm9, %v1079_v22, %v1143_v2  ;;  %v1206_v19 = vadd.f32 1.0, %v1174_v41  ;;  %v792_v18 = vadd.f32 -0.28449672, %v760_v35  ;;  %v477_v21 = vand.u32 2147483647, %v3088_v32 }
  0xe2   : > { %v1207_v17 = vadd.f32 1.0, %v1175_v10  ;;  %v793_v54 = vadd.f32 -0.28449672, %v761_v49  ;;  %v508_v11 = vmul.f32 0.3275911, %v476_v34  ;;  %vm1112_vm10 = vcmp.ge.f32.partialorder %v3012_v4, 0.0 }
  0xe3   : > { %v1238_v15 = vmul.f32 %v1206_v19, %v406_v58  ;;  %v824_v60 = vmul.f32 %v3057_v14, %v792_v18  ;;  %v509_v37 = vmul.f32 0.3275911, %v477_v21  ;;  %v1016_v8 = vmul.f32 1.442695, %v955_v52 }
  0xe4   : > { %v1239_v48 = vmul.f32 %v1207_v17, %v407_v47  ;;  %v825_v59 = vmul.f32 %v3060_v57, %v793_v54  ;;  %v540_v16 = vadd.f32 1.0, %v508_v11  ;;  %vm1113_vm11 = vcmp.ge.f32.partialorder %v3017_v25, 0.0 }
  0xe5   : > { %v856_v44 = vadd.f32 0.2548296, %v824_v60  ;;  %v541_v7 = vadd.f32 1.0, %v509_v37  ;;  %v925_v28 = vsub.f32 0.0, %v477_v21  ;;  %v408_v58 = vmul.f32 0.5, %v3003_v1 }
  0xe6   : > { %v3094_v43 = vpop.eup %2319  ;;  %v1258_v26 = vpack.c.bf16 %v1239_v48, %v1238_v15  ;;  %v857_v53 = vadd.f32 0.2548296, %v825_v59  ;;  %2323 = vrcp.f32 %v540_v16  ;;  %v409_v47 = vmul.f32 0.5, %v3007_v9 }
  0xe7   : > { %v2322_v23 = vpop.eup %2321  ;;  %v888_v46 = vmul.f32 %v3057_v14, %v856_v44  ;;  %v634_v12 = vmul.f32 1.0614054, %v3094_v43  ;;  %2325 = vrcp.f32 %v541_v7  ;;  %v957_v19 = vmul.f32 %v925_v28, %v477_v21 }
  0xe8   : > { %2167 = vmatprep.mubr.bf16.mxu1 %v1258_v26  ;;  %v889_v13 = vmul.f32 %v3060_v57, %v857_v53  ;;  %v635_v5 = vmul.f32 1.0614054, %v2322_v23  ;;  %2327 = vpow2.f32 %v1014_v27  ;;  %v924_v57 = vsub.f32 0.0, %v476_v34 }
  0xe9   : > { %v1048_v50 = vmul.f32 %v2316_v56, %v888_v46  ;;  %v666_v63 = vadd.f32 -1.4531521, %v634_v12  ;;  %2329 = vpow2.f32 %v1016_v8  ;;  %vm1114_vm12 = vcmp.ge.f32.partialorder %v3050_v0, 0.0 }
  0xea   : > { %v1049_v29 = vmul.f32 %v2318_v36, %v889_v13  ;;  %v667_v55 = vadd.f32 -1.4531521, %v635_v5  ;;  %v956_v49 = vmul.f32 %v924_v57, %v476_v34  ;;  %v1020_v36 = vmul.f32 1.442695, %v957_v19 }
  0xeb   : > { %v1080_v39 = vsub.f32 1.0, %v1048_v50  ;;  %v698_v14 = vmul.f32 %v3094_v43, %v666_v63  ;;  %vm1115_vm13 = vcmp.ge.f32.partialorder %v3055_v61, 0.0  ;;  %vm1116_vm14 = vcmp.ge.f32.partialorder %v3085_v30, 0.0 }
  0xec   : > { %v1081_v3 = vsub.f32 1.0, %v1049_v29  ;;  %v699_v20 = vmul.f32 %v2322_v23, %v667_v55  ;;  %v1018_v59 = vmul.f32 1.442695, %v956_v49  ;;  %vm1117_vm15 = vcmp.ge.f32.partialorder %v3088_v32, 0.0 }
  0xed   : > { %v1144_v6 = vsub.f32 0.0, %v1080_v39  ;;  %v730_v22 = vadd.f32 1.4214138, %v698_v14  ;;  %v412_v49 = vmul.f32 0.5, %v3072_v24  ;;  %vm1753_vm0 = vcmask 1040384  }
  0xee   : > { %v1145_v31 = vsub.f32 0.0, %v1081_v3  ;;  %v731_v62 = vadd.f32 1.4214138, %v699_v20  ;;  %2331 = vpow2.f32 %v1018_v59 }
  0xef   : > { %v1176_v2 = vsel %vm1112_vm10, %v1080_v39, %v1144_v6  ;;  %v762_v4 = vmul.f32 %v3094_v43, %v730_v22  ;;  %2333 = vpow2.f32 %v1020_v36  ;;  %v411_v39 = vmul.f32 0.5, %v3046_v51 }
  0xf0   : > { %v1177_v35 = vsel %vm1113_vm11, %v1081_v3, %v1145_v31  ;;  %v1208_v33 = vadd.f32 1.0, %v1176_v2  ;;  %v763_v41 = vmul.f32 %v2322_v23, %v731_v62  ;;  %v2324_v18 = vpop.eup %2323 }
  0xf1   : > { %v1209_v40 = vadd.f32 1.0, %v1177_v35  ;;  %v794_v10 = vadd.f32 -0.28449672, %v762_v4  ;;  %v2326_v1 = vpop.eup %2325  ;;  %v636_v9 = vmul.f32 1.0614054, %v2324_v18 }
  0xf2   : > { %v1240_v17 = vmul.f32 %v1208_v33, %v408_v58  ;;  %v795_v54 = vadd.f32 -0.28449672, %v763_v41  ;;  %v637_v48 = vmul.f32 1.0614054, %v2326_v1  ;;  %v2328_v44 = vpop.eup %2327 }
  0xf3   : > { %v1241_v15 = vmul.f32 %v1209_v40, %v409_v47  ;;  %v826_v60 = vmul.f32 %v3094_v43, %v794_v10  ;;  %v668_v11 = vadd.f32 -1.4531521, %v636_v9  ;;  %v2330_v37 = vpop.eup %2329  ;;  %v413_v10 = vmul.f32 0.5, %v3075_v45 }
  0xf4   : > { %v827_v56 = vmul.f32 %v2322_v23, %v795_v54  ;;  %v669_v52 = vadd.f32 -1.4531521, %v637_v48 }
  0xf5   : > { %v1259_v38 = vpack.c.bf16 %v1241_v15, %v1240_v17  ;;  %v858_v25 = vadd.f32 0.2548296, %v826_v60  ;;  %v700_v26 = vmul.f32 %v2324_v18, %v668_v11 }
  0xf6   : > { %v859_v34 = vadd.f32 0.2548296, %v827_v56  ;;  %v701_v16 = vmul.f32 %v2326_v1, %v669_v52 }
  0xf7   : > { %2168 = vmatmul.mubr.bf16.gmra.mrb[8].mxu1 %v1259_v38  ;;  %v890_v21 = vmul.f32 %v3094_v43, %v858_v25  ;;  %v732_v12 = vadd.f32 1.4214138, %v700_v26  ;;  %v410_v43 = vmul.f32 0.5, %v3043_v42 }
  0xf8   : > { %v891_v53 = vmul.f32 %v2322_v23, %v859_v34  ;;  %v733_v13 = vadd.f32 1.4214138, %v701_v16  ;;  %v2332_v58 = vpop.eup %2331 }
  0xf9   : > { %v1050_v46 = vmul.f32 %v2328_v44, %v890_v21  ;;  %v764_v27 = vmul.f32 %v2324_v18, %v732_v12  ;;  %v2334_v62 = vpop.eup %2333 }
  0xfa   : > { %v1051_v7 = vmul.f32 %v2330_v37, %v891_v53  ;;  %v765_v63 = vmul.f32 %v2326_v1, %v733_v13 }
  0xfb   : > { %v1082_v5 = vsub.f32 1.0, %v1050_v46  ;;  %v796_v29 = vadd.f32 -0.28449672, %v764_v27 }
  0xfc   : > { %v1083_v50 = vsub.f32 1.0, %v1051_v7  ;;  %v797_v55 = vadd.f32 -0.28449672, %v765_v63 }
  0xfd   : > { %v1146_v8 = vsub.f32 0.0, %v1082_v5  ;;  %v828_v3 = vmul.f32 %v2324_v18, %v796_v29 }
  0xfe   : > { %v1147_v23 = vsub.f32 0.0, %v1083_v50  ;;  %v829_v6 = vmul.f32 %v2326_v1, %v797_v55 }
  0xff   : > { %v1178_v14 = vsel %vm1114_vm12, %v1082_v5, %v1146_v8  ;;  %v860_v28 = vadd.f32 0.2548296, %v828_v3 }
 0x100   : > { %v1179_v20 = vsel %vm1115_vm13, %v1083_v50, %v1147_v23  ;;  %v1210_v57 = vadd.f32 1.0, %v1178_v14  ;;  %v861_v31 = vadd.f32 0.2548296, %v829_v6 }
 0x101   : > { %v1211_v22 = vadd.f32 1.0, %v1179_v20  ;;  %v892_v47 = vmul.f32 %v2324_v18, %v860_v28 }
 0x102   : > { %v1242_v0 = vmul.f32 %v1210_v57, %v410_v43  ;;  %v893_v2 = vmul.f32 %v2326_v1, %v861_v31 }
 0x103   : > { %v1243_v61 = vmul.f32 %v1211_v22, %v411_v39  ;;  %v1052_v42 = vmul.f32 %v2332_v58, %v892_v47 }
 0x104   : > { %v1053_v35 = vmul.f32 %v2334_v62, %v893_v2 }
 0x105   : > { %v1260_v4 = vpack.c.bf16 %v1243_v61, %v1242_v0  ;;  %v1084_v33 = vsub.f32 1.0, %v1052_v42 }
 0x106   : > { %v1085_v51 = vsub.f32 1.0, %v1053_v35 }
 0x107   : > { %2171 = vmatprep.mubr.bf16.mxu1 %v1260_v4  ;;  %v1148_v41 = vsub.f32 0.0, %v1084_v33 }
 0x108   : > { %v1149_v40 = vsub.f32 0.0, %v1085_v51 }
 0x109   : > { %v1180_v19 = vsel %vm1116_vm14, %v1084_v33, %v1148_v41 }
 0x10a   : > { %v1181_v18 = vsel %vm1117_vm15, %v1085_v51, %v1149_v40  ;;  %v1212_v17 = vadd.f32 1.0, %v1180_v19 }
 0x10b   : > { %v1213_v54 = vadd.f32 1.0, %v1181_v18 }
 0x10c   : > { %v1244_v1 = vmul.f32 %v1212_v17, %v412_v49 }
 0x10d   : > { %v1245_v15 = vmul.f32 %v1213_v54, %v413_v10 }
 0x10f   : > { %v1261_v60 = vpack.c.bf16 %v1245_v15, %v1244_v1 }
 0x111   : > { %2172 = vmatmul.mubr.bf16.gmra.mrb[12].mxu1 %v1261_v60 }
 0x121   : > { %v2145_v9 = vpop.f32.mrb[0].mxu0 }
 0x122   : > { %v1360_v56 = vpop.f32.mrb[1].mxu0  ;;  %v1686_v25 = vmul.f32 %v2145_v9, %v2145_v9 }
 0x123   : > { %v2146_v24 = vpop.f32.mrb[2].mxu0  ;;  %v1684_v32 = vmul.f32 %v1360_v56, %v1360_v56 }
 0x124   : > { %v2001_v45 = vpack.c.bf16 %v2146_v24, %v2145_v9  ;;  %v1363_v30 = vpop.f32.mrb[3].mxu0  ;;  %v1687_v44 = vmul.f32 %v2146_v24, %v2146_v24 }
 0x125   : > { %v1996_v48 = vpack.c.bf16 %v1363_v30, %v1360_v56  ;;  %v1647_v59 = vadd.f32 %v1363_v30, %v1360_v56  ;;  %v1685_v38 = vmul.f32 %v1363_v30, %v1363_v30 }
 0x126   : > { %2088 = vst [vmem:[%s3122_s30 + $0x8] sm:$0xff] %v2001_v45  }
 0x127   : > { %1997 = vst [vmem:[%s3122_s30] sm:$0xff] %v1996_v48   ;;  %v1648_v11 = vadd.f32 %v2145_v9, %v1647_v59  ;;  %v1716_v36 = vadd.f32 %v1685_v38, %v1684_v32 }
 0x129   : > { %v1717_v34 = vadd.f32 %v1716_v36, %v1686_v25  ;;  %v1649_v52 = vadd.f32 %v2146_v24, %v1648_v11 }
 0x12b   : > { %v1718_v37 = vadd.f32 %v1717_v34, %v1687_v44 }
 0x12c   : > { %v2149_v21 = vpop.f32.mrb[4].mxu0 }
 0x12d   : > { %v1376_v26 = vpop.f32.mrb[5].mxu0  ;;  %v1690_v63 = vmul.f32 %v2149_v21, %v2149_v21 }
 0x12e   : > { %v1650_v53 = vadd.f32 %v1649_v52, %v1376_v26  ;;  %v1688_v16 = vmul.f32 %v1376_v26, %v1376_v26  ;;  %v2150_v46 = vpop.f32.mrb[6].mxu0 }
 0x12f   : > { %v2011_v12 = vpack.c.bf16 %v2150_v46, %v2149_v21  ;;  %v1379_v7 = vpop.f32.mrb[7].mxu0  ;;  %v1691_v43 = vmul.f32 %v2150_v46, %v2150_v46 }
 0x130   : > { %v1719_v13 = vadd.f32 %v1718_v37, %v1688_v16  ;;  %v2006_v5 = vpack.c.bf16 %v1379_v7, %v1376_v26  ;;  %v1651_v27 = vadd.f32 %v1650_v53, %v1379_v7  ;;  %v1689_v50 = vmul.f32 %v1379_v7, %v1379_v7 }
 0x131   : > { %2090 = vst [vmem:[%s3122_s30 + $0x18] sm:$0xff] %v2011_v12  }
 0x132   : > { %2089 = vst [vmem:[%s3122_s30 + $0x10] sm:$0xff] %v2006_v5   ;;  %v1652_v8 = vadd.f32 %v2149_v21, %v1651_v27  ;;  %v1720_v29 = vadd.f32 %v1719_v13, %v1689_v50 }
 0x134   : > { %v1721_v23 = vadd.f32 %v1720_v29, %v1690_v63  ;;  %v1653_v55 = vadd.f32 %v2150_v46, %v1652_v8 }
 0x136   : > { %v1722_v39 = vadd.f32 %v1721_v23, %v1691_v43 }
 0x15a   : > { %v2153_v14 = vpop.f32.mrb[8].mxu0 }
 0x15b   : > { %v1392_v3 = vpop.f32.mrb[9].mxu0  ;;  %v1694_v61 = vmul.f32 %v2153_v14, %v2153_v14 }
 0x15c   : > { %v1654_v20 = vadd.f32 %v1653_v55, %v1392_v3  ;;  %v1692_v57 = vmul.f32 %v1392_v3, %v1392_v3  ;;  %v2154_v6 = vpop.f32.mrb[10].mxu0 }
 0x15d   : > { %v2021_v22 = vpack.c.bf16 %v2154_v6, %v2153_v14  ;;  %v1395_v28 = vpop.f32.mrb[11].mxu0  ;;  %v1695_v4 = vmul.f32 %v2154_v6, %v2154_v6 }
 0x15e   : > { %v1723_v58 = vadd.f32 %v1722_v39, %v1692_v57  ;;  %v2016_v0 = vpack.c.bf16 %v1395_v28, %v1392_v3  ;;  %v1655_v31 = vadd.f32 %v1654_v20, %v1395_v28  ;;  %v1693_v62 = vmul.f32 %v1395_v28, %v1395_v28 }
 0x15f   : > { %2092 = vst [vmem:[%s3122_s30 + $0x28] sm:$0xff] %v2021_v22  }
 0x160   : > { %2091 = vst [vmem:[%s3122_s30 + $0x20] sm:$0xff] %v2016_v0   ;;  %v1656_v47 = vadd.f32 %v2153_v14, %v1655_v31  ;;  %v1724_v2 = vadd.f32 %v1723_v58, %v1693_v62 }
 0x162   : > { %v1725_v42 = vadd.f32 %v1724_v2, %v1694_v61  ;;  %v1657_v35 = vadd.f32 %v2154_v6, %v1656_v47 }
 0x164   : > { %v1726_v33 = vadd.f32 %v1725_v42, %v1695_v4 }
 0x16d   : > { %v2157_v51 = vpop.f32.mrb[12].mxu0 }
 0x16e   : > { %v1408_v41 = vpop.f32.mrb[13].mxu0  ;;  %v1698_v60 = vmul.f32 %v2157_v51, %v2157_v51 }
 0x16f   : > { %v1658_v49 = vadd.f32 %v1657_v35, %v1408_v41  ;;  %v1696_v40 = vmul.f32 %v1408_v41, %v1408_v41  ;;  %v2158_v10 = vpop.f32.mrb[14].mxu0 }
 0x170   : > { %v2031_v19 = vpack.c.bf16 %v2158_v10, %v2157_v51  ;;  %v1411_v18 = vpop.f32.mrb[15].mxu0  ;;  %v1699_v24 = vmul.f32 %v2158_v10, %v2158_v10 }
 0x171   : > { %v1727_v17 = vadd.f32 %v1726_v33, %v1696_v40  ;;  %v2026_v54 = vpack.c.bf16 %v1411_v18, %v1408_v41  ;;  %v1659_v1 = vadd.f32 %v1658_v49, %v1411_v18  ;;  %v1697_v15 = vmul.f32 %v1411_v18, %v1411_v18 }
 0x172   : > { %2094 = vst [vmem:[%s3122_s30 + $0x38] sm:$0xff] %v2031_v19  }
 0x173   : > { %2093 = vst [vmem:[%s3122_s30 + $0x30] sm:$0xff] %v2026_v54   ;;  %v1660_v9 = vadd.f32 %v2157_v51, %v1659_v1  ;;  %v1728_v56 = vadd.f32 %v1727_v17, %v1697_v15 }
 0x175   : > { %v1729_v45 = vadd.f32 %v1728_v56, %v1698_v60  ;;  %v1661_v30 = vadd.f32 %v2158_v10, %v1660_v9 }
 0x177   : > { %v1730_v32 = vadd.f32 %v1729_v45, %v1699_v24 }
 0x191   : > { %v2161_v48 = vpop.f32.mrb[0].mxu1 }
 0x192   : > { %v1424_v59 = vpop.f32.mrb[1].mxu1  ;;  %v1702_v26 = vmul.f32 %v2161_v48, %v2161_v48 }
 0x193   : > { %v1662_v38 = vadd.f32 %v1661_v30, %v1424_v59  ;;  %v1700_v25 = vmul.f32 %v1424_v59, %v1424_v59  ;;  %v2162_v11 = vpop.f32.mrb[2].mxu1 }
 0x194   : > { %v2041_v36 = vpack.c.bf16 %v2162_v11, %v2161_v48  ;;  %v1427_v44 = vpop.f32.mrb[3].mxu1  ;;  %v1703_v46 = vmul.f32 %v2162_v11, %v2162_v11 }
 0x195   : > { %v1731_v34 = vadd.f32 %v1730_v32, %v1700_v25  ;;  %v2036_v52 = vpack.c.bf16 %v1427_v44, %v1424_v59  ;;  %v1663_v37 = vadd.f32 %v1662_v38, %v1427_v44  ;;  %v1701_v21 = vmul.f32 %v1427_v44, %v1427_v44 }
 0x196   : > { %2096 = vst [vmem:[%s3122_s30 + $0x48] sm:$0xff] %v2041_v36  }
 0x197   : > { %2095 = vst [vmem:[%s3122_s30 + $0x40] sm:$0xff] %v2036_v52   ;;  %v1664_v53 = vadd.f32 %v2161_v48, %v1663_v37  ;;  %v1732_v16 = vadd.f32 %v1731_v34, %v1701_v21 }
 0x199   : > { %v1733_v12 = vadd.f32 %v1732_v16, %v1702_v26  ;;  %v1665_v7 = vadd.f32 %v2162_v11, %v1664_v53 }
 0x19b   : > { %v1734_v13 = vadd.f32 %v1733_v12, %v1703_v46 }
 0x1a8   : > { %v2165_v5 = vpop.f32.mrb[4].mxu1 }
 0x1a9   : > { %v1440_v27 = vpop.f32.mrb[5].mxu1  ;;  %v1706_v3 = vmul.f32 %v2165_v5, %v2165_v5 }
 0x1aa   : > { %v1666_v50 = vadd.f32 %v1665_v7, %v1440_v27  ;;  %v1704_v63 = vmul.f32 %v1440_v27, %v1440_v27  ;;  %v2166_v8 = vpop.f32.mrb[6].mxu1 }
 0x1ab   : > { %v2051_v29 = vpack.c.bf16 %v2166_v8, %v2165_v5  ;;  %v1443_v43 = vpop.f32.mrb[7].mxu1  ;;  %v1707_v6 = vmul.f32 %v2166_v8, %v2166_v8 }
 0x1ac   : > { %v1735_v23 = vadd.f32 %v1734_v13, %v1704_v63  ;;  %v2046_v55 = vpack.c.bf16 %v1443_v43, %v1440_v27  ;;  %v1667_v39 = vadd.f32 %v1666_v50, %v1443_v43  ;;  %v1705_v14 = vmul.f32 %v1443_v43, %v1443_v43 }
 0x1ad   : > { %2098 = vst [vmem:[%s3122_s30 + $0x58] sm:$0xff] %v2051_v29  }
 0x1ae   : > { %2097 = vst [vmem:[%s3122_s30 + $0x50] sm:$0xff] %v2046_v55   ;;  %v1668_v20 = vadd.f32 %v2165_v5, %v1667_v39  ;;  %v1736_v57 = vadd.f32 %v1735_v23, %v1705_v14 }
 0x1b0   : > { %v1737_v22 = vadd.f32 %v1736_v57, %v1706_v3  ;;  %v1669_v28 = vadd.f32 %v2166_v8, %v1668_v20 }
 0x1b2   : > { %v1738_v58 = vadd.f32 %v1737_v22, %v1707_v6 }
 0x1ca   : > { %v2169_v0 = vpop.f32.mrb[8].mxu1 }
 0x1cb   : > { %v1456_v31 = vpop.f32.mrb[9].mxu1  ;;  %v1710_v41 = vmul.f32 %v2169_v0, %v2169_v0 }
 0x1cc   : > { %v1670_v62 = vadd.f32 %v1669_v28, %v1456_v31  ;;  %v1708_v61 = vmul.f32 %v1456_v31, %v1456_v31  ;;  %v2170_v47 = vpop.f32.mrb[10].mxu1 }
 0x1cd   : > { %v2061_v2 = vpack.c.bf16 %v2170_v47, %v2169_v0  ;;  %v1459_v4 = vpop.f32.mrb[11].mxu1  ;;  %v1711_v10 = vmul.f32 %v2170_v47, %v2170_v47 }
 0x1ce   : > { %v1739_v42 = vadd.f32 %v1738_v58, %v1708_v61  ;;  %v2056_v35 = vpack.c.bf16 %v1459_v4, %v1456_v31  ;;  %v1671_v33 = vadd.f32 %v1670_v62, %v1459_v4  ;;  %v1709_v51 = vmul.f32 %v1459_v4, %v1459_v4 }
 0x1cf   : > { %2100 = vst [vmem:[%s3122_s30 + $0x68] sm:$0xff] %v2061_v2  }
 0x1d0   : > { %2099 = vst [vmem:[%s3122_s30 + $0x60] sm:$0xff] %v2056_v35   ;;  %v1672_v49 = vadd.f32 %v2169_v0, %v1671_v33  ;;  %v1740_v40 = vadd.f32 %v1739_v42, %v1709_v51 }
 0x1d2   : > { %v1741_v19 = vadd.f32 %v1740_v40, %v1710_v41  ;;  %v1673_v18 = vadd.f32 %v2170_v47, %v1672_v49 }
 0x1d4   : > { %v1742_v17 = vadd.f32 %v1741_v19, %v1711_v10 }
 0x1e4   : > { %v2173_v54 = vpop.f32.mrb[12].mxu1 }
 0x1e5   : > { %v1472_v1 = vpop.f32.mrb[13].mxu1  ;;  %v1714_v59 = vmul.f32 %v2173_v54, %v2173_v54 }
 0x1e6   : > { %v1674_v15 = vadd.f32 %v1673_v18, %v1472_v1  ;;  %v1712_v60 = vmul.f32 %v1472_v1, %v1472_v1  ;;  %v2174_v9 = vpop.f32.mrb[14].mxu1 }
 0x1e7   : > { %v2071_v56 = vpack.c.bf16 %v2174_v9, %v2173_v54  ;;  %v1475_v24 = vpop.f32.mrb[15].mxu1  ;;  %v1715_v11 = vmul.f32 %v2174_v9, %v2174_v9 }
 0x1e8   : > { %v1743_v45 = vadd.f32 %v1742_v17, %v1712_v60  ;;  %v2066_v30 = vpack.c.bf16 %v1475_v24, %v1472_v1  ;;  %v1675_v32 = vadd.f32 %v1674_v15, %v1475_v24  ;;  %v1713_v48 = vmul.f32 %v1475_v24, %v1475_v24 }
 0x1e9   : > { %2102 = vst [vmem:[%s3122_s30 + $0x78] sm:$0xff] %v2071_v56  }
 0x1ea   : > { %2101 = vst [vmem:[%s3122_s30 + $0x70] sm:$0xff] %v2066_v30   ;;  %v1676_v38 = vadd.f32 %v2173_v54, %v1675_v32  ;;  %v1744_v25 = vadd.f32 %v1743_v45, %v1713_v48 }
 0x1ec   : > { %v1677_v36 = vadd.f32 %v2174_v9, %v1676_v38  ;;  %v1745_v44 = vadd.f32 %v1744_v25, %v1714_v59 }
 0x1ee   : > { %v1678_v34 = vrot.slane %v1677_v36, 4  ;;  %v1746_v52 = vadd.f32 %v1745_v44, %v1715_v11 }
 0x1f0   : > { %v1679_v37 = vadd.f32 %v1678_v34, %v1677_v36  ;;  %v1747_v21 = vrot.slane %v1746_v52, 4 }
 0x1f2   : > { %v1680_v26 = vrot.slane %v1679_v37, 2  ;;  %v1748_v53 = vadd.f32 %v1747_v21, %v1746_v52 }
 0x1f4   : > { %v1681_v16 = vadd.f32 %v1680_v26, %v1679_v37  ;;  %v1749_v46 = vrot.slane %v1748_v53, 2 }
 0x1f6   : > { %v1682_v12 = vrot.slane %v1681_v16, 1  ;;  %v1750_v7 = vadd.f32 %v1749_v46, %v1748_v53 }
 0x1f8   : > { %v1751_v13 = vrot.slane %v1750_v7, 1  ;;  %v1683_v5 = vadd.f32 %v1682_v12, %v1681_v16 }
 0x1fa   : > { %v1752_v27 = vadd.f32 %v1751_v13, %v1750_v7 }
 0x1fc   : > { %v1754_v50 = vsel %vm1753_vm0, %v1683_v5, %v1752_v27 }
 0x1fd   : > { %1755 = vst [vmem:[%s238_s7] sm:$0x3] %v1754_v50 }
 0x1fe PF: > { %s16_s18 = sadd.s32 1, %s2343_s18  }
 0x1ff   : > { %p13_p5 = scmp.ge.s32.totalorder %s16_s18, 4  }
 0x201   :  { %15 = sbr.rel (!%p13_p5) target bundleno = 1 (0x1), region = 78 }

// kernel: _lambda_.7
= control target key start
LH: loop header
LB: loop body
LE: loop exit
PB: predicated region body
PF: predicated region fallthrough
CT: control target
= control target key end

     0   :  { %s2008_s24 = smov 0   ;;  %s2303_s0 = inlined_call_operand.vmem [shape: bf16[512,128], index: 0, kind: input, shape index: {}]   ;;  %s2304_s1 = inlined_call_operand.vmem [shape: bf16[512,128], index: 1, kind: input, shape index: {}]   ;;  %s2305_s2 = inlined_call_operand.vmem [shape: f32[1,128], index: 2, kind: input, shape index: {}]   ;;  %s2306_s3 = inlined_call_operand.vmem [shape: f32[1,128], index: 3, kind: input, shape index: {}]   ;;  %s2307_s4 = inlined_call_operand.vmem [shape: bf16[128,128], index: 4, kind: input, shape index: {}]   ;;  %s2308_s5 = inlined_call_operand.vmem [shape: bf16[512,128], index: 5, kind: output, shape index: {0}]   ;;  %s2309_s6 = inlined_call_operand.vmem [shape: bf16[512,128], index: 6, kind: output, shape index: {1}]   ;;  %s2310_s7 = inlined_call_operand.vmem [shape: f32[2,2,128], index: 7, kind: output, shape index: {2}]  }
   0x1 LB: > { %s2014_s25 = sadd.s32 4294967295, %s1966_s24   ;;  %p1358_p0 = scmp.ge.s32.totalorder %s1966_s24, 1  ;;  %s1966_s24 = sphi %s2008_s24, %s18_s24  }
   0x2   : > { %p254_p1 = scmp.lt.s32.totalorder %s1966_s24, 3 }
   0x4   : > { %p255_p2 = pnand %p1358_p0, %p254_p1 }
   0x5   : > { %v1952_v0 = vld [vmem:[%s2307_s4] sm:$0xff] (!%p255_p2)   ;;  %s1359_s28 = sshll.u32 (!%p255_p2), %s2014_s25, 5  ;;  %v1953_v1 = vld [vmem:[%s2307_s4 + $0x8] sm:$0xff] (!%p255_p2)   ;;  %v1954_v2 = vld [vmem:[%s2307_s4 + $0x10] sm:$0xff] (!%p255_p2)   ;;  %p324_p4 = scmp.lt.s32.totalorder (!%p255_p2), %s2014_s25, 1  ;;  %vm1218_vm0 = vcmask (!%p255_p2), 1040384  }
   0x6   : > { %258 = sbr.rel (%p255_p2) target bundleno = 331 (0x14b), region = 40  ;;  %p301_p3 = scmp.lt.s32.totalorder (!%p255_p2), %s1359_s28, 63  ;;  %1880 = vmatprep.subr.bf16.mxu0 (!%p255_p2), %v1952_v0  ;;  %1928 = vmatprep.subr.bf16.mxu1 (!%p255_p2), %v1952_v0  ;;  %v1955_v3 = vld [vmem:[%s2307_s4 + $0x18] sm:$0xff] (!%p255_p2)   ;;  %v2050_v6 = vld [vmem:[%s2305_s2] ss:$0 sm:$0xff] (!%p255_p2)  ;;  %v1957_v44 = vld [vmem:[%s2307_s4 + $0x28] sm:$0xff] (!%p255_p2)  }
   0x7   : > { %1881 = vmatpush3.bf16.msra.mxu0 (!%p255_p2), %v1952_v0  ;;  %1936 = vmatpush3.bf16.msra.mxu1 (!%p255_p2), %v1952_v0  ;;  %v1956_v24 = vld [vmem:[%s2307_s4 + $0x20] sm:$0xff] (!%p255_p2)  }
   0x8   : > { %1882 = vmatprep.subr.bf16.mxu0 (!%p255_p2), %v1953_v1  ;;  %1929 = vmatprep.subr.bf16.mxu1 (!%p255_p2), %v1953_v1  ;;  %v2065_v25 = vld [vmem:[%s2306_s3] ss:$0 sm:$0xff] (!%p255_p2) }
   0xb   : > { %1883 = vmatpush3.bf16.msra.mxu0 (!%p255_p2), %v1953_v1  ;;  %1937 = vmatpush3.bf16.msra.mxu1 (!%p255_p2), %v1953_v1  ;;  %v1958_v1 = vld [vmem:[%s2307_s4 + $0x30] sm:$0xff] (!%p255_p2)  }
   0xc   : > { %1884 = vmatprep.subr.bf16.mxu0 (!%p255_p2), %v1954_v2  ;;  %1930 = vmatprep.subr.bf16.mxu1 (!%p255_p2), %v1954_v2 }
   0xd   : > { %s2312_s28 = smov (!%p301_p3, %s1359_s28), 63  ;;  %s2314_s25 = smov (!%p324_p4, %s2014_s25), 1 }
   0xe   : > { %s2028_s10 = sshll.u32 %s2312_s28, 2 }
   0xf   : > { %s2034_s13 = scalar_lea.vmem %s2303_s0, %s2028_s10  ;;  %s2040_s16 = scalar_lea.vmem %s2304_s1, %s2028_s10  ;;  %1885 = vmatpush3.bf16.msra.mxu0 %v1954_v2  ;;  %1938 = vmatpush3.bf16.msra.mxu1 %v1954_v2 }
  0x10   : > { %v1509_v4 = vld [vmem:[%s2034_s13] sm:$0xff]   ;;  %v1796_v11 = vld [vmem:[%s2034_s13 + $0x8] sm:$0xff]   ;;  %v1797_v17 = vld [vmem:[%s2034_s13 + $0x10] sm:$0xff]   ;;  %1886 = vmatprep.subr.bf16.mxu0 %v1955_v3  ;;  %1931 = vmatprep.subr.bf16.mxu1 %v1955_v3  ;;  %s2082_s8 = scalar_lea.vmem %s2308_s5, %s2028_s10 }
  0x11   : > { %v1573_v5 = vld [vmem:[%s2040_s16] sm:$0xff]   ;;  %v1510_v7 = vunpack.c.l.bf16 %v1509_v4  ;;  %v1511_v8 = vunpack.c.h.bf16 %v1509_v4  ;;  %v1811_v12 = vld [vmem:[%s2040_s16 + $0x8] sm:$0xff]   ;;  %v1514_v13 = vunpack.c.l.bf16 %v1796_v11  ;;  %v1515_v14 = vunpack.c.h.bf16 %v1796_v11  ;;  %v1812_v18 = vld [vmem:[%s2040_s16 + $0x10] sm:$0xff]  }
  0x12   : > { %v1574_v9 = vunpack.c.l.bf16 %v1573_v5  ;;  %v1575_v10 = vunpack.c.h.bf16 %v1573_v5  ;;  %v1578_v15 = vunpack.c.l.bf16 %v1811_v12  ;;  %v1579_v16 = vunpack.c.h.bf16 %v1811_v12  ;;  %v1798_v19 = vld [vmem:[%s2034_s13 + $0x18] sm:$0xff]   ;;  %v1799_v39 = vld [vmem:[%s2034_s13 + $0x20] sm:$0xff]   ;;  %v1800_v54 = vld [vmem:[%s2034_s13 + $0x28] sm:$0xff]  }
  0x13   : > { %v1518_v22 = vunpack.c.l.bf16 %v1797_v17  ;;  %v1519_v23 = vunpack.c.h.bf16 %v1797_v17  ;;  %v1582_v28 = vunpack.c.l.bf16 %v1812_v18  ;;  %v1583_v29 = vunpack.c.h.bf16 %v1812_v18  ;;  %v1813_v30 = vld [vmem:[%s2040_s16 + $0x18] sm:$0xff]   ;;  %1887 = vmatpush3.bf16.msra.mxu0 %v1955_v3  ;;  %1939 = vmatpush3.bf16.msra.mxu1 %v1955_v3  ;;  %v1814_v49 = vld [vmem:[%s2040_s16 + $0x20] sm:$0xff]   ;;  %v1815_v55 = vld [vmem:[%s2040_s16 + $0x28] sm:$0xff]  }
  0x14   : > { %v464_v20 = vmul.f32 %v1574_v9, %v2050_v6  ;;  %v465_v21 = vmul.f32 %v1575_v10, %v2050_v6  ;;  %v466_v26 = vmul.f32 %v1578_v15, %v2050_v6  ;;  %v467_v27 = vmul.f32 %v1579_v16, %v2050_v6  ;;  %1888 = vmatprep.subr.bf16.mxu0 %v1956_v24  ;;  %v1801_v0 = vld [vmem:[%s2034_s13 + $0x30] sm:$0xff]   ;;  %v1802_v12 = vld [vmem:[%s2034_s13 + $0x38] sm:$0xff]  }
  0x15   : > { %v1522_v33 = vunpack.c.l.bf16 %v1798_v19  ;;  %v1523_v34 = vunpack.c.h.bf16 %v1798_v19  ;;  %v468_v37 = vmul.f32 %v1582_v28, %v2050_v6  ;;  %v469_v38 = vmul.f32 %v1583_v29, %v2050_v6  ;;  %1932 = vmatprep.subr.bf16.mxu1 %v1956_v24  ;;  %v1803_v28 = vld [vmem:[%s2034_s13 + $0x40] sm:$0xff]  }
  0x16   : > { %v496_v31 = vadd.f32 %v1510_v7, %v464_v20  ;;  %v497_v32 = vadd.f32 %v1511_v8, %v465_v21  ;;  %v498_v35 = vadd.f32 %v1514_v13, %v466_v26  ;;  %v499_v36 = vadd.f32 %v1515_v14, %v467_v27  ;;  %v1816_v7 = vld [vmem:[%s2040_s16 + $0x30] sm:$0xff]   ;;  %v1817_v21 = vld [vmem:[%s2040_s16 + $0x38] sm:$0xff]  }
  0x17   : > { %v1586_v42 = vunpack.c.l.bf16 %v1813_v30  ;;  %v1587_v43 = vunpack.c.h.bf16 %v1813_v30  ;;  %v500_v47 = vadd.f32 %v1518_v22, %v468_v37  ;;  %v501_v48 = vadd.f32 %v1519_v23, %v469_v38  ;;  %1889 = vmatpush3.bf16.msra.mxu0 %v1956_v24  ;;  %1940 = vmatpush3.bf16.msra.mxu1 %v1956_v24  ;;  %v1959_v22 = vld [vmem:[%s2307_s4 + $0x38] sm:$0xff]   ;;  %v1818_v37 = vld [vmem:[%s2040_s16 + $0x40] sm:$0xff]  }
  0x18   : > { %v535_v40 = vadd.f32 %v2065_v25, %v496_v31  ;;  %v536_v41 = vadd.f32 %v2065_v25, %v497_v32  ;;  %v537_v45 = vadd.f32 %v2065_v25, %v498_v35  ;;  %v538_v46 = vadd.f32 %v2065_v25, %v499_v36  ;;  %1890 = vmatprep.subr.bf16.mxu0 %v1957_v44 }
  0x19   : > { %v470_v51 = vmul.f32 %v1586_v42, %v2050_v6  ;;  %v471_v52 = vmul.f32 %v1587_v43, %v2050_v6  ;;  %v1526_v53 = vunpack.c.l.bf16 %v1799_v39  ;;  %v539_v57 = vadd.f32 %v2065_v25, %v500_v47  ;;  %1933 = vmatprep.subr.bf16.mxu1 %v1957_v44  ;;  %v1804_v42 = vld [vmem:[%s2034_s13 + $0x48] sm:$0xff]  }
  0x1a   : > { %v567_v50 = vpack.c.bf16 %v536_v41, %v535_v40  ;;  %v2091_v56 = vpack.c.bf16 %v538_v46, %v537_v45  ;;  %v540_v58 = vadd.f32 %v2065_v25, %v501_v48  ;;  %v1527_v59 = vunpack.c.h.bf16 %v1799_v39 }
  0x1b   : > { %v502_v60 = vadd.f32 %v1522_v33, %v470_v51  ;;  %v503_v61 = vadd.f32 %v1523_v34, %v471_v52  ;;  %v1590_v62 = vunpack.c.l.bf16 %v1814_v49  ;;  %v1591_v63 = vunpack.c.h.bf16 %v1814_v49  ;;  %1891 = vmatpush3.bf16.msra.mxu0 %v1957_v44  ;;  %1941 = vmatpush3.bf16.msra.mxu1 %v1957_v44  ;;  %v1819_v51 = vld [vmem:[%s2040_s16 + $0x48] sm:$0xff]  }
  0x1c   : > { %1896 = vmatprep.mubr.bf16.mxu0 %v567_v50  ;;  %1640 = vst [vmem:[%s2082_s8] sm:$0xff] %v567_v50   ;;  %1826 = vst [vmem:[%s2082_s8 + $0x8] sm:$0xff] %v2091_v56   ;;  %v2102_v2 = vpack.c.bf16 %v540_v58, %v539_v57  ;;  %v1530_v3 = vunpack.c.l.bf16 %v1800_v54  ;;  %v1531_v4 = vunpack.c.h.bf16 %v1800_v54  ;;  %v1594_v5 = vunpack.c.l.bf16 %v1815_v55  ;;  %1892 = vmatprep.subr.bf16.mxu0 %v1958_v1  ;;  %v1805_v57 = vld [vmem:[%s2034_s13 + $0x50] sm:$0xff]  }
  0x1d   : > { %v541_v8 = vadd.f32 %v2065_v25, %v502_v60  ;;  %v542_v9 = vadd.f32 %v2065_v25, %v503_v61  ;;  %v472_v10 = vmul.f32 %v1590_v62, %v2050_v6  ;;  %v473_v11 = vmul.f32 %v1591_v63, %v2050_v6  ;;  %1934 = vmatprep.subr.bf16.mxu1 %v1958_v1  ;;  %v1820_v62 = vld [vmem:[%s2040_s16 + $0x50] sm:$0xff]  }
  0x1e   : > { %1827 = vst [vmem:[%s2082_s8 + $0x10] sm:$0xff] %v2102_v2   ;;  %v1595_v13 = vunpack.c.h.bf16 %v1815_v55  ;;  %v474_v14 = vmul.f32 %v1594_v5, %v2050_v6  ;;  %v1534_v15 = vunpack.c.l.bf16 %v1801_v0  ;;  %v1535_v16 = vunpack.c.h.bf16 %v1801_v0 }
  0x1f   : > { %v2113_v17 = vpack.c.bf16 %v542_v9, %v541_v8  ;;  %v504_v18 = vadd.f32 %v1526_v53, %v472_v10  ;;  %v505_v19 = vadd.f32 %v1527_v59, %v473_v11  ;;  %v1598_v20 = vunpack.c.l.bf16 %v1816_v7  ;;  %1893 = vmatpush3.bf16.msra.mxu0 %v1958_v1  ;;  %1942 = vmatpush3.bf16.msra.mxu1 %v1958_v1  ;;  %v1806_v9 = vld [vmem:[%s2034_s13 + $0x58] sm:$0xff]  }
  0x20   : > { %v475_v23 = vmul.f32 %v1595_v13, %v2050_v6  ;;  %v506_v24 = vadd.f32 %v1530_v3, %v474_v14  ;;  %v1599_v26 = vunpack.c.h.bf16 %v1816_v7  ;;  %v1538_v27 = vunpack.c.l.bf16 %v1802_v12  ;;  %1894 = vmatprep.subr.bf16.mxu0 %v1959_v22  ;;  %1935 = vmatprep.subr.bf16.mxu1 %v1959_v22  ;;  %v1821_v14 = vld [vmem:[%s2040_s16 + $0x58] sm:$0xff]  }
  0x21   : > { %1828 = vst [vmem:[%s2082_s8 + $0x18] sm:$0xff] %v2113_v17   ;;  %v543_v29 = vadd.f32 %v2065_v25, %v504_v18  ;;  %v544_v30 = vadd.f32 %v2065_v25, %v505_v19  ;;  %v476_v31 = vmul.f32 %v1598_v20, %v2050_v6  ;;  %v1539_v32 = vunpack.c.h.bf16 %v1802_v12 }
  0x22   : > { %v507_v33 = vadd.f32 %v1531_v4, %v475_v23  ;;  %v545_v34 = vadd.f32 %v2065_v25, %v506_v24  ;;  %v477_v35 = vmul.f32 %v1599_v26, %v2050_v6  ;;  %v1602_v36 = vunpack.c.l.bf16 %v1817_v21  ;;  %v1807_v23 = vld [vmem:[%s2034_s13 + $0x60] sm:$0xff]  }
  0x23   : > { %v2129_v38 = vpack.c.bf16 %v544_v30, %v543_v29  ;;  %v508_v39 = vadd.f32 %v1534_v15, %v476_v31  ;;  %v1603_v40 = vunpack.c.h.bf16 %v1817_v21  ;;  %v1542_v41 = vunpack.c.l.bf16 %v1803_v28  ;;  %1895 = vmatpush3.bf16.msra.mxu0 %v1959_v22  ;;  %1943 = vmatpush3.bf16.msra.mxu1 %v1959_v22 }
  0x24   : > { %v546_v43 = vadd.f32 %v2065_v25, %v507_v33  ;;  %v509_v44 = vadd.f32 %v1535_v16, %v477_v35  ;;  %v478_v45 = vmul.f32 %v1602_v36, %v2050_v6  ;;  %v1543_v46 = vunpack.c.h.bf16 %v1803_v28  ;;  %v1822_v28 = vld [vmem:[%s2040_s16 + $0x60] sm:$0xff]   ;;  %v1808_v33 = vld [vmem:[%s2034_s13 + $0x68] sm:$0xff]  }
  0x25   : > { %1829 = vst [vmem:[%s2082_s8 + $0x20] sm:$0xff] %v2129_v38   ;;  %v547_v47 = vadd.f32 %v2065_v25, %v508_v39  ;;  %v479_v48 = vmul.f32 %v1603_v40, %v2050_v6  ;;  %v1606_v49 = vunpack.c.l.bf16 %v1818_v37  ;;  %v1607_v50 = vunpack.c.h.bf16 %v1818_v37  ;;  %v1823_v39 = vld [vmem:[%s2040_s16 + $0x68] sm:$0xff]  }
  0x26   : > { %v2139_v52 = vpack.c.bf16 %v546_v43, %v545_v34  ;;  %v548_v53 = vadd.f32 %v2065_v25, %v509_v44  ;;  %v510_v54 = vadd.f32 %v1538_v27, %v478_v45  ;;  %v1546_v55 = vunpack.c.l.bf16 %v1804_v42  ;;  %1897 = vmatmul.mubr.bf16.vlgmr.msra.gmra.mrb[0].mxu0 %v2091_v56 }
  0x27   : > { %v511_v58 = vadd.f32 %v1539_v32, %v479_v48  ;;  %v480_v59 = vmul.f32 %v1606_v49, %v2050_v6  ;;  %v481_v60 = vmul.f32 %v1607_v50, %v2050_v6  ;;  %v1547_v61 = vunpack.c.h.bf16 %v1804_v42  ;;  %1900 = vmatprep.mubr.bf16.mxu0 %v2102_v2  ;;  %v1809_v48 = vld [vmem:[%s2034_s13 + $0x70] sm:$0xff]  }
  0x28   : > { %1830 = vst [vmem:[%s2082_s8 + $0x28] sm:$0xff] %v2139_v52   ;;  %v2148_v63 = vpack.c.bf16 %v548_v53, %v547_v47  ;;  %v549_v0 = vadd.f32 %v2065_v25, %v510_v54  ;;  %v1610_v1 = vunpack.c.l.bf16 %v1819_v51  ;;  %v1611_v3 = vunpack.c.h.bf16 %v1819_v51  ;;  %v1824_v54 = vld [vmem:[%s2040_s16 + $0x70] sm:$0xff]  }
  0x29   : > { %v550_v4 = vadd.f32 %v2065_v25, %v511_v58  ;;  %v512_v5 = vadd.f32 %v1542_v41, %v480_v59  ;;  %v513_v7 = vadd.f32 %v1543_v46, %v481_v60  ;;  %v1550_v8 = vunpack.c.l.bf16 %v1805_v57 }
  0x2a   : > { %1831 = vst [vmem:[%s2082_s8 + $0x30] sm:$0xff] %v2148_v63   ;;  %v482_v10 = vmul.f32 %v1610_v1, %v2050_v6  ;;  %v483_v11 = vmul.f32 %v1611_v3, %v2050_v6  ;;  %v1551_v12 = vunpack.c.h.bf16 %v1805_v57  ;;  %v1614_v13 = vunpack.c.l.bf16 %v1820_v62 }
  0x2b   : > { %v2160_v15 = vpack.c.bf16 %v550_v4, %v549_v0  ;;  %v551_v16 = vadd.f32 %v2065_v25, %v512_v5  ;;  %v552_v56 = vadd.f32 %v2065_v25, %v513_v7  ;;  %v1615_v18 = vunpack.c.h.bf16 %v1820_v62  ;;  %v1810_v0 = vld [vmem:[%s2034_s13 + $0x78] sm:$0xff]  }
  0x2c   : > { %v514_v19 = vadd.f32 %v1546_v55, %v482_v10  ;;  %v515_v20 = vadd.f32 %v1547_v61, %v483_v11  ;;  %v484_v21 = vmul.f32 %v1614_v13, %v2050_v6  ;;  %v1554_v22 = vunpack.c.l.bf16 %v1806_v9  ;;  %v1825_v5 = vld [vmem:[%s2040_s16 + $0x78] sm:$0xff]   ;;  %s2217_s16 = scalar_lea.vmem %s2309_s6, %s2028_s10  ;;  %s1367_s10 = sshll.u32 %s2314_s25, 1 }
  0x2d   : > { %1832 = vst [vmem:[%s2082_s8 + $0x38] sm:$0xff] %v2160_v15   ;;  %v575_v24 = vpack.c.bf16 %v552_v56, %v551_v16  ;;  %v485_v2 = vmul.f32 %v1615_v18, %v2050_v6  ;;  %v1555_v26 = vunpack.c.h.bf16 %v1806_v9  ;;  %v1618_v27 = vunpack.c.l.bf16 %v1821_v14  ;;  %s327_s19 = scalar_lea.vmem %s2310_s7, %s1367_s10 }
  0x2e   : > { %v553_v29 = vadd.f32 %v2065_v25, %v514_v19  ;;  %v554_v30 = vadd.f32 %v2065_v25, %v515_v20  ;;  %v516_v31 = vadd.f32 %v1550_v8, %v484_v21  ;;  %v1619_v32 = vunpack.c.h.bf16 %v1821_v14  ;;  %1901 = vmatmul.mubr.bf16.gmra.mrb[4].mxu0 %v2113_v17 }
  0x2f   : > { %1912 = vmatprep.mubr.bf16.mxu1 %v575_v24  ;;  %1833 = vst [vmem:[%s2082_s8 + $0x40] sm:$0xff] %v575_v24   ;;  %v517_v34 = vadd.f32 %v1551_v12, %v485_v2  ;;  %v486_v35 = vmul.f32 %v1618_v27, %v2050_v6  ;;  %v1558_v36 = vunpack.c.l.bf16 %v1807_v23  ;;  %v1559_v37 = vunpack.c.h.bf16 %v1807_v23  ;;  %1904 = vmatprep.mubr.bf16.mxu0 %v2129_v38 }
  0x30   : > { %v576_v40 = vpack.c.bf16 %v554_v30, %v553_v29  ;;  %v555_v41 = vadd.f32 %v2065_v25, %v516_v31  ;;  %v487_v42 = vmul.f32 %v1619_v32, %v2050_v6  ;;  %v1622_v43 = vunpack.c.l.bf16 %v1822_v28 }
  0x31   : > { %v556_v44 = vadd.f32 %v2065_v25, %v517_v34  ;;  %v518_v45 = vadd.f32 %v1554_v22, %v486_v35  ;;  %v1623_v46 = vunpack.c.h.bf16 %v1822_v28  ;;  %v1562_v47 = vunpack.c.l.bf16 %v1808_v33 }
  0x32   : > { %1913 = vmatmul.mubr.bf16.vlgmr.msra.gmra.mrb[0].mxu1 %v576_v40  ;;  %1834 = vst [vmem:[%s2082_s8 + $0x48] sm:$0xff] %v576_v40   ;;  %v519_v49 = vadd.f32 %v1555_v26, %v487_v42  ;;  %v488_v50 = vmul.f32 %v1622_v43, %v2050_v6  ;;  %v1563_v51 = vunpack.c.h.bf16 %v1808_v33  ;;  %v1626_v53 = vunpack.c.l.bf16 %v1823_v39 }
  0x33   : > { %v577_v55 = vpack.c.bf16 %v556_v44, %v555_v41  ;;  %v557_v57 = vadd.f32 %v2065_v25, %v518_v45  ;;  %v489_v58 = vmul.f32 %v1623_v46, %v2050_v6  ;;  %v1627_v59 = vunpack.c.h.bf16 %v1823_v39 }
  0x34   : > { %v558_v17 = vadd.f32 %v2065_v25, %v519_v49  ;;  %v520_v60 = vadd.f32 %v1558_v36, %v488_v50  ;;  %v490_v61 = vmul.f32 %v1626_v53, %v2050_v6  ;;  %v1566_v62 = vunpack.c.l.bf16 %v1809_v48 }
  0x35   : > { %1916 = vmatprep.mubr.bf16.mxu1 %v577_v55  ;;  %1835 = vst [vmem:[%s2082_s8 + $0x50] sm:$0xff] %v577_v55   ;;  %v521_v1 = vadd.f32 %v1559_v37, %v489_v58  ;;  %v491_v38 = vmul.f32 %v1627_v59, %v2050_v6  ;;  %v1567_v3 = vunpack.c.h.bf16 %v1809_v48  ;;  %v1630_v4 = vunpack.c.l.bf16 %v1824_v54 }
  0x36   : > { %v578_v7 = vpack.c.bf16 %v558_v17, %v557_v57  ;;  %v559_v8 = vadd.f32 %v2065_v25, %v520_v60  ;;  %v522_v9 = vadd.f32 %v1562_v47, %v490_v61  ;;  %v1631_v10 = vunpack.c.h.bf16 %v1824_v54  ;;  %1905 = vmatmul.mubr.bf16.gmra.mrb[8].mxu0 %v2139_v52 }
  0x37   : > { %v560_v11 = vadd.f32 %v2065_v25, %v521_v1  ;;  %v523_v12 = vadd.f32 %v1563_v51, %v491_v38  ;;  %v492_v13 = vmul.f32 %v1630_v4, %v2050_v6  ;;  %v1570_v14 = vunpack.c.l.bf16 %v1810_v0  ;;  %1908 = vmatprep.mubr.bf16.mxu0 %v2148_v63 }
  0x38   : > { %1836 = vst [vmem:[%s2082_s8 + $0x58] sm:$0xff] %v578_v7   ;;  %v561_v16 = vadd.f32 %v2065_v25, %v522_v9  ;;  %v493_v56 = vmul.f32 %v1631_v10, %v2050_v6  ;;  %v1571_v18 = vunpack.c.h.bf16 %v1810_v0  ;;  %v1634_v19 = vunpack.c.l.bf16 %v1825_v5 }
  0x39   : > { %v579_v20 = vpack.c.bf16 %v560_v11, %v559_v8  ;;  %v562_v21 = vadd.f32 %v2065_v25, %v523_v12  ;;  %v524_v22 = vadd.f32 %v1566_v62, %v492_v13  ;;  %v1635_v23 = vunpack.c.h.bf16 %v1825_v5 }
  0x3a   : > { %1917 = vmatmul.mubr.bf16.gmra.mrb[4].mxu1 %v578_v7  ;;  %v525_v24 = vadd.f32 %v1567_v3, %v493_v56  ;;  %v494_v2 = vmul.f32 %v1634_v19, %v2050_v6 }
  0x3b   : > { %1920 = vmatprep.mubr.bf16.mxu1 %v579_v20  ;;  %1837 = vst [vmem:[%s2082_s8 + $0x60] sm:$0xff] %v579_v20   ;;  %v580_v26 = vpack.c.bf16 %v562_v21, %v561_v16  ;;  %v563_v27 = vadd.f32 %v2065_v25, %v524_v22  ;;  %v495_v28 = vmul.f32 %v1635_v23, %v2050_v6 }
  0x3c   : > { %v564_v29 = vadd.f32 %v2065_v25, %v525_v24  ;;  %v526_v30 = vadd.f32 %v1570_v14, %v494_v2 }
  0x3d   : > { %1838 = vst [vmem:[%s2082_s8 + $0x68] sm:$0xff] %v580_v26   ;;  %v527_v52 = vadd.f32 %v1571_v18, %v495_v28 }
  0x3e   : > { %v581_v31 = vpack.c.bf16 %v564_v29, %v563_v27  ;;  %v565_v32 = vadd.f32 %v2065_v25, %v526_v30  ;;  %1909 = vmatmul.mubr.bf16.gmra.mrb[12].mxu0 %v2160_v15 }
  0x3f   : > { %v566_v33 = vadd.f32 %v2065_v25, %v527_v52 }
  0x40   : > { %1839 = vst [vmem:[%s2082_s8 + $0x70] sm:$0xff] %v581_v31  }
  0x41   : > { %v582_v63 = vpack.c.bf16 %v566_v33, %v565_v32 }
  0x42   : > { %1921 = vmatmul.mubr.bf16.gmra.mrb[8].mxu1 %v580_v26 }
  0x43   : > { %1924 = vmatprep.mubr.bf16.mxu1 %v581_v31  ;;  %1840 = vst [vmem:[%s2082_s8 + $0x78] sm:$0xff] %v582_v63  }
  0x4a   : > { %1925 = vmatmul.mubr.bf16.gmra.mrb[12].mxu1 %v582_v63 }
  0xf9   : > { %v1898_v6 = vpop.f32.mrb[0].mxu0 }
  0xfa   : > { %v681_v34 = vpop.f32.mrb[1].mxu0  ;;  %v1151_v41 = vmul.f32 %v1898_v6, %v1898_v6 }
  0xfb   : > { %v1899_v35 = vpop.f32.mrb[2].mxu0  ;;  %v1149_v37 = vmul.f32 %v681_v34, %v681_v34 }
  0xfc   : > { %v1724_v36 = vpack.c.bf16 %v1899_v35, %v1898_v6  ;;  %v684_v25 = vpop.f32.mrb[3].mxu0  ;;  %v1152_v44 = vmul.f32 %v1899_v35, %v1899_v35 }
  0xfd   : > { %v1719_v39 = vpack.c.bf16 %v684_v25, %v681_v34  ;;  %v1112_v40 = vadd.f32 %v684_v25, %v681_v34  ;;  %v1150_v15 = vmul.f32 %v684_v25, %v684_v25 }
  0xfe   : > { %1841 = vst [vmem:[%s2217_s16 + $0x8] sm:$0xff] %v1724_v36  }
  0xff   : > { %1720 = vst [vmem:[%s2217_s16] sm:$0xff] %v1719_v39   ;;  %v1113_v42 = vadd.f32 %v1898_v6, %v1112_v40  ;;  %v1181_v43 = vadd.f32 %v1150_v15, %v1149_v37 }
 0x101   : > { %v1182_v45 = vadd.f32 %v1181_v43, %v1151_v41  ;;  %v1902_v46 = vpop.f32.mrb[4].mxu0  ;;  %v1114_v47 = vadd.f32 %v1899_v35, %v1113_v42 }
 0x102   : > { %v697_v49 = vpop.f32.mrb[5].mxu0  ;;  %v1155_v3 = vmul.f32 %v1902_v46, %v1902_v46 }
 0x103   : > { %v1115_v51 = vadd.f32 %v1114_v47, %v697_v49  ;;  %v1153_v53 = vmul.f32 %v697_v49, %v697_v49  ;;  %v1183_v54 = vadd.f32 %v1182_v45, %v1152_v44  ;;  %v1903_v55 = vpop.f32.mrb[6].mxu0 }
 0x104   : > { %v1734_v58 = vpack.c.bf16 %v1903_v55, %v1902_v46  ;;  %v700_v59 = vpop.f32.mrb[7].mxu0  ;;  %v1156_v7 = vmul.f32 %v1903_v55, %v1903_v55 }
 0x105   : > { %v2221_v48 = vpop.f32.mrb[0].mxu1  ;;  %v1184_v61 = vadd.f32 %v1183_v54, %v1153_v53  ;;  %v1729_v62 = vpack.c.bf16 %v700_v59, %v697_v49  ;;  %v1116_v0 = vadd.f32 %v1115_v51, %v700_v59  ;;  %v1154_v1 = vmul.f32 %v700_v59, %v700_v59 }
 0x106   : > { %v2223_v50 = vpop.f32.mrb[1].mxu1  ;;  %1843 = vst [vmem:[%s2217_s16 + $0x18] sm:$0xff] %v1734_v58  }
 0x107   : > { %v2225_v57 = vpop.f32.mrb[2].mxu1  ;;  %1842 = vst [vmem:[%s2217_s16 + $0x10] sm:$0xff] %v1729_v62   ;;  %v1117_v4 = vadd.f32 %v1902_v46, %v1116_v0  ;;  %v1185_v5 = vadd.f32 %v1184_v61, %v1154_v1 }
 0x108   : > { %v1764_v17 = vpack.c.bf16 %v2225_v57, %v2221_v48  ;;  %v2229_v60 = vpop.f32.mrb[3].mxu1 }
 0x109   : > { %v1759_v38 = vpack.c.bf16 %v2229_v60, %v2223_v50  ;;  %v1186_v8 = vadd.f32 %v1185_v5, %v1155_v3  ;;  %v1906_v9 = vpop.f32.mrb[8].mxu0  ;;  %v1118_v10 = vadd.f32 %v1903_v55, %v1117_v4 }
 0x10a   : > { %1849 = vst [vmem:[%s2217_s16 + $0x48] sm:$0xff] %v1764_v17   ;;  %v713_v12 = vpop.f32.mrb[9].mxu0  ;;  %v1159_v29 = vmul.f32 %v1906_v9, %v1906_v9  ;;  %v1165_v17 = vmul.f32 %v2223_v50, %v2223_v50 }
 0x10b   : > { %1848 = vst [vmem:[%s2217_s16 + $0x40] sm:$0xff] %v1759_v38   ;;  %v1119_v14 = vadd.f32 %v1118_v10, %v713_v12  ;;  %v1157_v16 = vmul.f32 %v713_v12, %v713_v12  ;;  %v1187_v56 = vadd.f32 %v1186_v8, %v1156_v7  ;;  %v1907_v18 = vpop.f32.mrb[10].mxu0  ;;  %v1166_v8 = vmul.f32 %v2229_v60, %v2229_v60 }
 0x10c   : > { %v1744_v20 = vpack.c.bf16 %v1907_v18, %v1906_v9  ;;  %v716_v21 = vpop.f32.mrb[11].mxu0  ;;  %v1160_v31 = vmul.f32 %v1907_v18, %v1907_v18  ;;  %v1167_v10 = vmul.f32 %v2221_v48, %v2221_v48 }
 0x10d   : > { %v2237_v11 = vpop.f32.mrb[4].mxu1  ;;  %v1188_v24 = vadd.f32 %v1187_v56, %v1157_v16  ;;  %v1739_v2 = vpack.c.bf16 %v716_v21, %v713_v12  ;;  %v1120_v26 = vadd.f32 %v1119_v14, %v716_v21  ;;  %v1158_v27 = vmul.f32 %v716_v21, %v716_v21 }
 0x10e   : > { %v2239_v13 = vpop.f32.mrb[5].mxu1  ;;  %1845 = vst [vmem:[%s2217_s16 + $0x28] sm:$0xff] %v1744_v20  }
 0x10f   : > { %v2241_v19 = vpop.f32.mrb[6].mxu1  ;;  %1844 = vst [vmem:[%s2217_s16 + $0x20] sm:$0xff] %v1739_v2   ;;  %v1121_v30 = vadd.f32 %v1906_v9, %v1120_v26  ;;  %v1189_v52 = vadd.f32 %v1188_v24, %v1158_v27  ;;  %v1171_v24 = vmul.f32 %v2237_v11, %v2237_v11 }
 0x110   : > { %v1774_v22 = vpack.c.bf16 %v2241_v19, %v2237_v11  ;;  %v2245_v23 = vpop.f32.mrb[7].mxu1 }
 0x111   : > { %v1769_v28 = vpack.c.bf16 %v2245_v23, %v2239_v13  ;;  %v1190_v32 = vadd.f32 %v1189_v52, %v1159_v29  ;;  %v1910_v33 = vpop.f32.mrb[12].mxu0  ;;  %v1122_v63 = vadd.f32 %v1907_v18, %v1121_v30  ;;  %v1169_v18 = vmul.f32 %v2239_v13, %v2239_v13 }
 0x112   : > { %1851 = vst [vmem:[%s2217_s16 + $0x58] sm:$0xff] %v1774_v22   ;;  %v729_v34 = vpop.f32.mrb[13].mxu0  ;;  %v1163_v51 = vmul.f32 %v1910_v33, %v1910_v33 }
 0x113   : > { %1850 = vst [vmem:[%s2217_s16 + $0x50] sm:$0xff] %v1769_v28   ;;  %v1123_v36 = vadd.f32 %v1122_v63, %v729_v34  ;;  %v1161_v25 = vmul.f32 %v729_v34, %v729_v34  ;;  %v1191_v37 = vadd.f32 %v1190_v32, %v1160_v31  ;;  %v1911_v39 = vpop.f32.mrb[14].mxu0 }
 0x114   : > { %v1754_v15 = vpack.c.bf16 %v1911_v39, %v1910_v33  ;;  %v732_v41 = vpop.f32.mrb[15].mxu0  ;;  %v1164_v55 = vmul.f32 %v1911_v39, %v1911_v39 }
 0x115   : > { %v2253_v6 = vpop.f32.mrb[8].mxu1  ;;  %v1192_v44 = vadd.f32 %v1191_v37, %v1161_v25  ;;  %v1749_v45 = vpack.c.bf16 %v732_v41, %v729_v34  ;;  %v1124_v46 = vadd.f32 %v1123_v36, %v732_v41  ;;  %v1162_v47 = vmul.f32 %v732_v41, %v732_v41 }
 0x116   : > { %v777_v35 = vpop.f32.mrb[9].mxu1  ;;  %1847 = vst [vmem:[%s2217_s16 + $0x38] sm:$0xff] %v1754_v15  }
 0x117   : > { %v2255_v40 = vpop.f32.mrb[10].mxu1  ;;  %1846 = vst [vmem:[%s2217_s16 + $0x30] sm:$0xff] %v1749_v45   ;;  %v1125_v53 = vadd.f32 %v1910_v33, %v1124_v46  ;;  %v1193_v54 = vadd.f32 %v1192_v44, %v1162_v47 }
 0x118   : > { %v1784_v42 = vpack.c.bf16 %v2255_v40, %v2253_v6  ;;  %v780_v43 = vpop.f32.mrb[11].mxu1 }
 0x119   : > { %v1779_v49 = vpack.c.bf16 %v780_v43, %v777_v35  ;;  %v1194_v58 = vadd.f32 %v1193_v54, %v1163_v51  ;;  %v1126_v59 = vadd.f32 %v1911_v39, %v1125_v53  ;;  %v1174_v32 = vmul.f32 %v780_v43, %v780_v43 }
 0x11a   : > { %1853 = vst [vmem:[%s2217_s16 + $0x68] sm:$0xff] %v1784_v42  }
 0x11b   : > { %1852 = vst [vmem:[%s2217_s16 + $0x60] sm:$0xff] %v1779_v49   ;;  %v1127_v0 = vadd.f32 %v1126_v59, %v2223_v50  ;;  %v1195_v1 = vadd.f32 %v1194_v58, %v1164_v55  ;;  %v1168_v50 = vmul.f32 %v2225_v57, %v2225_v57 }
 0x11d   : > { %v1926_v61 = vpop.f32.mrb[12].mxu1  ;;  %v1196_v5 = vadd.f32 %v1195_v1, %v1165_v17  ;;  %v1128_v7 = vadd.f32 %v1127_v0, %v2229_v60 }
 0x11e   : > { %v793_v62 = vpop.f32.mrb[13].mxu1  ;;  %v1179_v41 = vmul.f32 %v1926_v61, %v1926_v61 }
 0x11f   : > { %v1927_v38 = vpop.f32.mrb[14].mxu1  ;;  %v1129_v12 = vadd.f32 %v2221_v48, %v1128_v7  ;;  %v1197_v14 = vadd.f32 %v1196_v5, %v1166_v8  ;;  %v1170_v48 = vmul.f32 %v2245_v23, %v2245_v23 }
 0x120   : > { %v1794_v3 = vpack.c.bf16 %v1927_v38, %v1926_v61  ;;  %v796_v4 = vpop.f32.mrb[15].mxu1  ;;  %v1180_v44 = vmul.f32 %v1927_v38, %v1927_v38 }
 0x121   : > { %v1789_v9 = vpack.c.bf16 %v796_v4, %v793_v62  ;;  %v1198_v16 = vadd.f32 %v1197_v14, %v1167_v10  ;;  %v1130_v56 = vadd.f32 %v2225_v57, %v1129_v12  ;;  %v1172_v57 = vmul.f32 %v2241_v19, %v2241_v19 }
 0x122   : > { %1855 = vst [vmem:[%s2217_s16 + $0x78] sm:$0xff] %v1794_v3   ;;  %v1178_v15 = vmul.f32 %v796_v4, %v796_v4 }
 0x123   : > { %1854 = vst [vmem:[%s2217_s16 + $0x70] sm:$0xff] %v1789_v9   ;;  %v1131_v60 = vadd.f32 %v1130_v56, %v2239_v13  ;;  %v1199_v20 = vadd.f32 %v1198_v16, %v1168_v50  ;;  %v1173_v13 = vmul.f32 %v777_v35, %v777_v35 }
 0x125   : > { %v1200_v21 = vadd.f32 %v1199_v20, %v1169_v18  ;;  %v1132_v22 = vadd.f32 %v1131_v60, %v2245_v23  ;;  %v1175_v23 = vmul.f32 %v2253_v6, %v2253_v6 }
 0x127   : > { %v1133_v2 = vadd.f32 %v2237_v11, %v1132_v22  ;;  %v1201_v26 = vadd.f32 %v1200_v21, %v1170_v48  ;;  %v1176_v11 = vmul.f32 %v2255_v40, %v2255_v40 }
 0x129   : > { %v1202_v27 = vadd.f32 %v1201_v26, %v1171_v24  ;;  %v1134_v28 = vadd.f32 %v2241_v19, %v1133_v2  ;;  %v1177_v19 = vmul.f32 %v793_v62, %v793_v62 }
 0x12b   : > { %v1135_v29 = vadd.f32 %v1134_v28, %v777_v35  ;;  %v1203_v30 = vadd.f32 %v1202_v27, %v1172_v57 }
 0x12d   : > { %v1204_v52 = vadd.f32 %v1203_v30, %v1173_v13  ;;  %v1136_v31 = vadd.f32 %v1135_v29, %v780_v43 }
 0x12f   : > { %v1137_v33 = vadd.f32 %v2253_v6, %v1136_v31  ;;  %v1205_v63 = vadd.f32 %v1204_v52, %v1174_v32 }
 0x131   : > { %v1206_v34 = vadd.f32 %v1205_v63, %v1175_v23  ;;  %v1138_v36 = vadd.f32 %v2255_v40, %v1137_v33 }
 0x133   : > { %v1139_v25 = vadd.f32 %v1138_v36, %v793_v62  ;;  %v1207_v35 = vadd.f32 %v1206_v34, %v1176_v11 }
 0x135   : > { %v1208_v37 = vadd.f32 %v1207_v35, %v1177_v19  ;;  %v1140_v39 = vadd.f32 %v1139_v25, %v796_v4 }
 0x137   : > { %v1141_v42 = vadd.f32 %v1926_v61, %v1140_v39  ;;  %v1209_v43 = vadd.f32 %v1208_v37, %v1178_v15 }
 0x139   : > { %v1142_v6 = vadd.f32 %v1927_v38, %v1141_v42  ;;  %v1210_v45 = vadd.f32 %v1209_v43, %v1179_v41 }
 0x13b   : > { %v1143_v46 = vrot.slane %v1142_v6, 4  ;;  %v1211_v47 = vadd.f32 %v1210_v45, %v1180_v44 }
 0x13d   : > { %v1144_v49 = vadd.f32 %v1143_v46, %v1142_v6  ;;  %v1212_v51 = vrot.slane %v1211_v47, 4 }
 0x13f   : > { %v1145_v53 = vrot.slane %v1144_v49, 2  ;;  %v1213_v40 = vadd.f32 %v1212_v51, %v1211_v47 }
 0x141   : > { %v1146_v54 = vadd.f32 %v1145_v53, %v1144_v49  ;;  %v1214_v55 = vrot.slane %v1213_v40, 2 }
 0x143   : > { %v1147_v58 = vrot.slane %v1146_v54, 1  ;;  %v1215_v59 = vadd.f32 %v1214_v55, %v1213_v40 }
 0x145   : > { %v1216_v17 = vrot.slane %v1215_v59, 1  ;;  %v1148_v61 = vadd.f32 %v1147_v58, %v1146_v54 }
 0x147   : > { %v1217_v62 = vadd.f32 %v1216_v17, %v1215_v59 }
 0x149   : > { %v1219_v0 = vsel %vm1218_vm0, %v1148_v61, %v1217_v62 }
 0x14a   : > { %1220 = vst [vmem:[%s327_s19] sm:$0x3] %v1219_v0 }
 0x14b PF: > { %s18_s24 = sadd.s32 1, %s1966_s24  }
 0x14c   : > { %p15_p5 = scmp.ge.s32.totalorder %s18_s24, 4  }
 0x14e   :  { %17 = sbr.rel (!%p15_p5) target bundleno = 1 (0x1), region = 97 }

// kernel: _lambda_.5
= control target key start
LH: loop header
LB: loop body
LE: loop exit
PB: predicated region body
PF: predicated region fallthrough
CT: control target
= control target key end

     0   :  { %s2875_s21 = smov 0   ;;  %s3931_s0 = inlined_call_operand.vmem [shape: f32[512,4], index: 0, kind: input, shape index: {}]   ;;  %s3932_s1 = inlined_call_operand.vmem [shape: bf16[4,128], index: 1, kind: input, shape index: {}]   ;;  %s3933_s2 = inlined_call_operand.vmem [shape: f32[1,128], index: 2, kind: input, shape index: {}]   ;;  %s3934_s3 = inlined_call_operand.vmem [shape: bf16[128,128], index: 3, kind: input, shape index: {}]   ;;  %s3935_s4 = inlined_call_operand.vmem [shape: bf16[512,128], index: 4, kind: output, shape index: {0}]   ;;  %s3936_s5 = inlined_call_operand.vmem [shape: bf16[512,128], index: 5, kind: output, shape index: {1}]   ;;  %s3937_s6 = inlined_call_operand.vmem [shape: f32[2,2,128], index: 6, kind: output, shape index: {2}]  }
   0x1 LB: > { %s2881_s22 = sadd.s32 4294967295, %s2838_s21   ;;  %p2193_p0 = scmp.ge.s32.totalorder %s2838_s21, 1  ;;  %s2838_s21 = sphi %s2875_s21, %s17_s21  }
   0x2   : > { %p218_p1 = scmp.lt.s32.totalorder %s2838_s21, 3 }
   0x4   : > { %p219_p2 = pnand %p2193_p0, %p218_p1 }
   0x6   : > { %222 = sbr.rel (%p219_p2) target bundleno = 745 (0x2e9), region = 36 }
   0xd   : > { %v328_v0 = vld [vmem:[%s3932_s1] sm:$0x3]  ;;  %vm385_vm0 = vcmask 1041408   ;;  %s2194_s25 = sshll.u32 %s2881_s22, 5  ;;  %vm336_vm1 = vcmask 31744   ;;  %v2695_v51 = vld [vmem:[%s3934_s3 + $0x8] sm:$0xff]  }
   0xe   : > { %v2694_v1 = vld [vmem:[%s3934_s3] sm:$0xff]   ;;  %2685 = vmatprep.subr.msk.bf16.mxu0 %vm385_vm0, %v328_v0  ;;  %v387_v2 = vsel %vm385_vm0, %v328_v0, 0  ;;  %p258_p3 = scmp.lt.s32.totalorder %s2194_s25, 63  ;;  %v2696_v52 = vld [vmem:[%s3934_s3 + $0x10] sm:$0xff]   ;;  %v2697_v53 = vld [vmem:[%s3934_s3 + $0x18] sm:$0xff]   ;;  %p275_p4 = scmp.lt.s32.totalorder %s2881_s22, 1 }
   0xf   : > { %2588 = vmatpush3.bf16.msra.mxu0 %v387_v2  ;;  %2669 = vmatprep.subr.bf16.mxu1 %v2694_v1  ;;  %v2698_v54 = vld [vmem:[%s3934_s3 + $0x20] sm:$0xff]   ;;  %v2699_v55 = vld [vmem:[%s3934_s3 + $0x28] sm:$0xff]   ;;  %v2700_v56 = vld [vmem:[%s3934_s3 + $0x30] sm:$0xff]  }
  0x10   : > { %s3977_s25 = smov (!%p258_p3, %s2194_s25), 63  ;;  %2621 = vmatprep.subr.bf16.mxu0 %v2694_v1  ;;  %2677 = vmatpush3.bf16.msra.mxu1 %v2694_v1  ;;  %v2969_v57 = vld [vmem:[%s3933_s2] ss:$0 sm:$0xff]  ;;  %s3979_s22 = smov (!%p275_p4, %s2881_s22), 1 }
  0x11   : > { %s2195_s28 = sshll.u32 %s3977_s25, 3  ;;  %2670 = vmatprep.subr.bf16.mxu1 %v2695_v51  ;;  %s2197_s27 = sshll.u32 %s3977_s25, 2 }
  0x12   : > { %s2898_s7 = scalar_lea.vmem %s3931_s0, %s2195_s28  ;;  %s3188_s30 = scalar_lea.vmem %s3935_s4, %s2197_s27 }
  0x13   : > { %v280_v3 = vld [vmem:[%s2898_s7] sm:$0xff]  ;;  %v281_v4 = vld [vmem:[%s2898_s7 + $0x8] sm:$0xff]  ;;  %v282_v5 = vld [vmem:[%s2898_s7 + $0x10] sm:$0xff]  ;;  %s3905_s11 = scalar_lea.vmem %s3936_s5, %s2197_s27  ;;  %s2200_s25 = sshll.u32 %s3979_s22, 1 }
  0x14   : > { %v312_v6 = vpack.c.bf16 %v281_v4, %v280_v3  ;;  %v283_v7 = vld [vmem:[%s2898_s7 + $0x18] sm:$0xff]  ;;  %v284_v8 = vld [vmem:[%s2898_s7 + $0x20] sm:$0xff]  ;;  %v285_v9 = vld [vmem:[%s2898_s7 + $0x28] sm:$0xff]  ;;  %2678 = vmatpush3.bf16.msra.mxu1 %v2695_v51  ;;  %s278_s14 = scalar_lea.vmem %s3937_s6, %s2200_s25 }
  0x15   : > { %v313_v10 = vpack.c.bf16 %v283_v7, %v282_v5  ;;  %v314_v11 = vpack.c.bf16 %v285_v9, %v284_v8  ;;  %v286_v12 = vld [vmem:[%s2898_s7 + $0x30] sm:$0xff]  ;;  %v287_v13 = vld [vmem:[%s2898_s7 + $0x38] sm:$0xff]  ;;  %v288_v14 = vld [vmem:[%s2898_s7 + $0x40] sm:$0xff]  ;;  %2671 = vmatprep.subr.bf16.mxu1 %v2696_v52 }
  0x16   : > { %2589 = vmatprep.mubr.msk.bf16.mxu0 %vm336_vm1, %v312_v6  ;;  %v289_v15 = vld [vmem:[%s2898_s7 + $0x48] sm:$0xff]  ;;  %v315_v16 = vpack.c.bf16 %v287_v13, %v286_v12  ;;  %v290_v18 = vld [vmem:[%s2898_s7 + $0x50] sm:$0xff]  ;;  %v291_v19 = vld [vmem:[%s2898_s7 + $0x58] sm:$0xff] }
  0x17   : > { %2590 = vmatmul.mubr.msk.bf16.vlgmr.msra.gmra.mrb[0].mxu0 %vm336_vm1, %v313_v10  ;;  %v316_v17 = vpack.c.bf16 %v289_v15, %v288_v14  ;;  %v292_v20 = vld [vmem:[%s2898_s7 + $0x60] sm:$0xff]  ;;  %v293_v21 = vld [vmem:[%s2898_s7 + $0x68] sm:$0xff]  ;;  %v317_v22 = vpack.c.bf16 %v291_v19, %v290_v18  ;;  %v294_v24 = vld [vmem:[%s2898_s7 + $0x70] sm:$0xff] }
  0x18   : > { %2593 = vmatprep.mubr.msk.bf16.mxu0 %vm336_vm1, %v314_v11  ;;  %2622 = vmatpush3.bf16.msra.mxu0 %v2694_v1  ;;  %v318_v23 = vpack.c.bf16 %v293_v21, %v292_v20  ;;  %v295_v25 = vld [vmem:[%s2898_s7 + $0x78] sm:$0xff]  ;;  %v296_v26 = vld [vmem:[%s2898_s7 + $0x80] sm:$0xff]  ;;  %v297_v27 = vld [vmem:[%s2898_s7 + $0x88] sm:$0xff] }
  0x19   : > { %v319_v28 = vpack.c.bf16 %v295_v25, %v294_v24  ;;  %v320_v29 = vpack.c.bf16 %v297_v27, %v296_v26  ;;  %v298_v30 = vld [vmem:[%s2898_s7 + $0x90] sm:$0xff]  ;;  %v299_v31 = vld [vmem:[%s2898_s7 + $0x98] sm:$0xff]  ;;  %v300_v32 = vld [vmem:[%s2898_s7 + $0xa0] sm:$0xff]  ;;  %2623 = vmatprep.subr.bf16.mxu0 %v2695_v51  ;;  %2679 = vmatpush3.bf16.msra.mxu1 %v2696_v52 }
  0x1a   : > { %v301_v33 = vld [vmem:[%s2898_s7 + $0xa8] sm:$0xff]  ;;  %v321_v34 = vpack.c.bf16 %v299_v31, %v298_v30  ;;  %v302_v36 = vld [vmem:[%s2898_s7 + $0xb0] sm:$0xff]  ;;  %v303_v37 = vld [vmem:[%s2898_s7 + $0xb8] sm:$0xff]  ;;  %2672 = vmatprep.subr.bf16.mxu1 %v2697_v53 }
  0x1b   : > { %v322_v35 = vpack.c.bf16 %v301_v33, %v300_v32  ;;  %v304_v38 = vld [vmem:[%s2898_s7 + $0xc0] sm:$0xff]  ;;  %v305_v39 = vld [vmem:[%s2898_s7 + $0xc8] sm:$0xff]  ;;  %v323_v40 = vpack.c.bf16 %v303_v37, %v302_v36  ;;  %v306_v42 = vld [vmem:[%s2898_s7 + $0xd0] sm:$0xff] }
  0x1c   : > { %v324_v41 = vpack.c.bf16 %v305_v39, %v304_v38  ;;  %v307_v43 = vld [vmem:[%s2898_s7 + $0xd8] sm:$0xff]  ;;  %v308_v44 = vld [vmem:[%s2898_s7 + $0xe0] sm:$0xff]  ;;  %v309_v45 = vld [vmem:[%s2898_s7 + $0xe8] sm:$0xff]  ;;  %2624 = vmatpush3.bf16.msra.mxu0 %v2695_v51 }
  0x1d   : > { %v325_v46 = vpack.c.bf16 %v307_v43, %v306_v42  ;;  %v326_v47 = vpack.c.bf16 %v309_v45, %v308_v44  ;;  %v310_v48 = vld [vmem:[%s2898_s7 + $0xf0] sm:$0xff]  ;;  %v311_v49 = vld [vmem:[%s2898_s7 + $0xf8] sm:$0xff]  ;;  %2625 = vmatprep.subr.bf16.mxu0 %v2696_v52  ;;  %2680 = vmatpush3.bf16.msra.mxu1 %v2697_v53 }
  0x1e   : > { %v327_v50 = vpack.c.bf16 %v311_v49, %v310_v48  ;;  %2673 = vmatprep.subr.bf16.mxu1 %v2698_v54  ;;  %v2701_v20 = vld [vmem:[%s3934_s3 + $0x38] sm:$0xff]  }
  0x1f   : > { %2594 = vmatmul.mubr.msk.bf16.gmra.mrb[4].mxu0 %vm336_vm1, %v315_v16 }
  0x20   : > { %2597 = vmatprep.mubr.msk.bf16.mxu0 %vm336_vm1, %v316_v17  ;;  %2626 = vmatpush3.bf16.msra.mxu0 %v2696_v52 }
  0x21   : > { %2627 = vmatprep.subr.bf16.mxu0 %v2697_v53  ;;  %2681 = vmatpush3.bf16.msra.mxu1 %v2698_v54 }
  0x22   : > { %2674 = vmatprep.subr.bf16.mxu1 %v2699_v55 }
  0x24   : > { %2628 = vmatpush3.bf16.msra.mxu0 %v2697_v53 }
  0x25   : > { %2629 = vmatprep.subr.bf16.mxu0 %v2698_v54  ;;  %2682 = vmatpush3.bf16.msra.mxu1 %v2699_v55 }
  0x26   : > { %2675 = vmatprep.subr.bf16.mxu1 %v2700_v56 }
  0x27   : > { %2598 = vmatmul.mubr.msk.bf16.gmra.mrb[8].mxu0 %vm336_vm1, %v317_v22 }
  0x28   : > { %2601 = vmatprep.mubr.msk.bf16.mxu0 %vm336_vm1, %v318_v23  ;;  %2630 = vmatpush3.bf16.msra.mxu0 %v2698_v54 }
  0x29   : > { %2631 = vmatprep.subr.bf16.mxu0 %v2699_v55  ;;  %2683 = vmatpush3.bf16.msra.mxu1 %v2700_v56 }
  0x2a   : > { %2676 = vmatprep.subr.bf16.mxu1 %v2701_v20 }
  0x2c   : > { %2632 = vmatpush3.bf16.msra.mxu0 %v2699_v55 }
  0x2d   : > { %2633 = vmatprep.subr.bf16.mxu0 %v2700_v56  ;;  %2684 = vmatpush3.bf16.msra.mxu1 %v2701_v20 }
  0x2f   : > { %2602 = vmatmul.mubr.msk.bf16.gmra.mrb[12].mxu0 %vm336_vm1, %v319_v28 }
  0x30   : > { %2605 = vmatprep.mubr.msk.bf16.mxu0 %vm336_vm1, %v320_v29  ;;  %2634 = vmatpush3.bf16.msra.mxu0 %v2700_v56 }
  0x31   : > { %2635 = vmatprep.subr.bf16.mxu0 %v2701_v20 }
  0x34   : > { %2636 = vmatpush3.bf16.msra.mxu0 %v2701_v20 }
  0x37   : > { %2606 = vmatmul.mubr.msk.bf16.gmra.mrb[16].mxu0 %vm336_vm1, %v321_v34 }
  0x38   : > { %2609 = vmatprep.mubr.msk.bf16.mxu0 %vm336_vm1, %v322_v35 }
  0x3f   : > { %2610 = vmatmul.mubr.msk.bf16.gmra.mrb[20].mxu0 %vm336_vm1, %v323_v40 }
  0x40   : > { %2613 = vmatprep.mubr.msk.bf16.mxu0 %vm336_vm1, %v324_v41 }
  0x47   : > { %2614 = vmatmul.mubr.msk.bf16.gmra.mrb[24].mxu0 %vm336_vm1, %v325_v46 }
  0x48   : > { %2617 = vmatprep.mubr.msk.bf16.mxu0 %vm336_vm1, %v326_v47 }
  0x4f   : > { %2618 = vmatmul.mubr.msk.bf16.gmra.mrb[28].mxu0 %vm336_vm1, %v327_v50 }
  0xea   : > { %v2591_v58 = vpop.f32.mrb[0].mxu0 }
  0xeb   : > { %v432_v59 = vadd.f32 %v2591_v58, %v2969_v57  ;;  %v423_v60 = vpop.f32.mrb[1].mxu0 }
  0xec   : > { %v424_v61 = vadd.f32 %v2969_v57, %v423_v60  ;;  %v2592_v62 = vpop.f32.mrb[2].mxu0 }
  0xed   : > { %v2973_v63 = vmul.f32 0.70710677, %v432_v59  ;;  %v2976_v0 = vadd.f32 %v2592_v62, %v2969_v57  ;;  %v426_v1 = vpop.f32.mrb[3].mxu0  ;;  %v3027_v44 = vmul.f32 0.5, %v432_v59 }
  0xee   : > { %v2978_v2 = vmul.f32 0.70710677, %v424_v61  ;;  %v2981_v3 = vadd.f32 %v2969_v57, %v426_v1  ;;  %v3030_v48 = vmul.f32 0.5, %v424_v61 }
  0xef   : > { %v616_v4 = vand.u32 2147483647, %v2973_v63  ;;  %v2985_v5 = vmul.f32 0.70710677, %v2976_v0  ;;  %v3036_v56 = vmul.f32 0.5, %v2976_v0  ;;  %vm1256_vm2 = vcmp.ge.f32.partialorder %v2973_v63, 0.0 }
  0xf0   : > { %v614_v6 = vand.u32 2147483647, %v2978_v2  ;;  %v2989_v7 = vmul.f32 0.70710677, %v2981_v3  ;;  %vm1254_vm4 = vcmp.ge.f32.partialorder %v2978_v2, 0.0 }
  0xf1   : > { %v648_v8 = vmul.f32 0.3275911, %v616_v4  ;;  %v617_v9 = vand.u32 2147483647, %v2985_v5  ;;  %v1064_v26 = vsub.f32 0.0, %v616_v4  ;;  %vm1257_vm3 = vcmp.ge.f32.partialorder %v2985_v5, 0.0 }
  0xf2   : > { %v646_v10 = vmul.f32 0.3275911, %v614_v6  ;;  %v615_v11 = vand.u32 2147483647, %v2989_v7  ;;  %v2595_v14 = vpop.f32.mrb[4].mxu0  ;;  %v1062_v27 = vsub.f32 0.0, %v614_v6 }
  0xf3   : > { %v680_v12 = vadd.f32 1.0, %v648_v8  ;;  %v649_v13 = vmul.f32 0.3275911, %v617_v9  ;;  %v439_v17 = vpop.f32.mrb[5].mxu0  ;;  %v2997_v23 = vadd.f32 %v2595_v14, %v2969_v57  ;;  %v1065_v32 = vsub.f32 0.0, %v617_v9 }
  0xf4   : > { %v678_v15 = vadd.f32 1.0, %v646_v10  ;;  %v647_v16 = vmul.f32 0.3275911, %v615_v11  ;;  %v2596_v19 = vpop.f32.mrb[6].mxu0  ;;  %v1096_v36 = vmul.f32 %v1064_v26, %v616_v4  ;;  %v1094_v37 = vmul.f32 %v1062_v27, %v614_v6 }
  0xf5   : > { %2702 = vrcp.f32 %v680_v12  ;;  %v681_v18 = vadd.f32 1.0, %v649_v13  ;;  %v442_v21 = vpop.f32.mrb[7].mxu0  ;;  %v3000_v24 = vadd.f32 %v2596_v19, %v2969_v57  ;;  %v3003_v25 = vmul.f32 0.70710677, %v2997_v23 }
  0xf6   : > { %2704 = vrcp.f32 %v678_v15  ;;  %v679_v22 = vadd.f32 1.0, %v647_v16  ;;  %v3021_v41 = vadd.f32 %v2969_v57, %v439_v17  ;;  %v1097_v46 = vmul.f32 %v1065_v32, %v617_v9 }
  0xf7   : > { %2706 = vrcp.f32 %v681_v18  ;;  %v3006_v28 = vmul.f32 0.70710677, %v3000_v24  ;;  %v3009_v30 = vand.u32 2147483647, %v3003_v25  ;;  %v1063_v47 = vsub.f32 0.0, %v615_v11 }
  0xf8   : > { %2708 = vrcp.f32 %v679_v22  ;;  %3944 = vst [vmem:[#allocation2_spill] sm:$0xff] %v3021_v41  ;;  %v1130_v52 = vmul.f32 1.442695, %v1096_v36  ;;  %v1126_v53 = vmul.f32 1.442695, %v1094_v37  ;;  %v3051_v0 = vadd.f32 %v2969_v57, %v442_v21 }
  0xf9   : > { %v3012_v33 = vand.u32 2147483647, %v3006_v28  ;;  %v652_v35 = vmul.f32 0.3275911, %v3009_v30  ;;  %v3039_v58 = vmul.f32 0.70710677, %v3021_v41  ;;  %v1095_v1 = vmul.f32 %v1063_v47, %v615_v11 }
  0xfa   : > { %v2599_v29 = vpop.f32.mrb[8].mxu0  ;;  %v1132_v62 = vmul.f32 1.442695, %v1097_v46  ;;  %3946 = vst [vmem:[#allocation4_spill] sm:$0xff] %v3051_v0  ;;  %v3060_v15 = vmul.f32 0.5, %v2981_v3  ;;  %vm1255_vm5 = vcmp.ge.f32.partialorder %v2989_v7, 0.0 }
  0xfb   : > { %v455_v31 = vpop.f32.mrb[9].mxu0  ;;  %v653_v38 = vmul.f32 0.3275911, %v3012_v33  ;;  %v684_v40 = vadd.f32 1.0, %v652_v35  ;;  %3945 = vst [vmem:[#allocation3_spill] sm:$0xff] %v3039_v58  ;;  %v3054_v9 = vadd.f32 %v2599_v29, %v2969_v57  ;;  %vm1260_vm6 = vcmp.ge.f32.partialorder %v3003_v25, 0.0 }
  0xfc   : > { %v3014_v34 = vpop.f32.mrb[10].mxu0  ;;  %v3063_v16 = vand.u32 2147483647, %v3039_v58  ;;  %v1128_v26 = vmul.f32 1.442695, %v1095_v1  ;;  %v3077_v3 = vadd.f32 %v2969_v57, %v455_v31  ;;  %vm1261_vm7 = vcmp.ge.f32.partialorder %v3006_v28, 0.0 }
  0xfd   : > { %v3023_v42 = vpop.f32.mrb[11].mxu0  ;;  %2710 = vrcp.f32 %v684_v40  ;;  %v685_v50 = vadd.f32 1.0, %v653_v38  ;;  %v3070_v21 = vmul.f32 0.70710677, %v3054_v9  ;;  %v3074_v27 = vmul.f32 0.70710677, %v3051_v0 }
  0xfe   : > { %v650_v40 = vmul.f32 0.3275911, %v3063_v16 }
  0xff   : > { %v3018_v39 = vpop.eup %2702  ;;  %2712 = vrcp.f32 %v685_v50  ;;  %3947 = vst [vmem:[#allocation5_spill] sm:$0xff] %v3074_v27  ;;  %v3081_v36 = vand.u32 2147483647, %v3070_v21  ;;  %vm1264_vm8 = vcmp.ge.f32.partialorder %v3070_v21, 0.0 }
 0x100   : > { %v3025_v43 = vpop.eup %2704  ;;  %v776_v45 = vmul.f32 1.0614054, %v3018_v39  ;;  %2714 = vpow2.f32 %v1130_v52 }
 0x101   : > { %v774_v49 = vmul.f32 1.0614054, %v3025_v43  ;;  %v3033_v54 = vpop.eup %2706  ;;  %2716 = vpow2.f32 %v1132_v62  ;;  %v656_v52 = vmul.f32 0.3275911, %v3081_v36 }
 0x102   : > { %v808_v51 = vadd.f32 -1.4531521, %v776_v45  ;;  %v3041_v59 = vpop.f32.mrb[12].mxu0  ;;  %v777_v61 = vmul.f32 1.0614054, %v3033_v54  ;;  %v3047_v6 = vpop.eup %2708  ;;  %2718 = vpow2.f32 %v1126_v53  ;;  %v3106_v53 = vmul.f32 0.5, %v2997_v23 }
 0x103   : > { %v806_v55 = vadd.f32 -1.4531521, %v774_v49  ;;  %v3045_v4 = vpop.f32.mrb[13].mxu0  ;;  %v775_v14 = vmul.f32 1.0614054, %v3047_v6 }
 0x104   : > { %v840_v60 = vmul.f32 %v3018_v39, %v808_v51  ;;  %v3056_v10 = vpop.f32.mrb[14].mxu0  ;;  %v809_v13 = vadd.f32 -1.4531521, %v777_v61  ;;  %v3087_v45 = vmul.f32 0.70710677, %v3077_v3  ;;  %v1068_v51 = vsub.f32 0.0, %v3009_v30 }
 0x105   : > { %v838_v8 = vmul.f32 %v3025_v43, %v806_v55  ;;  %v3065_v17 = vpop.f32.mrb[15].mxu0  ;;  %v807_v20 = vadd.f32 -1.4531521, %v775_v14  ;;  %v688_v14 = vadd.f32 1.0, %v656_v52  ;;  %v3262_v7 = vadd.f32 %v3056_v10, %v2969_v57 }
 0x106   : > { %v872_v12 = vadd.f32 1.4214138, %v840_v60  ;;  %v841_v19 = vmul.f32 %v3033_v54, %v809_v13  ;;  %v3097_v55 = vand.u32 2147483647, %v3087_v45  ;;  %v1066_v13 = vsub.f32 0.0, %v3063_v16 }
 0x107   : > { %v870_v11 = vadd.f32 1.4214138, %v838_v8  ;;  %v839_v35 = vmul.f32 %v3047_v6, %v807_v20  ;;  %v3083_v37 = vpop.eup %2710  ;;  %2720 = vrcp.f32 %v688_v14  ;;  %vm1262_vm9 = vcmp.ge.f32.partialorder %v3087_v45, 0.0 }
 0x108   : > { %v904_v18 = vmul.f32 %v3018_v39, %v872_v12  ;;  %v873_v32 = vadd.f32 1.4214138, %v841_v19  ;;  %v780_v49 = vmul.f32 1.0614054, %v3083_v37  ;;  %2722 = vpow2.f32 %v1128_v26 }
 0x109   : > { %v902_v22 = vmul.f32 %v3025_v43, %v870_v11  ;;  %v871_v47 = vadd.f32 1.4214138, %v839_v35  ;;  %v3102_v12 = vpop.eup %2712  ;;  %v654_v11 = vmul.f32 0.3275911, %v3097_v55 }
 0x10a   : > { %v936_v29 = vadd.f32 -0.28449672, %v904_v18  ;;  %v905_v31 = vmul.f32 %v3033_v54, %v873_v32  ;;  %v3092_v50 = vpop.f32.mrb[16].mxu0  ;;  %v812_v8 = vadd.f32 -1.4531521, %v780_v49  ;;  %v2715_v35 = vpop.eup %2714 }
 0x10b   : > { %v934_v38 = vadd.f32 -0.28449672, %v902_v22  ;;  %v3099_v60 = vpop.f32.mrb[17].mxu0  ;;  %v903_v1 = vmul.f32 %v3047_v6, %v871_v47 }
 0x10c   : > { %v968_v46 = vmul.f32 %v3018_v39, %v936_v29  ;;  %v937_v62 = vadd.f32 -0.28449672, %v905_v31  ;;  %v3110_v18 = vpop.f32.mrb[18].mxu0  ;;  %v844_v29 = vmul.f32 %v3083_v37, %v812_v8  ;;  %v781_v31 = vmul.f32 1.0614054, %v3102_v12 }
 0x10d   : > { %v935_v22 = vadd.f32 -0.28449672, %v903_v1  ;;  %v3115_v32 = vpop.f32.mrb[19].mxu0  ;;  %v966_v23 = vmul.f32 %v3025_v43, %v934_v38  ;;  %v3125_v1 = vand.u32 2147483647, %v3074_v27  ;;  %v686_v38 = vadd.f32 1.0, %v654_v11 }
 0x10e   : > { %v1000_v61 = vadd.f32 0.2548296, %v968_v46  ;;  %v969_v20 = vmul.f32 %v3033_v54, %v937_v62  ;;  %v1100_v46 = vmul.f32 %v1068_v51, %v3009_v30  ;;  %v876_v52 = vadd.f32 1.4214138, %v844_v29  ;;  %v2717_v29 = vpop.eup %2716 }
 0x10f   : > { %v813_v62 = vadd.f32 -1.4531521, %v781_v31  ;;  %v967_v14 = vmul.f32 %v3047_v6, %v935_v22  ;;  %2724 = vrcp.f32 %v686_v38  ;;  %v1098_v22 = vmul.f32 %v1066_v13, %v3063_v16 }
 0x110   : > { %v1032_v19 = vmul.f32 %v3018_v39, %v1000_v61  ;;  %v1001_v49 = vadd.f32 0.2548296, %v969_v20  ;;  %v1069_v39 = vsub.f32 0.0, %v3012_v33  ;;  %v1138_v0 = vmul.f32 1.442695, %v1100_v46 }
 0x111   : > { %v845_v26 = vmul.f32 %v3102_v12, %v813_v62  ;;  %v999_v62 = vadd.f32 0.2548296, %v967_v14  ;;  %v3149_v16 = vadd.f32 %v3014_v34, %v2969_v57  ;;  %v651_v13 = vmul.f32 0.3275911, %v3125_v1 }
 0x112   : > { %v1192_v47 = vmul.f32 %v2715_v35, %v1032_v19  ;;  %v3121_v61 = vpop.f32.mrb[20].mxu0  ;;  %v1033_v51 = vmul.f32 %v3033_v54, %v1001_v49  ;;  %v908_v19 = vmul.f32 %v3083_v37, %v876_v52  ;;  %v998_v35 = vadd.f32 0.2548296, %v966_v23  ;;  %v2719_v54 = vpop.eup %2718 }
 0x113   : > { %v3127_v8 = vpop.f32.mrb[21].mxu0  ;;  %v682_v49 = vadd.f32 1.0, %v650_v40  ;;  %v3140_v52 = vmul.f32 0.5, %v3000_v24  ;;  %v877_v41 = vadd.f32 1.4214138, %v845_v26  ;;  %2726 = vpow2.f32 %v1138_v0 }
 0x114   : > { %v1224_v30 = vsub.f32 1.0, %v1192_v47  ;;  %v3132_v20 = vpop.f32.mrb[22].mxu0  ;;  %v1193_v27 = vmul.f32 %v2717_v29, %v1033_v51  ;;  %v940_v58 = vadd.f32 -0.28449672, %v908_v19  ;;  %v1101_v47 = vmul.f32 %v1069_v39, %v3012_v33 }
 0x115   : > { %v3135_v31 = vpop.f32.mrb[23].mxu0  ;;  %v1030_v51 = vmul.f32 %v3025_v43, %v998_v35  ;;  %v909_v33 = vmul.f32 %v3102_v12, %v877_v41  ;;  %2728 = vrcp.f32 %v682_v49  ;;  %v1031_v34 = vmul.f32 %v3047_v6, %v999_v62 }
 0x116   : > { %v1288_v11 = vsub.f32 0.0, %v1224_v30  ;;  %v1225_v46 = vsub.f32 1.0, %v1193_v27  ;;  %v972_v38 = vmul.f32 %v3083_v37, %v940_v58  ;;  %v1140_v40 = vmul.f32 1.442695, %v1101_v47  ;;  %v3154_v27 = vpop.eup %2720 }
 0x117   : > { %v1134_v58 = vmul.f32 1.442695, %v1098_v22  ;;  %v1072_v14 = vsub.f32 0.0, %v3081_v36  ;;  %v2723_v29 = vpop.eup %2722  ;;  %v3165_v35 = vmul.f32 %v2719_v54, %v1030_v51  ;;  %v3169_v47 = vmul.f32 0.70710677, %v3149_v16 }
 0x118   : > { %v1320_v23 = vsel %vm1256_vm2, %v1224_v30, %v1288_v11  ;;  %v1289_v24 = vsub.f32 0.0, %v1225_v46  ;;  %v941_v30 = vadd.f32 -0.28449672, %v909_v33  ;;  %v1004_v0 = vadd.f32 0.2548296, %v972_v38 }
 0x119   : > { %v1352_v39 = vadd.f32 1.0, %v1320_v23  ;;  %v784_v11 = vmul.f32 1.0614054, %v3154_v27  ;;  %2730 = vpow2.f32 %v1140_v40  ;;  %v683_v6 = vadd.f32 1.0, %v651_v13  ;;  %v3175_v23 = vpop.eup %2724 }
 0x11a   : > { %v3152_v63 = vpop.f32.mrb[24].mxu0  ;;  %v1321_v41 = vsel %vm1257_vm3, %v1225_v46, %v1289_v24  ;;  %v973_v5 = vmul.f32 %v3102_v12, %v941_v30  ;;  %v1067_v22 = vsub.f32 0.0, %v3125_v1  ;;  %v3181_v38 = vadd.f32 %v2969_v57, %v3023_v42 }
 0x11b   : > { %v3156_v43 = vpop.f32.mrb[25].mxu0  ;;  %v1353_v26 = vadd.f32 1.0, %v1321_v41  ;;  %v1384_v46 = vmul.f32 %v1352_v39, %v3027_v44  ;;  %v816_v62 = vadd.f32 -1.4531521, %v784_v11  ;;  %v1191_v51 = vmul.f32 %v2723_v29, %v1031_v34 }
 0x11c   : > { %v3163_v19 = vpop.f32.mrb[26].mxu0  ;;  %v1036_v33 = vmul.f32 %v3083_v37, %v1004_v0  ;;  %v782_v24 = vmul.f32 1.0614054, %v3175_v23  ;;  %v3193_v44 = vand.u32 2147483647, %v3169_v47  ;;  %v1104_v13 = vmul.f32 %v1072_v14, %v3081_v36 }
 0x11d   : > { %v3171_v49 = vpop.f32.mrb[27].mxu0  ;;  %v1385_v54 = vmul.f32 %v1353_v26, %v3036_v56  ;;  %v1222_v56 = vsub.f32 1.0, %v3165_v35  ;;  %v848_v40 = vmul.f32 %v3154_v27, %v816_v62  ;;  %2732 = vpow2.f32 %v1134_v58  ;;  %v2727_v37 = vpop.eup %2726 }
 0x11e   : > { %v1005_v39 = vadd.f32 0.2548296, %v973_v5  ;;  %v814_v30 = vadd.f32 -1.4531521, %v782_v24  ;;  %v657_v41 = vmul.f32 0.3275911, %v3193_v44  ;;  %v1099_v34 = vmul.f32 %v1067_v22, %v3125_v1 }
 0x11f   : > { %v1415_v42 = vpack.c.bf16 %v1385_v54, %v1384_v46  ;;  %v880_v0 = vadd.f32 1.4214138, %v848_v40  ;;  %v1070_v29 = vsub.f32 0.0, %v3097_v55  ;;  %v3205_v35 = vmul.f32 0.70710677, %v3181_v38  ;;  %v3212_v46 = vpop.eup %2728 }
 0x120   : > { %v1223_v36 = vsub.f32 1.0, %v1191_v51  ;;  %v1196_v58 = vmul.f32 %v2727_v37, %v1036_v33  ;;  %v846_v14 = vmul.f32 %v3175_v23, %v814_v30  ;;  %v689_v11 = vadd.f32 1.0, %v657_v41  ;;  %3950 = vst [vmem:[#allocation8_spill] sm:$0xff] %v3212_v46 }
 0x121   : > { %2516 = vst [vmem:[%s3188_s30 + $0x8] sm:$0xff] %v1415_v42   ;;  %v912_v54 = vmul.f32 %v3154_v27, %v880_v0  ;;  %v1146_v1 = vmul.f32 1.442695, %v1104_v13  ;;  %v3216_v22 = vand.u32 2147483647, %v3205_v35  ;;  %v3220_v62 = vadd.f32 %v3041_v59, %v2969_v57 }
 0x122   : > { %v3207_v26 = vpop.f32.mrb[28].mxu0  ;;  %v1286_v51 = vsub.f32 0.0, %v1222_v56  ;;  %v1037_v33 = vmul.f32 %v3102_v12, %v1005_v39  ;;  %v878_v42 = vadd.f32 1.4214138, %v846_v14  ;;  %2734 = vrcp.f32 %v689_v11 }
 0x123   : > { %3948 = vst [vmem:[#allocation6_spill] sm:$0xff] %v3207_v26  ;;  %v3210_v5 = vpop.f32.mrb[29].mxu0  ;;  %2736 = vrcp.f32 %v683_v6  ;;  %v944_v13 = vadd.f32 -0.28449672, %v912_v54  ;;  %v655_v30 = vmul.f32 0.3275911, %v3216_v22  ;;  %v2731_v41 = vpop.eup %2730  ;;  %v1102_v46 = vmul.f32 %v1070_v29, %v3097_v55 }
 0x124   : > { %3949 = vst [vmem:[#allocation7_spill] sm:$0xff] %v3210_v5  ;;  %v3222_v24 = vpop.f32.mrb[30].mxu0  ;;  %v1287_v37 = vsub.f32 0.0, %v1223_v36  ;;  %v1228_v0 = vsub.f32 1.0, %v1196_v58  ;;  %v910_v59 = vmul.f32 %v3175_v23, %v878_v42  ;;  %2738 = vpow2.f32 %v1146_v1 }
 0x125   : > { %3951 = vst [vmem:[#allocation9_spill] sm:$0xff] %v3222_v24  ;;  %v3225_v40 = vpop.f32.mrb[31].mxu0  ;;  %v1136_v24 = vmul.f32 1.442695, %v1099_v34  ;;  %v687_v12 = vadd.f32 1.0, %v655_v30  ;;  %v1318_v14 = vsel %vm1254_vm4, %v1222_v56, %v1286_v51  ;;  %v1197_v6 = vmul.f32 %v2731_v41, %v1037_v33 }
 0x126   : > { %3952 = vst [vmem:[#allocation10_spill] sm:$0xff] %v3225_v40  ;;  %v3232_v39 = vmul.f32 0.70710677, %v3220_v62  ;;  %v976_v11 = vmul.f32 %v3154_v27, %v944_v13  ;;  %v3239_v54 = vadd.f32 %v2969_v57, %v3045_v4  ;;  %v3242_v58 = vmul.f32 0.5, %v3054_v9 }
 0x127   : > { %v942_v55 = vadd.f32 -0.28449672, %v910_v59  ;;  %2740 = vrcp.f32 %v687_v12  ;;  %v3247_v29 = vpop.eup %2732  ;;  %v1319_v2 = vsel %vm1255_vm5, %v1223_v36, %v1287_v37  ;;  %v1292_v56 = vsub.f32 0.0, %v1228_v0 }
 0x128   : > { %v3245_v34 = vand.u32 2147483647, %v3232_v39  ;;  %3953 = vst [vmem:[#allocation11_spill] sm:$0xff] %v3247_v29  ;;  %v1142_v1 = vmul.f32 1.442695, %v1102_v46  ;;  %v1073_v51 = vsub.f32 0.0, %v3193_v44  ;;  %2742 = vpow2.f32 %v1136_v24 }
 0x129   : > { %v1350_v33 = vadd.f32 1.0, %v1318_v14  ;;  %v3255_v9 = vmul.f32 0.70710677, %v3239_v54  ;;  %v1229_v42 = vsub.f32 1.0, %v1197_v6  ;;  %v1008_v13 = vadd.f32 0.2548296, %v976_v11 }
 0x12a   : > { %v660_v4 = vmul.f32 0.3275911, %v3245_v34  ;;  %v3258_v30 = vmul.f32 0.5, %v3077_v3  ;;  %v1351_v36 = vadd.f32 1.0, %v1319_v2  ;;  %v974_v46 = vmul.f32 %v3175_v23, %v942_v55 }
 0x12b   : > { %v3266_v24 = vand.u32 2147483647, %v3255_v9  ;;  %v1324_v59 = vsel %vm1260_vm6, %v1228_v0, %v1292_v56  ;;  %2744 = vpow2.f32 %v1142_v1  ;;  %v1105_v3 = vmul.f32 %v1073_v51, %v3193_v44 }
 0x12c   : > { %v692_v41 = vadd.f32 1.0, %v660_v4  ;;  %v3268_v37 = vpop.eup %2734  ;;  %v3274_v12 = vmul.f32 0.70710677, %v3262_v7  ;;  %v3279_v14 = vmul.f32 %v1350_v33, %v3030_v48  ;;  %v3282_v6 = vmul.f32 0.5, %v3149_v16 }
 0x12d   : > { %v3276_v10 = vpop.eup %2736  ;;  %v785_v11 = vmul.f32 1.0614054, %v3268_v37  ;;  %v1293_v55 = vsub.f32 0.0, %v1229_v42  ;;  %v1040_v25 = vmul.f32 %v3154_v27, %v1008_v13  ;;  %v658_v0 = vmul.f32 0.3275911, %v3266_v24 }
 0x12e   : > { %3954 = vst [vmem:[#allocation12_spill] sm:$0xff] %v3276_v10  ;;  %3955 = vst [vmem:[#allocation13_spill] sm:$0xff] %v3279_v14  ;;  %2746 = vrcp.f32 %v692_v41  ;;  %v3288_v44 = vand.u32 2147483647, %v3274_v12  ;;  %v2739_v2 = vpop.eup %2738  ;;  %v3291_v56 = vmul.f32 %v1351_v36, %v3060_v15  ;;  %v1356_v48 = vadd.f32 1.0, %v1324_v59 }
 0x12f   : > { %v1006_v1 = vadd.f32 0.2548296, %v974_v46  ;;  %v817_v51 = vadd.f32 -1.4531521, %v785_v11  ;;  %v1148_v16 = vmul.f32 1.442695, %v1105_v3  ;;  %v3296_v41 = vadd.f32 %v2969_v57, %v3065_v17 }
 0x130   : > { %3956 = vst [vmem:[#allocation14_spill] sm:$0xff] %v3291_v56  ;;  %v690_v33 = vadd.f32 1.0, %v658_v0  ;;  %v661_v4 = vmul.f32 0.3275911, %v3288_v44  ;;  %v3302_v29 = vmul.f32 0.5, %v3181_v38  ;;  %v1071_v15 = vsub.f32 0.0, %v3216_v22 }
 0x131   : > { %v3298_v27 = vpop.eup %2740  ;;  %v849_v13 = vmul.f32 %v3268_v37, %v817_v51  ;;  %v1076_v36 = vsub.f32 0.0, %v3245_v34  ;;  %v1325_v46 = vsel %vm1261_vm7, %v1229_v42, %v1293_v55  ;;  %v1200_v59 = vmul.f32 %v2739_v2, %v1040_v25 }
 0x132   : > { %v783_v3 = vmul.f32 1.0614054, %v3298_v27  ;;  %2748 = vrcp.f32 %v690_v33  ;;  %v3309_v17 = vpop.eup %2742  ;;  %v3312_v11 = vmul.f32 %v1356_v48, %v3106_v53  ;;  %v1038_v0 = vmul.f32 %v3175_v23, %v1006_v1 }
 0x133   : > { %3957 = vst [vmem:[#allocation15_spill] sm:$0xff] %v3309_v17  ;;  %v881_v38 = vadd.f32 1.4214138, %v849_v13  ;;  %v693_v51 = vadd.f32 1.0, %v661_v4  ;;  %2750 = vpow2.f32 %v1148_v16  ;;  %v3316_v40 = vmul.f32 0.5, %v3220_v62 }
 0x134   : > { %3958 = vst [vmem:[#allocation16_spill] sm:$0xff] %v3312_v11  ;;  %v815_v10 = vadd.f32 -1.4531521, %v783_v3  ;;  %v3319_v28 = vmul.f32 0.70710677, %v3296_v41  ;;  %v1357_v42 = vadd.f32 1.0, %v1325_v46  ;;  %v1103_v25 = vmul.f32 %v1071_v15, %v3216_v22 }
 0x135   : > { %v913_v55 = vmul.f32 %v3268_v37, %v881_v38  ;;  %v1108_v53 = vmul.f32 %v1076_v36, %v3245_v34  ;;  %v2745_v2 = vpop.eup %2744  ;;  %v1232_v48 = vsub.f32 1.0, %v1200_v59  ;;  %2752 = vrcp.f32 %v693_v51 }
 0x136   : > { %v847_v23 = vmul.f32 %v3298_v27, %v815_v10  ;;  %v3327_v62 = vand.u32 2147483647, %v3319_v28  ;;  %v1198_v16 = vmul.f32 %v2745_v2, %v1038_v0  ;;  %v1074_v4 = vsub.f32 0.0, %v3266_v24 }
 0x137   : > { %v945_v33 = vadd.f32 -0.28449672, %v913_v55  ;;  %v3334_v22 = vadd.f32 %v3092_v50, %v2969_v57  ;;  %v3340_v10 = vadd.f32 %v2969_v57, %v3099_v60  ;;  %v3343_v36 = vmul.f32 %v1357_v42, %v3140_v52 }
 0x138   : > { %v3329_v1 = vpop.eup %2746  ;;  %v879_v34 = vadd.f32 1.4214138, %v847_v23  ;;  %v659_v15 = vmul.f32 0.3275911, %v3327_v62  ;;  %v1144_v46 = vmul.f32 1.442695, %v1103_v25  ;;  %v1106_v60 = vmul.f32 %v1074_v4, %v3266_v24 }
 0x139   : > { %v788_v13 = vmul.f32 1.0614054, %v3329_v1  ;;  %3959 = vst [vmem:[#allocation17_spill] sm:$0xff] %v3343_v36  ;;  %v3346_v59 = vmul.f32 0.5, %v3239_v54  ;;  %v3349_v3 = vmul.f32 0.70710677, %v3334_v22  ;;  %v977_v54 = vmul.f32 %v3268_v37, %v945_v33 }
 0x13a   : > { %v911_v50 = vmul.f32 %v3298_v27, %v879_v34  ;;  %v1154_v38 = vmul.f32 1.442695, %v1108_v53  ;;  %v691_v51 = vadd.f32 1.0, %v659_v15  ;;  %v1296_v55 = vsub.f32 0.0, %v1232_v48 }
 0x13b   : > { %v820_v0 = vadd.f32 -1.4531521, %v788_v13  ;;  %v1230_v2 = vsub.f32 1.0, %v1198_v16  ;;  %v3355_v52 = vand.u32 2147483647, %v3349_v3  ;;  %v3367_v13 = vmul.f32 0.5, %v3262_v7 }
 0x13c   : > { %v3357_v42 = vpop.eup %2748  ;;  %2754 = vrcp.f32 %v691_v51  ;;  %v3362_v23 = vmul.f32 0.70710677, %v3340_v10  ;;  %v943_v53 = vadd.f32 -0.28449672, %v911_v50  ;;  %v1077_v15 = vsub.f32 0.0, %v3288_v44 }
 0x13d   : > { %v852_v25 = vmul.f32 %v3329_v1, %v820_v0  ;;  %2756 = vpow2.f32 %v1144_v46  ;;  %v786_v16 = vmul.f32 1.0614054, %v3357_v42  ;;  %v664_v34 = vmul.f32 0.3275911, %v3355_v52  ;;  %v2751_v24 = vpop.eup %2750 }
 0x13e   : > { %v3371_v33 = vand.u32 2147483647, %v3362_v23  ;;  %v1328_v0 = vsel %vm1264_vm8, %v1232_v48, %v1296_v55  ;;  %v1294_v51 = vsub.f32 0.0, %v1230_v2  ;;  %v1009_v36 = vadd.f32 0.2548296, %v977_v54 }
 0x13f   : > { %v884_v4 = vadd.f32 1.4214138, %v852_v25  ;;  %v818_v50 = vadd.f32 -1.4531521, %v786_v16  ;;  %v696_v46 = vadd.f32 1.0, %v664_v34  ;;  %v3375_v17 = vpop.eup %2752  ;;  %v975_v5 = vmul.f32 %v3298_v27, %v943_v53 }
 0x140   : > { %v1150_v25 = vmul.f32 1.442695, %v1106_v60  ;;  %v662_v7 = vmul.f32 0.3275911, %v3371_v33  ;;  %v789_v14 = vmul.f32 1.0614054, %v3375_v17  ;;  %v1109_v48 = vmul.f32 %v1077_v15, %v3288_v44 }
 0x141   : > { %v916_v11 = vmul.f32 %v3329_v1, %v884_v4  ;;  %v850_v56 = vmul.f32 %v3357_v42, %v818_v50  ;;  %2758 = vrcp.f32 %v696_v46  ;;  %v1075_v55 = vsub.f32 0.0, %v3327_v62 }
 0x142   : > { %v694_v16 = vadd.f32 1.0, %v662_v7  ;;  %v1360_v34 = vadd.f32 1.0, %v1328_v0  ;;  %2760 = vpow2.f32 %v1154_v38  ;;  %v821_v4 = vadd.f32 -1.4531521, %v789_v14 }
 0x143   : > { %v948_v21 = vadd.f32 -0.28449672, %v916_v11  ;;  %v882_v54 = vadd.f32 1.4214138, %v850_v56  ;;  %v1326_v60 = vsel %vm1262_vm9, %v1230_v2, %v1294_v51  ;;  %v1041_v53 = vmul.f32 %v3268_v37, %v1009_v36 }
 0x144   : > { %2762 = vpow2.f32 %v1150_v25  ;;  %v1007_v26 = vadd.f32 0.2548296, %v975_v5  ;;  %v853_v44 = vmul.f32 %v3375_v17, %v821_v4  ;;  %v1156_v38 = vmul.f32 1.442695, %v1109_v48 }
 0x145   : > { %v980_v50 = vmul.f32 %v3329_v1, %v948_v21  ;;  %v914_v11 = vmul.f32 %v3357_v42, %v882_v54  ;;  %2764 = vrcp.f32 %v694_v16  ;;  %v1107_v14 = vmul.f32 %v1075_v55, %v3327_v62 }
 0x146   : > { %v3390_v15 = vpop.eup %2754  ;;  %v1080_v45 = vsub.f32 0.0, %v3355_v52  ;;  %v885_v37 = vadd.f32 1.4214138, %v853_v44  ;;  %v3397_v5 = vadd.f32 %v3110_v18, %v2969_v57  ;;  %v3400_v51 = vmul.f32 %v1360_v34, %v3242_v58 }
 0x147   : > { %v1012_v0 = vadd.f32 0.2548296, %v980_v50  ;;  %v2757_v56 = vpop.eup %2756  ;;  %v946_v2 = vadd.f32 -0.28449672, %v914_v11  ;;  %v787_v36 = vmul.f32 1.0614054, %v3390_v15  ;;  %v1201_v25 = vmul.f32 %v2751_v24, %v1041_v53 }
 0x148   : > { %v1358_v46 = vadd.f32 1.0, %v1326_v60  ;;  %v3403_v7 = vmul.f32 0.5, %v3296_v41  ;;  %v1039_v62 = vmul.f32 %v3298_v27, %v1007_v26  ;;  %v917_v48 = vmul.f32 %v3375_v17, %v885_v37 }
 0x149   : > { %v978_v21 = vmul.f32 %v3357_v42, %v946_v2  ;;  %v819_v55 = vadd.f32 -1.4531521, %v787_v36  ;;  %2766 = vpow2.f32 %v1156_v38  ;;  %v1152_v16 = vmul.f32 1.442695, %v1107_v14 }
 0x14a   : > { %v1112_v18 = vmul.f32 %v1080_v45, %v3355_v52  ;;  %v3410_v54 = vmul.f32 0.70710677, %v3397_v5  ;;  %vm1265_vm10 = vcmp.ge.f32.partialorder %v3169_v47, 0.0  ;;  %v1044_v41 = vmul.f32 %v3329_v1, %v1012_v0 }
 0x14b   : > { %v3412_v58 = vpop.eup %2758  ;;  %v1010_v24 = vadd.f32 0.2548296, %v978_v21  ;;  %v949_v26 = vadd.f32 -0.28449672, %v917_v48  ;;  %v851_v27 = vmul.f32 %v3390_v15, %v819_v55  ;;  %v3418_v34 = vmul.f32 %v1358_v46, %v3258_v30 }
 0x14c   : > { %v1233_v4 = vsub.f32 1.0, %v1201_v25  ;;  %v792_v60 = vmul.f32 1.0614054, %v3412_v58  ;;  %v633_v52 = vand.u32 2147483647, %v3410_v54  ;;  %v2761_v53 = vpop.eup %2760  ;;  %v1199_v50 = vmul.f32 %v2757_v56, %v1039_v62 }
 0x14d   : > { %v1042_v11 = vmul.f32 %v3357_v42, %v1010_v24  ;;  %v981_v44 = vmul.f32 %v3375_v17, %v949_v26  ;;  %v883_v38 = vadd.f32 1.4214138, %v851_v27  ;;  %2768 = vpow2.f32 %v1152_v16 }
 0x14e   : > { %v2763_v1 = vpop.eup %2762  ;;  %v824_v0 = vadd.f32 -1.4531521, %v792_v60  ;;  %v1162_v14 = vmul.f32 1.442695, %v1112_v18  ;;  %v665_v45 = vmul.f32 0.3275911, %v633_v52  ;;  %v1204_v30 = vmul.f32 %v2761_v53, %v1044_v41 }
 0x14f   : > { %v3424_v2 = vpop.eup %2764  ;;  %v1013_v37 = vadd.f32 0.2548296, %v981_v44  ;;  %v915_v36 = vmul.f32 %v3390_v15, %v883_v38  ;;  %v1078_v46 = vsub.f32 0.0, %v3371_v33  ;;  %v1297_v25 = vsub.f32 0.0, %v1233_v4 }
 0x150   : > { %vm1263_vm11 = vcmp.ge.f32.partialorder %v3205_v35, 0.0  ;;  %v856_v42 = vmul.f32 %v3412_v58, %v824_v0  ;;  %v790_v56 = vmul.f32 1.0614054, %v3424_v2  ;;  %v697_v62 = vadd.f32 1.0, %v665_v45 }
 0x151   : > { %v1231_v21 = vsub.f32 1.0, %v1199_v50  ;;  %v1202_v48 = vmul.f32 %v2763_v1, %v1042_v11  ;;  %v947_v55 = vadd.f32 -0.28449672, %v915_v36  ;;  %v3433_v16 = vadd.f32 %v2969_v57, %v3115_v32 }
 0x152   : > { %v1045_v18 = vmul.f32 %v3375_v17, %v1013_v37  ;;  %v888_v41 = vadd.f32 1.4214138, %v856_v42  ;;  %v822_v24 = vadd.f32 -1.4531521, %v790_v56  ;;  %2770 = vrcp.f32 %v697_v62 }
 0x153   : > { %v1236_v26 = vsub.f32 1.0, %v1204_v30  ;;  %vm1268_vm12 = vcmp.ge.f32.partialorder %v3232_v39, 0.0  ;;  %v979_v27 = vmul.f32 %v3390_v15, %v947_v55  ;;  %v3439_v60 = vmul.f32 0.5, %v3334_v22  ;;  %v2767_v50 = vpop.eup %2766 }
 0x154   : > { %v1110_v53 = vmul.f32 %v1078_v46, %v3371_v33  ;;  %v1329_v32 = vsel %vm1265_vm10, %v1233_v4, %v1297_v25  ;;  %v920_v11 = vmul.f32 %v3412_v58, %v888_v41  ;;  %2772 = vpow2.f32 %v1162_v14 }
 0x155   : > { %v854_v17 = vmul.f32 %v3424_v2, %v822_v24  ;;  %v1295_v44 = vsub.f32 0.0, %v1231_v21  ;;  %vm1266_vm13 = vcmp.ge.f32.partialorder %v3255_v9, 0.0  ;;  %v1011_v38 = vadd.f32 0.2548296, %v979_v27 }
 0x156   : > { %v1081_v1 = vsub.f32 0.0, %v633_v52  ;;  %v3448_v0 = vmul.f32 0.70710677, %v3433_v16  ;;  %v1234_v22 = vsub.f32 1.0, %v1202_v48  ;;  %v1205_v45 = vmul.f32 %v2767_v50, %v1045_v18 }
 0x157   : > { %v952_v33 = vadd.f32 -0.28449672, %v920_v11  ;;  %v886_v30 = vadd.f32 1.4214138, %v854_v17  ;;  %v1361_v37 = vadd.f32 1.0, %v1329_v32  ;;  %v1300_v47 = vsub.f32 0.0, %v1236_v26  ;;  %v2769_v14 = vpop.eup %2768 }
 0x158   : > { %v1158_v4 = vmul.f32 1.442695, %v1110_v53  ;;  %v631_v36 = vand.u32 2147483647, %v3448_v0  ;;  %v1043_v46 = vmul.f32 %v3390_v15, %v1011_v38  ;;  %v512_v56 = vadd.f32 %v3121_v61, %v2969_v57 }
 0x159   : > { %v984_v25 = vmul.f32 %v3412_v58, %v952_v33  ;;  %v918_v42 = vmul.f32 %v3424_v2, %v886_v30  ;;  %v1327_v62 = vsel %vm1263_vm11, %v1231_v21, %v1295_v44  ;;  %vm1269_vm14 = vcmp.ge.f32.partialorder %v3274_v12, 0.0 }
 0x15a   : > { %v3460_v48 = vmul.f32 0.5, %v3340_v10  ;;  %v1113_v55 = vmul.f32 %v1081_v1, %v633_v52  ;;  %v663_v18 = vmul.f32 0.3275911, %v631_v36  ;;  %v1298_v41 = vsub.f32 0.0, %v1234_v22 }
 0x15b   : > { %v1237_v24 = vsub.f32 1.0, %v1205_v45  ;;  %v1016_v15 = vadd.f32 0.2548296, %v984_v25  ;;  %v950_v27 = vadd.f32 -0.28449672, %v918_v42  ;;  %v3463_v53 = vmul.f32 %v1361_v37, %v3282_v6 }
 0x15c   : > { %2774 = vpow2.f32 %v1158_v4  ;;  %v695_v50 = vadd.f32 1.0, %v663_v18  ;;  %v3465_v57 = vmul.f32 0.70710677, %v512_v56  ;;  %v3467_v61 = vpop.eup %2770  ;;  %v1359_v35 = vadd.f32 1.0, %v1327_v62  ;;  %v3477_v6 = vld [vmem:[%s3933_s2] ss:$0 sm:$0xff] }
 0x15d   : > { %v1332_v10 = vsel %vm1268_vm12, %v1236_v26, %v1300_v47  ;;  %v1203_v21 = vmul.f32 %v2769_v14, %v1043_v46  ;;  %v982_v52 = vmul.f32 %v3424_v2, %v950_v27  ;;  %v1048_v32 = vmul.f32 %v3412_v58, %v1016_v15 }
 0x15e   : > { %v793_v11 = vmul.f32 1.0614054, %v3467_v61  ;;  %2776 = vrcp.f32 %v695_v50  ;;  %v3481_v17 = vadd.f32 %v3477_v6, %v3127_v8  ;;  %v2773_v44 = vpop.eup %2772  ;;  %v1330_v39 = vsel %vm1266_vm13, %v1234_v22, %v1298_v41 }
 0x15f   : > { %v1301_v26 = vsub.f32 0.0, %v1237_v24  ;;  %v1164_v38 = vmul.f32 1.442695, %v1113_v55  ;;  %v636_v58 = vand.u32 2147483647, %v3465_v57  ;;  %vm1267_vm15 = vcmp.ge.f32.partialorder %v3319_v28, 0.0 }
 0x160   : > { %v1014_v1 = vadd.f32 0.2548296, %v982_v52  ;;  %v3488_v45 = vmul.f32 0.5, %v3397_v5  ;;  %v825_v33 = vadd.f32 -1.4531521, %v793_v11  ;;  %v1079_v30 = vsub.f32 0.0, %v631_v36 }
 0x161   : > { %v3491_v37 = vmul.f32 %v1359_v35, %v3302_v29  ;;  %v1364_v8 = vadd.f32 1.0, %v1332_v10  ;;  %v1235_v47 = vsub.f32 1.0, %v1203_v21  ;;  %v668_v4 = vmul.f32 0.3275911, %v636_v58 }
 0x162   : > { %v1362_v9 = vadd.f32 1.0, %v1330_v39  ;;  %v1208_v22 = vmul.f32 %v2773_v44, %v1048_v32  ;;  %v857_v14 = vmul.f32 %v3467_v61, %v825_v33  ;;  %v3495_v46 = vmul.f32 0.70710677, %v3481_v17 }
 0x163   : > { %v1333_v25 = vsel %vm1269_vm14, %v1237_v24, %v1301_v26  ;;  %2778 = vpow2.f32 %v1164_v38  ;;  %v700_v5 = vadd.f32 1.0, %v668_v4  ;;  %v515_v42 = vadd.f32 %v3477_v6, %v3132_v20 }
 0x164   : > { %v1046_v29 = vmul.f32 %v3424_v2, %v1014_v1  ;;  %v889_v62 = vadd.f32 1.4214138, %v857_v14  ;;  %v1111_v55 = vmul.f32 %v1079_v30, %v631_v36  ;;  %v634_v18 = vand.u32 2147483647, %v3495_v46 }
 0x165   : > { %v3504_v41 = vmul.f32 %v1364_v8, %v3316_v40  ;;  %v1299_v15 = vsub.f32 0.0, %v1235_v47  ;;  %vm1272_vm0 = vcmp.ge.f32.partialorder %v3349_v3, 0.0  ;;  %v3508_v12 = vmul.f32 0.5, %v3433_v16 }
 0x166   : > { %2780 = vrcp.f32 %v700_v5  ;;  %v2775_v24 = vpop.eup %2774  ;;  %v1365_v27 = vadd.f32 1.0, %v1333_v25  ;;  %v1240_v50 = vsub.f32 1.0, %v1208_v22  ;;  %v921_v20 = vmul.f32 %v3467_v61, %v889_v62 }
 0x167   : > { %v666_v2 = vmul.f32 0.3275911, %v634_v18  ;;  %v3512_v36 = vmul.f32 %v1362_v9, %v3346_v59  ;;  %v3514_v35 = vmul.f32 0.5, %v512_v56  ;;  %v1084_v40 = vsub.f32 0.0, %v636_v58 }
 0x168   : > { %v3516_v10 = vmul.f32 0.70710677, %v515_v42  ;;  %v3518_v21 = vpop.eup %2776  ;;  %v1206_v52 = vmul.f32 %v2775_v24, %v1046_v29  ;;  %v953_v16 = vadd.f32 -0.28449672, %v921_v20  ;;  %v1160_v32 = vmul.f32 1.442695, %v1111_v55 }
 0x169   : > { %v698_v11 = vadd.f32 1.0, %v666_v2  ;;  %v1331_v44 = vsel %vm1267_vm15, %v1235_v47, %v1299_v15  ;;  %v791_v39 = vmul.f32 1.0614054, %v3518_v21  ;;  %v3526_v59 = vadd.f32 %v3477_v6, %v3135_v31 }
 0x16a   : > { %v637_v26 = vand.u32 2147483647, %v3516_v10  ;;  %v3529_v56 = vmul.f32 %v1365_v27, %v3367_v13  ;;  %v1304_v38 = vsub.f32 0.0, %v1240_v50  ;;  %v985_v1 = vmul.f32 %v3467_v61, %v953_v16 }
 0x16b   : > { %2782 = vrcp.f32 %v698_v11  ;;  %vm1270_vm1 = vcmp.ge.f32.partialorder %v3362_v23, 0.0  ;;  %v823_v33 = vadd.f32 -1.4531521, %v791_v39  ;;  %v1116_v28 = vmul.f32 %v1084_v40, %v636_v58 }
 0x16c   : > { %v669_v30 = vmul.f32 0.3275911, %v637_v26  ;;  %v3535_v8 = vadd.f32 %v3477_v6, %v3152_v63  ;;  %v1363_v47 = vadd.f32 1.0, %v1331_v44  ;;  %v1238_v4 = vsub.f32 1.0, %v1206_v52 }
 0x16d   : > { %v1017_v31 = vadd.f32 0.2548296, %v985_v1  ;;  %2784 = vpow2.f32 %v1160_v32  ;;  %v2779_v9 = vpop.eup %2778  ;;  %v855_v13 = vmul.f32 %v3518_v21, %v823_v33  ;;  %v3539_v22 = vmul.f32 0.5, %v3481_v17 }
 0x16e   : > { %v701_v14 = vadd.f32 1.0, %v669_v30  ;;  %v3542_v25 = vmul.f32 0.70710677, %v3526_v59  ;;  %v1336_v58 = vsel %vm1272_vm0, %v1240_v50, %v1304_v38  ;;  %v1082_v5 = vsub.f32 0.0, %v634_v18 }
 0x16f   : > { %v1049_v63 = vmul.f32 %v3467_v61, %v1017_v31  ;;  %v3548_v29 = vmul.f32 0.70710677, %v3535_v8  ;;  %v887_v55 = vadd.f32 1.4214138, %v855_v13  ;;  %v1170_v15 = vmul.f32 1.442695, %v1116_v28 }
 0x170   : > { %v3550_v62 = vpop.eup %2780  ;;  %2786 = vrcp.f32 %v701_v14  ;;  %v635_v17 = vand.u32 2147483647, %v3542_v25  ;;  %v3554_v24 = vmul.f32 %v1363_v47, %v3403_v7  ;;  %v1302_v27 = vsub.f32 0.0, %v1238_v4 }
 0x171   : > { %v796_v3 = vmul.f32 1.0614054, %v3550_v62  ;;  %v640_v50 = vand.u32 2147483647, %v3548_v29  ;;  %v1209_v61 = vmul.f32 %v2779_v9, %v1049_v63  ;;  %v919_v20 = vmul.f32 %v3518_v21, %v887_v55 }
 0x172   : > { %v3559_v2 = vmul.f32 0.5, %v515_v42  ;;  %v667_v40 = vmul.f32 0.3275911, %v635_v17  ;;  %v1368_v52 = vadd.f32 1.0, %v1336_v58  ;;  %v1114_v32 = vmul.f32 %v1082_v5, %v634_v18 }
 0x173   : > { %v828_v16 = vadd.f32 -1.4531521, %v796_v3  ;;  %v672_v11 = vmul.f32 0.3275911, %v640_v50  ;;  %v951_v44 = vadd.f32 -0.28449672, %v919_v20  ;;  %2788 = vpow2.f32 %v1170_v15 }
 0x174   : > { %v1085_v39 = vsub.f32 0.0, %v637_v26  ;;  %v699_v7 = vadd.f32 1.0, %v667_v40  ;;  %v1334_v1 = vsel %vm1270_vm1, %v1238_v4, %v1302_v27  ;;  %vm1273_vm2 = vcmp.ge.f32.partialorder %v3410_v54, 0.0 }
 0x175   : > { %v3561_v38 = vpop.eup %2782  ;;  %v860_v33 = vmul.f32 %v3550_v62, %v828_v16  ;;  %v704_v42 = vadd.f32 1.0, %v672_v11  ;;  %v3569_v28 = vadd.f32 %v3477_v6, %v3156_v43  ;;  %v1241_v18 = vsub.f32 1.0, %v1209_v61 }
 0x176   : > { %v983_v30 = vmul.f32 %v3518_v21, %v951_v44  ;;  %v794_v47 = vmul.f32 1.0614054, %v3561_v38  ;;  %2790 = vrcp.f32 %v699_v7  ;;  %v3574_v9 = vmul.f32 %v1368_v52, %v3439_v60 }
 0x177   : > { %v2785_v31 = vpop.eup %2784  ;;  %v892_v23 = vadd.f32 1.4214138, %v860_v33  ;;  %v1166_v4 = vmul.f32 1.442695, %v1114_v32  ;;  %2792 = vrcp.f32 %v704_v42  ;;  %v1117_v58 = vmul.f32 %v1085_v39, %v637_v26 }
 0x178   : > { %v1015_v13 = vadd.f32 0.2548296, %v983_v30  ;;  %v826_v14 = vadd.f32 -1.4531521, %v794_v47  ;;  %v1083_v63 = vsub.f32 0.0, %v635_v17  ;;  %v1366_v5 = vadd.f32 1.0, %v1334_v1 }
 0x179   : > { %v924_v43 = vmul.f32 %v3550_v62, %v892_v23  ;;  %v3578_v55 = vmul.f32 0.5, %v3526_v59  ;;  %v3581_v15 = vmul.f32 0.70710677, %v3569_v28  ;;  %v1305_v60 = vsub.f32 0.0, %v1241_v18 }
 0x17a   : > { %v3583_v27 = vpop.eup %2786  ;;  %v858_v3 = vmul.f32 %v3561_v38, %v826_v14  ;;  %v1088_v61 = vsub.f32 0.0, %v640_v50  ;;  %v3588_v20 = vadd.f32 %v3477_v6, %v3163_v19  ;;  %v1047_v26 = vmul.f32 %v3518_v21, %v1015_v13 }
 0x17b   : > { %v956_v40 = vadd.f32 -0.28449672, %v924_v43  ;;  %v797_v52 = vmul.f32 1.0614054, %v3583_v27  ;;  %v3593_v59 = vand.u32 2147483647, %v3581_v15  ;;  %2794 = vpow2.f32 %v1166_v4 }
 0x17c   : > { %v890_v16 = vadd.f32 1.4214138, %v858_v3  ;;  %v1172_v32 = vmul.f32 1.442695, %v1117_v58  ;;  %v1115_v11 = vmul.f32 %v1083_v63, %v635_v17  ;;  %v3597_v7 = vmul.f32 0.5, %v3535_v8 }
 0x17d   : > { %v988_v44 = vmul.f32 %v3550_v62, %v956_v40  ;;  %v829_v39 = vadd.f32 -1.4531521, %v797_v52  ;;  %v670_v19 = vmul.f32 0.3275911, %v3593_v59  ;;  %v2789_v1 = vpop.eup %2788  ;;  %v1337_v21 = vsel %vm1273_vm2, %v1241_v18, %v1305_v60 }
 0x17e   : > { %v922_v33 = vmul.f32 %v3561_v38, %v890_v16  ;;  %v1120_v42 = vmul.f32 %v1088_v61, %v640_v50  ;;  %v3604_v30 = vmul.f32 0.70710677, %v3588_v20  ;;  %v1207_v47 = vmul.f32 %v2785_v31, %v1047_v26 }
 0x17f   : > { %v1020_v17 = vadd.f32 0.2548296, %v988_v44  ;;  %v861_v23 = vmul.f32 %v3583_v27, %v829_v39  ;;  %v702_v4 = vadd.f32 1.0, %v670_v19  ;;  %2796 = vpow2.f32 %v1172_v32 }
 0x180   : > { %v3607_v13 = vpop.eup %2790  ;;  %v954_v8 = vadd.f32 -0.28449672, %v922_v33  ;;  %v1168_v14 = vmul.f32 1.442695, %v1115_v11  ;;  %v3610_v58 = vand.u32 2147483647, %v3604_v30  ;;  %v3621_v16 = vmul.f32 %v1366_v5, %v3460_v48 }
 0x181   : > { %v3612_v54 = vpop.eup %2792  ;;  %v1052_v50 = vmul.f32 %v3550_v62, %v1020_v17  ;;  %v893_v18 = vadd.f32 1.4214138, %v861_v23  ;;  %v795_v63 = vmul.f32 1.0614054, %v3607_v13  ;;  %2798 = vrcp.f32 %v702_v4 }
 0x182   : > { %v1369_v31 = vadd.f32 1.0, %v1337_v21  ;;  %v986_v43 = vmul.f32 %v3561_v38, %v954_v8  ;;  %v800_v60 = vmul.f32 1.0614054, %v3612_v54  ;;  %v1178_v3 = vmul.f32 1.442695, %v1120_v42 }
 0x183   : > { %v1239_v61 = vsub.f32 1.0, %v1207_v47  ;;  %vm1271_vm3 = vcmp.ge.f32.partialorder %v3448_v0, 0.0  ;;  %v1212_v26 = vmul.f32 %v2789_v1, %v1052_v50  ;;  %v925_v40 = vmul.f32 %v3583_v27, %v893_v18 }
 0x184   : > { %v827_v52 = vadd.f32 -1.4531521, %v795_v63  ;;  %v1018_v62 = vadd.f32 0.2548296, %v986_v43  ;;  %v832_v32 = vadd.f32 -1.4531521, %v800_v60  ;;  %2800 = vpow2.f32 %v1168_v14 }
 0x185   : > { %v673_v11 = vmul.f32 0.3275911, %v3610_v58  ;;  %v957_v44 = vadd.f32 -0.28449672, %v925_v40  ;;  %v3627_v19 = vadd.f32 %v3477_v6, %v3171_v49  ;;  %v2795_v21 = vpop.eup %2794  ;;  %vm1276_vm4 = vcmp.ge.f32.partialorder %v3465_v57, 0.0 }
 0x186   : > { %v859_v39 = vmul.f32 %v3607_v13, %v827_v52  ;;  %v1050_v1 = vmul.f32 %v3561_v38, %v1018_v62  ;;  %v864_v48 = vmul.f32 %v3612_v54, %v832_v32  ;;  %v1086_v5 = vsub.f32 0.0, %v3593_v59 }
 0x187   : > { %v705_v33 = vadd.f32 1.0, %v673_v11  ;;  %v1244_v42 = vsub.f32 1.0, %v1212_v26  ;;  %v989_v47 = vmul.f32 %v3583_v27, %v957_v44  ;;  %2802 = vpow2.f32 %v1178_v3 }
 0x188   : > { %v891_v17 = vadd.f32 1.4214138, %v859_v39  ;;  %v1303_v23 = vsub.f32 0.0, %v1239_v61  ;;  %v896_v4 = vadd.f32 1.4214138, %v864_v48  ;;  %v3635_v49 = vmul.f32 0.5, %v3569_v28 }
 0x189   : > { %2804 = vrcp.f32 %v705_v33  ;;  %v1210_v8 = vmul.f32 %v2795_v21, %v1050_v1  ;;  %v1021_v14 = vadd.f32 0.2548296, %v989_v47  ;;  %v3639_v50 = vmul.f32 0.70710677, %v3627_v19  ;;  %v2797_v18 = vpop.eup %2796 }
 0x18a   : > { %v923_v38 = vmul.f32 %v3607_v13, %v891_v17  ;;  %v3642_v63 = vmul.f32 %v1369_v31, %v3488_v45  ;;  %v928_v43 = vmul.f32 %v3612_v54, %v896_v4  ;;  %v1118_v60 = vmul.f32 %v1086_v5, %v3593_v59 }
 0x18b   : > { %v1089_v3 = vsub.f32 0.0, %v3610_v58  ;;  %v3647_v28 = vpop.eup %2798  ;;  %v1308_v26 = vsub.f32 0.0, %v1244_v42  ;;  %v1053_v40 = vmul.f32 %v3583_v27, %v1021_v14  ;;  %v639_v62 = vand.u32 2147483647, %v3639_v50 }
 0x18c   : > { %v955_v52 = vadd.f32 -0.28449672, %v923_v38  ;;  %v1335_v32 = vsel %vm1271_vm3, %v1239_v61, %v1303_v23  ;;  %vm1274_vm5 = vcmp.ge.f32.partialorder %v3495_v46, 0.0  ;;  %v960_v45 = vadd.f32 -0.28449672, %v928_v43 }
 0x18d   : > { %v798_v31 = vmul.f32 1.0614054, %v3647_v28  ;;  %v3656_v59 = vmul.f32 0.5, %v3588_v20  ;;  %v1242_v11 = vsub.f32 1.0, %v1210_v8  ;;  %v1213_v44 = vmul.f32 %v2797_v18, %v1053_v40  ;;  %v3960_v8 = vld [vmem:[#allocation6_spill] sm:$0xff] }
 0x18e   : > { %vm1277_vm6 = vcmp.ge.f32.partialorder %v3516_v10, 0.0  ;;  %v987_v27 = vmul.f32 %v3607_v13, %v955_v52  ;;  %v671_v39 = vmul.f32 0.3275911, %v639_v62  ;;  %v992_v21 = vmul.f32 %v3612_v54, %v960_v45  ;;  %v2801_v48 = vpop.eup %2800 }
 0x18f   : > { %v830_v1 = vadd.f32 -1.4531521, %v798_v31  ;;  %v1174_v0 = vmul.f32 1.442695, %v1118_v60  ;;  %v1121_v61 = vmul.f32 %v1089_v3, %v3610_v58  ;;  %v1340_v5 = vsel %vm1276_vm4, %v1244_v42, %v1308_v26 }
 0x190   : > { %v1245_v33 = vsub.f32 1.0, %v1213_v44  ;;  %v1019_v20 = vadd.f32 0.2548296, %v987_v27  ;;  %v703_v47 = vadd.f32 1.0, %v671_v39  ;;  %v1024_v17 = vadd.f32 0.2548296, %v992_v21 }
 0x191   : > { %v862_v23 = vmul.f32 %v3647_v28, %v830_v1  ;;  %v1087_v4 = vsub.f32 0.0, %v639_v62  ;;  %v3667_v14 = vadd.f32 %v3477_v6, %v3960_v8  ;;  %v2803_v38 = vpop.eup %2802  ;;  %v1367_v18 = vadd.f32 1.0, %v1335_v32 }
 0x192   : > { %v1306_v43 = vsub.f32 0.0, %v1242_v11  ;;  %v1051_v58 = vmul.f32 %v3607_v13, %v1019_v20  ;;  %2806 = vrcp.f32 %v703_v47  ;;  %v1309_v57 = vsub.f32 0.0, %v1245_v33  ;;  %v3962_v20 = vld [vmem:[#allocation14_spill] sm:$0xff] }
 0x193   : > { %v3670_v60 = vpop.eup %2804  ;;  %v1056_v42 = vmul.f32 %v3612_v54, %v1024_v17  ;;  %v894_v3 = vadd.f32 1.4214138, %v862_v23  ;;  %2808 = vpow2.f32 %v1174_v0  ;;  %v1372_v26 = vadd.f32 1.0, %v1340_v5  ;;  %v3961_v5 = vld [vmem:[#allocation13_spill] sm:$0xff] }
 0x194   : > { %v1211_v40 = vmul.f32 %v2801_v48, %v1051_v58  ;;  %v801_v52 = vmul.f32 1.0614054, %v3670_v60  ;;  %v3675_v45 = vmul.f32 0.70710677, %v3667_v14  ;;  %vm1275_vm7 = vcmp.ge.f32.partialorder %v3542_v25, 0.0 }
 0x195   : > { %v1216_v32 = vmul.f32 %v2803_v38, %v1056_v42  ;;  %v926_v13 = vmul.f32 %v3647_v28, %v894_v3  ;;  %v1180_v31 = vmul.f32 1.442695, %v1121_v61  ;;  %v1119_v44 = vmul.f32 %v1087_v4, %v639_v62 }
 0x196   : > { %v1338_v27 = vsel %vm1274_vm5, %v1242_v11, %v1306_v43  ;;  %v1243_v54 = vsub.f32 1.0, %v1211_v40  ;;  %vm1280_vm8 = vcmp.ge.f32.partialorder %v3548_v29, 0.0  ;;  %v833_v39 = vadd.f32 -1.4531521, %v801_v52  ;;  %v2831_v43 = vld [vmem:[%s3188_s30 + $0x8] sm:$0xff]  ;;  %v3964_v52 = vld [vmem:[#allocation9_spill] sm:$0xff] }
 0x197   : > { %v644_v21 = vand.u32 2147483647, %v3675_v45  ;;  %v1341_v1 = vsel %vm1277_vm6, %v1245_v33, %v1309_v57  ;;  %v1248_v0 = vsub.f32 1.0, %v1216_v32  ;;  %v958_v48 = vadd.f32 -0.28449672, %v926_v13  ;;  %v3963_v33 = vld [vmem:[#allocation7_spill] sm:$0xff] }
 0x198   : > { %v1414_v61 = vpack.c.bf16 %v3962_v20, %v3961_v5  ;;  %v3688_v62 = vmul.f32 %v1367_v18, %v3508_v12  ;;  %v865_v46 = vmul.f32 %v3670_v60, %v833_v39  ;;  %v3692_v11 = vmul.f32 0.5, %v3627_v19 }
 0x199   : > { %v676_v47 = vmul.f32 0.3275911, %v644_v21  ;;  %v1370_v17 = vadd.f32 1.0, %v1338_v27  ;;  %v990_v23 = vmul.f32 %v3647_v28, %v958_v48  ;;  %v1176_v10 = vmul.f32 1.442695, %v1119_v44 }
 0x19a   : > { %2637 = vmatprep.mubr.bf16.mxu0 %v1414_v61  ;;  %2360 = vst [vmem:[%s3188_s30] sm:$0xff] %v1414_v61   ;;  %v3698_v4 = vadd.f32 %v3477_v6, %v3963_v33  ;;  %v1373_v8 = vadd.f32 1.0, %v1341_v1  ;;  %v1307_v38 = vsub.f32 0.0, %v1243_v54  ;;  %v897_v12 = vadd.f32 1.4214138, %v865_v46 }
 0x19b   : > { %v708_v18 = vadd.f32 1.0, %v676_v47  ;;  %2638 = vmatmul.mubr.bf16.vlgmr.msra.gmra.mrb[32].mxu0 %v2831_v43  ;;  %v3702_v19 = vmul.f32 %v1372_v26, %v3514_v35  ;;  %v1312_v58 = vsub.f32 0.0, %v1248_v0  ;;  %v1022_v57 = vadd.f32 0.2548296, %v990_v23 }
 0x19c   : > { %2810 = vpow2.f32 %v1180_v31  ;;  %v3704_v42 = vpop.eup %2806  ;;  %vm1278_vm9 = vcmp.ge.f32.partialorder %v3581_v15, 0.0  ;;  %v929_v3 = vmul.f32 %v3670_v60, %v897_v12  ;;  %v1092_v40 = vsub.f32 0.0, %v644_v21 }
 0x19d   : > { %2812 = vrcp.f32 %v708_v18  ;;  %v3710_v32 = vadd.f32 %v3477_v6, %v3964_v52  ;;  %v2809_v13 = vpop.eup %2808  ;;  %v3713_v44 = vmul.f32 %v1370_v17, %v3539_v22  ;;  %v1054_v35 = vmul.f32 %v3647_v28, %v1022_v57 }
 0x19e   : > { %v799_v26 = vmul.f32 1.0614054, %v3704_v42  ;;  %v3718_v31 = vmul.f32 0.70710677, %v3698_v4  ;;  %v3721_v27 = vmul.f32 %v1373_v8, %v3559_v2  ;;  %v1339_v39 = vsel %vm1275_vm7, %v1243_v54, %v1307_v38  ;;  %v3965_v2 = vld [vmem:[#allocation10_spill] sm:$0xff] }
 0x19f   : > { %v961_v1 = vadd.f32 -0.28449672, %v929_v3  ;;  %2814 = vpow2.f32 %v1176_v10  ;;  %v1344_v48 = vsel %vm1280_vm8, %v1248_v0, %v1312_v58  ;;  %v1214_v22 = vmul.f32 %v2809_v13, %v1054_v35 }
 0x1a0   : > { %v831_v5 = vadd.f32 -1.4531521, %v799_v26  ;;  %v642_v28 = vand.u32 2147483647, %v3718_v31  ;;  %v1124_v61 = vmul.f32 %v1092_v40, %v644_v21  ;;  %v3730_v46 = vmul.f32 0.70710677, %v3710_v32 }
 0x1a1   : > { %v993_v20 = vmul.f32 %v3670_v60, %v961_v1  ;;  %v3734_v47 = vadd.f32 %v3477_v6, %v3965_v2  ;;  %v1246_v25 = vsub.f32 1.0, %v1214_v22  ;;  %v1371_v0 = vadd.f32 1.0, %v1339_v39 }
 0x1a2   : > { %v863_v54 = vmul.f32 %v3704_v42, %v831_v5  ;;  %v674_v17 = vmul.f32 0.3275911, %v642_v28  ;;  %v1090_v29 = vsub.f32 0.0, %v642_v28  ;;  %v1376_v23 = vadd.f32 1.0, %v1344_v48 }
 0x1a3   : > { %v1025_v10 = vadd.f32 0.2548296, %v993_v20  ;;  %v645_v33 = vand.u32 2147483647, %v3730_v46  ;;  %v1310_v8 = vsub.f32 0.0, %v1246_v25  ;;  %vm1281_vm10 = vcmp.ge.f32.partialorder %v3604_v30, 0.0 }
 0x1a4   : > { %v895_v21 = vadd.f32 1.4214138, %v863_v54  ;;  %v706_v38 = vadd.f32 1.0, %v674_v17  ;;  %v1122_v12 = vmul.f32 %v1090_v29, %v642_v28  ;;  %v1186_v6 = vmul.f32 1.442695, %v1124_v61  ;;  %v3966_v61 = vld [vmem:[#allocation8_spill] sm:$0xff] }
 0x1a5   : > { %v1057_v18 = vmul.f32 %v3670_v60, %v1025_v10  ;;  %v677_v43 = vmul.f32 0.3275911, %v645_v33  ;;  %v3741_v58 = vmul.f32 0.70710677, %v3734_v47  ;;  %v1342_v3 = vsel %vm1278_vm9, %v1246_v25, %v1310_v8 }
 0x1a6   : > { %v2811_v57 = vpop.eup %2810  ;;  %v927_v40 = vmul.f32 %v3704_v42, %v895_v21  ;;  %2816 = vrcp.f32 %v706_v38  ;;  %v1093_v52 = vsub.f32 0.0, %v645_v33  ;;  %v1374_v35 = vadd.f32 1.0, %v1342_v3 }
 0x1a7   : > { %v3746_v13 = vpop.eup %2812  ;;  %v1217_v26 = vmul.f32 %v2811_v57, %v1057_v18  ;;  %v1182_v39 = vmul.f32 1.442695, %v1122_v12  ;;  %v709_v1 = vadd.f32 1.0, %v677_v43  ;;  %v3749_v60 = vmul.f32 %v1371_v0, %v3578_v55  ;;  %v3967_v0 = vld [vmem:[#allocation12_spill] sm:$0xff]  ;;  %v3969_v43 = vld [vmem:[#allocation17_spill] sm:$0xff] }
 0x1a8   : > { %v959_v48 = vadd.f32 -0.28449672, %v927_v40  ;;  %v804_v22 = vmul.f32 1.0614054, %v3746_v13  ;;  %v3753_v5 = vand.u32 2147483647, %v3741_v58  ;;  %v3756_v28 = vmul.f32 %v1376_v23, %v3597_v7 }
 0x1a9   : > { %v2815_v15 = vpop.eup %2814  ;;  %v1249_v20 = vsub.f32 1.0, %v1217_v26  ;;  %2818 = vrcp.f32 %v709_v1  ;;  %v778_v2 = vmul.f32 1.0614054, %v3966_v61  ;;  %v1125_v29 = vmul.f32 %v1093_v52, %v645_v33 }
 0x1aa   : > { %v991_v25 = vmul.f32 %v3704_v42, %v959_v48  ;;  %v836_v54 = vadd.f32 -1.4531521, %v804_v22  ;;  %2820 = vpow2.f32 %v1186_v6  ;;  %v675_v55 = vmul.f32 0.3275911, %v3753_v5  ;;  %v3968_v6 = vld [vmem:[#allocation16_spill] sm:$0xff] }
 0x1ab   : > { %v1313_v17 = vsub.f32 0.0, %v1249_v20  ;;  %2822 = vpow2.f32 %v1182_v39  ;;  %v779_v10 = vmul.f32 1.0614054, %v3967_v0  ;;  %v3763_v8 = vmul.f32 %v1374_v35, %v3635_v49 }
 0x1ac   : > { %v1023_v7 = vadd.f32 0.2548296, %v991_v25  ;;  %v868_v23 = vmul.f32 %v3746_v13, %v836_v54  ;;  %v707_v21 = vadd.f32 1.0, %v675_v55  ;;  %vm1279_vm11 = vcmp.ge.f32.partialorder %v3639_v50, 0.0 }
 0x1ad   : > { %v1345_v38 = vsel %vm1281_vm10, %v1249_v20, %v1313_v17  ;;  %v810_v12 = vadd.f32 -1.4531521, %v778_v2  ;;  %v811_v18 = vadd.f32 -1.4531521, %v779_v10  ;;  %v3771_v33 = vpack.c.bf16 %v3969_v43, %v3968_v6 }
 0x1ae   : > { %v1377_v57 = vadd.f32 1.0, %v1345_v38  ;;  %v1055_v49 = vmul.f32 %v3704_v42, %v1023_v7  ;;  %v900_v3 = vadd.f32 1.4214138, %v868_v23  ;;  %2824 = vrcp.f32 %v707_v21 }
 0x1af   : > { %v1188_v40 = vmul.f32 1.442695, %v1125_v29  ;;  %v842_v52 = vmul.f32 %v3966_v61, %v810_v12  ;;  %v843_v30 = vmul.f32 %v3967_v0, %v811_v18  ;;  %2518 = vst [vmem:[%s3188_s30 + $0x18] sm:$0xff] %v3771_v33   ;;  %v3780_v35 = vpack.c.bf16 %v3491_v37, %v3418_v34 }
 0x1b0   : > { %v3782_v26 = vpop.eup %2816  ;;  %v1215_v39 = vmul.f32 %v2815_v15, %v1055_v49  ;;  %v932_v42 = vmul.f32 %v3746_v13, %v900_v3  ;;  %v1091_v1 = vsub.f32 0.0, %v3753_v5  ;;  %v3788_v48 = vpack.c.bf16 %v3463_v53, %v3400_v51 }
 0x1b1   : > { %v1409_v22 = vmul.f32 %v1377_v57, %v3656_v59  ;;  %v802_v20 = vmul.f32 1.0614054, %v3782_v26  ;;  %v874_v2 = vadd.f32 1.4214138, %v842_v52  ;;  %v875_v25 = vadd.f32 1.4214138, %v843_v30 }
 0x1b2   : > { %2519 = vst [vmem:[%s3188_s30 + $0x20] sm:$0xff] %v3780_v35   ;;  %v1247_v34 = vsub.f32 1.0, %v1215_v39  ;;  %v964_v37 = vadd.f32 -0.28449672, %v932_v42  ;;  %2520 = vst [vmem:[%s3188_s30 + $0x28] sm:$0xff] %v3788_v48   ;;  %v3798_v15 = vpack.c.bf16 %v3554_v24, %v3512_v36  ;;  %v3802_v51 = vpack.c.bf16 %v3529_v56, %v3504_v41 }
 0x1b3   : > { %v3804_v53 = vpop.eup %2818  ;;  %v834_v59 = vadd.f32 -1.4531521, %v802_v20  ;;  %v906_v54 = vmul.f32 %v3966_v61, %v874_v2  ;;  %v907_v55 = vmul.f32 %v3967_v0, %v875_v25  ;;  %v3810_v17 = vpack.c.bf16 %v3688_v62, %v3621_v16  ;;  %v3970_v25 = vld [vmem:[#allocation11_spill] sm:$0xff] }
 0x1b4   : > { %v2821_v29 = vpop.eup %2820  ;;  %v1311_v36 = vsub.f32 0.0, %v1247_v34  ;;  %v996_v24 = vmul.f32 %v3746_v13, %v964_v37  ;;  %v805_v41 = vmul.f32 1.0614054, %v3804_v53  ;;  %2521 = vst [vmem:[%s3188_s30 + $0x30] sm:$0xff] %v3798_v15   ;;  %2522 = vst [vmem:[%s3188_s30 + $0x38] sm:$0xff] %v3802_v51   ;;  %v3820_v56 = vpack.c.bf16 %v3642_v63, %v3574_v9 }
 0x1b5   : > { %v2823_v10 = vpop.eup %2822  ;;  %v866_v16 = vmul.f32 %v3782_v26, %v834_v59  ;;  %v938_v62 = vadd.f32 -0.28449672, %v906_v54  ;;  %v939_v7 = vadd.f32 -0.28449672, %v907_v55  ;;  %2523 = vst [vmem:[%s3188_s30 + $0x40] sm:$0xff] %v3810_v17   ;;  %v3827_v23 = vpack.c.bf16 %v3749_v60, %v3713_v44  ;;  %v3971_v59 = vld [vmem:[#allocation15_spill] sm:$0xff] }
 0x1b6   : > { %v1343_v21 = vsel %vm1279_vm11, %v1247_v34, %v1311_v36  ;;  %v1028_v38 = vadd.f32 0.2548296, %v996_v24  ;;  %v837_v12 = vadd.f32 -1.4531521, %v805_v41  ;;  %2524 = vst [vmem:[%s3188_s30 + $0x48] sm:$0xff] %v3820_v56   ;;  %v3835_v9 = vpack.c.bf16 %v3721_v27, %v3702_v19 }
 0x1b7   : > { %v1375_v63 = vadd.f32 1.0, %v1343_v21  ;;  %v898_v18 = vadd.f32 1.4214138, %v866_v16  ;;  %v970_v6 = vmul.f32 %v3966_v61, %v938_v62  ;;  %v971_v43 = vmul.f32 %v3967_v0, %v939_v7  ;;  %2525 = vst [vmem:[%s3188_s30 + $0x50] sm:$0xff] %v3827_v23   ;;  %v3972_v62 = vld [vmem:[#allocation2_spill] sm:$0xff]  ;;  %v3973_v21 = vld [vmem:[#allocation3_spill] sm:$0xff] }
 0x1b8   : > { %v3841_v44 = vpop.eup %2824  ;;  %v1060_v50 = vmul.f32 %v3746_v13, %v1028_v38  ;;  %v869_v60 = vmul.f32 %v3804_v53, %v837_v12  ;;  %v1123_v57 = vmul.f32 %v1091_v1, %v3753_v5  ;;  %2526 = vst [vmem:[%s3188_s30 + $0x58] sm:$0xff] %v3835_v9   ;;  %v3849_v19 = vpack.c.bf16 %v1409_v22, %v3756_v28 }
 0x1b9   : > { %v1407_v27 = vmul.f32 %v1375_v63, %v3692_v11  ;;  %v930_v49 = vmul.f32 %v3782_v26, %v898_v18  ;;  %v803_v3 = vmul.f32 1.0614054, %v3841_v44  ;;  %v1002_v52 = vadd.f32 0.2548296, %v970_v6  ;;  %v3974_v63 = vld [vmem:[#allocation5_spill] sm:$0xff] }
 0x1ba   : > { %v901_v30 = vadd.f32 1.4214138, %v869_v60  ;;  %2826 = vpow2.f32 %v1188_v40  ;;  %v1003_v13 = vadd.f32 0.2548296, %v971_v43  ;;  %2528 = vst [vmem:[%s3188_s30 + $0x68] sm:$0xff] %v3849_v19   ;;  %v1220_v1 = vmul.f32 %v2821_v29, %v1060_v50 }
 0x1bb   : > { %v962_v39 = vadd.f32 -0.28449672, %v930_v49  ;;  %v835_v5 = vadd.f32 -1.4531521, %v803_v3  ;;  %v1034_v42 = vmul.f32 %v3966_v61, %v1002_v52  ;;  %v3858_v28 = vpack.c.bf16 %v1407_v27, %v3763_v8  ;;  %v3975_v49 = vld [vmem:[#allocation4_spill] sm:$0xff] }
 0x1bc   : > { %v933_v11 = vmul.f32 %v3804_v53, %v901_v30  ;;  %v1184_v22 = vmul.f32 1.442695, %v1123_v57  ;;  %v1035_v20 = vmul.f32 %v3967_v0, %v1003_v13  ;;  %v1252_v29 = vsub.f32 1.0, %v1220_v1 }
 0x1bd   : > { %v994_v2 = vmul.f32 %v3782_v26, %v962_v39  ;;  %v867_v40 = vmul.f32 %v3841_v44, %v835_v5  ;;  %v1194_v34 = vmul.f32 %v3970_v25, %v1034_v42  ;;  %2527 = vst [vmem:[%s3188_s30 + $0x60] sm:$0xff] %v3858_v28   ;;  %v554_v7 = vmul.f32 0.5, %v3972_v62 }
 0x1be   : > { %v965_v37 = vadd.f32 -0.28449672, %v933_v11  ;;  %v1195_v61 = vmul.f32 %v3971_v59, %v1035_v20  ;;  %2828 = vpow2.f32 %v1184_v22  ;;  %vm1258_vm12 = vcmp.ge.f32.partialorder %v3973_v21, 0.0 }
 0x1bf   : > { %v1026_v54 = vadd.f32 0.2548296, %v994_v2  ;;  %v899_v8 = vadd.f32 1.4214138, %v867_v40  ;;  %v1226_v55 = vsub.f32 1.0, %v1194_v34  ;;  %vm1259_vm13 = vcmp.ge.f32.partialorder %v3974_v63, 0.0 }
 0x1c0   : > { %v997_v36 = vmul.f32 %v3804_v53, %v965_v37  ;;  %v1227_v24 = vsub.f32 1.0, %v1195_v61  ;;  %v1316_v60 = vsub.f32 0.0, %v1252_v29  ;;  %v555_v3 = vmul.f32 0.5, %v3975_v49 }
 0x1c1   : > { %v1058_v0 = vmul.f32 %v3782_v26, %v1026_v54  ;;  %v931_v41 = vmul.f32 %v3841_v44, %v899_v8  ;;  %v1290_v16 = vsub.f32 0.0, %v1226_v55  ;;  %vm1284_vm14 = vcmp.ge.f32.partialorder %v3675_v45, 0.0 }
 0x1c2   : > { %v1029_v38 = vadd.f32 0.2548296, %v997_v36  ;;  %v1291_v12 = vsub.f32 0.0, %v1227_v24  ;;  %v1348_v1 = vsel %vm1284_vm14, %v1252_v29, %v1316_v60  ;;  %vm1285_vm15 = vcmp.ge.f32.partialorder %v3730_v46, 0.0 }
 0x1c3   : > { %v1218_v18 = vmul.f32 %v2823_v10, %v1058_v0  ;;  %v963_v6 = vadd.f32 -0.28449672, %v931_v41  ;;  %v1322_v43 = vsel %vm1258_vm12, %v1226_v55, %v1290_v16  ;;  %v1380_v25 = vadd.f32 1.0, %v1348_v1 }
 0x1c4   : > { %v2827_v50 = vpop.eup %2826  ;;  %v1061_v57 = vmul.f32 %v3804_v53, %v1029_v38  ;;  %v1323_v27 = vsel %vm1259_vm13, %v1227_v24, %v1291_v12  ;;  %v1354_v26 = vadd.f32 1.0, %v1322_v43  ;;  %v580_v37 = vmul.f32 0.5, %v3667_v14 }
 0x1c5   : > { %v1250_v52 = vsub.f32 1.0, %v1218_v18  ;;  %v995_v30 = vmul.f32 %v3841_v44, %v963_v6  ;;  %v1355_v13 = vadd.f32 1.0, %v1323_v27  ;;  %vm1282_vm0 = vcmp.ge.f32.partialorder %v3718_v31, 0.0 }
 0x1c6   : > { %v1221_v39 = vmul.f32 %v2827_v50, %v1061_v57  ;;  %v1386_v10 = vmul.f32 %v1354_v26, %v554_v7  ;;  %v1412_v8 = vmul.f32 %v1380_v25, %v580_v37  ;;  %vm1283_vm1 = vcmp.ge.f32.partialorder %v3741_v58, 0.0 }
 0x1c7   : > { %v1027_v5 = vadd.f32 0.2548296, %v995_v30  ;;  %v1387_v42 = vmul.f32 %v1355_v13, %v555_v3  ;;  %v1314_v22 = vsub.f32 0.0, %v1250_v52  ;;  %v578_v36 = vmul.f32 0.5, %v3698_v4 }
 0x1c8   : > { %v1253_v11 = vsub.f32 1.0, %v1221_v39  ;;  %v2829_v2 = vpop.eup %2828  ;;  %vm2065_vm2 = vcmask 1040384  }
 0x1c9   : > { %v1059_v53 = vmul.f32 %v3841_v44, %v1027_v5  ;;  %v1416_v20 = vpack.c.bf16 %v1387_v42, %v1386_v10  ;;  %v1346_v59 = vsel %vm1282_vm0, %v1250_v52, %v1314_v22  ;;  %v581_v44 = vmul.f32 0.5, %v3710_v32 }
 0x1ca   : > { %v1317_v40 = vsub.f32 0.0, %v1253_v11  ;;  %v1378_v29 = vadd.f32 1.0, %v1346_v59 }
 0x1cb   : > { %v1219_v34 = vmul.f32 %v2829_v2, %v1059_v53  ;;  %2641 = vmatprep.mubr.bf16.mxu1 %v1416_v20  ;;  %2517 = vst [vmem:[%s3188_s30 + $0x10] sm:$0xff] %v1416_v20  }
 0x1cc   : > { %v1349_v45 = vsel %vm1285_vm15, %v1253_v11, %v1317_v40  ;;  %2642 = vmatmul.mubr.bf16.vlgmr.msra.gmra.mrb[0].mxu1 %v3771_v33  ;;  %v579_v33 = vmul.f32 0.5, %v3734_v47  ;;  %v1410_v32 = vmul.f32 %v1378_v29, %v578_v36 }
 0x1cd   : > { %v1381_v61 = vadd.f32 1.0, %v1349_v45  ;;  %v1251_v54 = vsub.f32 1.0, %v1219_v34  ;;  %2645 = vmatprep.mubr.bf16.mxu1 %v3780_v35 }
 0x1cf   : > { %v1413_v46 = vmul.f32 %v1381_v61, %v581_v44  ;;  %v1315_v55 = vsub.f32 0.0, %v1251_v54 }
 0x1d1   : > { %v1347_v14 = vsel %vm1283_vm1, %v1251_v54, %v1315_v55  ;;  %v1429_v31 = vpack.c.bf16 %v1413_v46, %v1412_v8 }
 0x1d2   : > { %v1379_v24 = vadd.f32 1.0, %v1347_v14 }
 0x1d3   : > { %2530 = vst [vmem:[%s3188_s30 + $0x78] sm:$0xff] %v1429_v31  }
 0x1d4   : > { %v1411_v0 = vmul.f32 %v1379_v24, %v579_v33  ;;  %2646 = vmatmul.mubr.bf16.gmra.mrb[4].mxu1 %v3788_v48 }
 0x1d5   : > { %2649 = vmatprep.mubr.bf16.mxu1 %v3798_v15 }
 0x1d6   : > { %v1428_v35 = vpack.c.bf16 %v1411_v0, %v1410_v32 }
 0x1d8   : > { %2529 = vst [vmem:[%s3188_s30 + $0x70] sm:$0xff] %v1428_v35  }
 0x1dc   : > { %2650 = vmatmul.mubr.bf16.gmra.mrb[8].mxu1 %v3802_v51 }
 0x1dd   : > { %2653 = vmatprep.mubr.bf16.mxu1 %v3810_v17 }
 0x1e4   : > { %2654 = vmatmul.mubr.bf16.gmra.mrb[12].mxu1 %v3820_v56 }
 0x1e5   : > { %2657 = vmatprep.mubr.bf16.mxu1 %v3827_v23 }
 0x1ec   : > { %2658 = vmatmul.mubr.bf16.gmra.mrb[16].mxu1 %v3835_v9 }
 0x1ed   : > { %2661 = vmatprep.mubr.bf16.mxu1 %v3858_v28 }
 0x1f4   : > { %2662 = vmatmul.mubr.bf16.gmra.mrb[20].mxu1 %v3849_v19 }
 0x1f5   : > { %2665 = vmatprep.mubr.bf16.mxu1 %v1428_v35 }
 0x1fc   : > { %2666 = vmatmul.mubr.bf16.gmra.mrb[24].mxu1 %v1429_v31 }
 0x26e   : > { %v2639_v4 = vpop.f32.mrb[32].mxu0 }
 0x26f   : > { %v1528_v47 = vpop.f32.mrb[33].mxu0  ;;  %v1998_v9 = vmul.f32 %v2639_v4, %v2639_v4 }
 0x270   : > { %v2640_v58 = vpop.f32.mrb[34].mxu0  ;;  %v1996_v51 = vmul.f32 %v1528_v47, %v1528_v47 }
 0x271   : > { %v2444_v48 = vpack.c.bf16 %v2640_v58, %v2639_v4  ;;  %v1531_v15 = vpop.f32.mrb[35].mxu0  ;;  %v1999_v41 = vmul.f32 %v2640_v58, %v2640_v58 }
 0x272   : > { %v2439_v17 = vpack.c.bf16 %v1531_v15, %v1528_v47  ;;  %v1959_v56 = vadd.f32 %v1531_v15, %v1528_v47  ;;  %v1997_v23 = vmul.f32 %v1531_v15, %v1531_v15 }
 0x273   : > { %2531 = vst [vmem:[%s3905_s11 + $0x8] sm:$0xff] %v2444_v48  }
 0x274   : > { %2440 = vst [vmem:[%s3905_s11] sm:$0xff] %v2439_v17   ;;  %v1960_v19 = vadd.f32 %v2639_v4, %v1959_v56  ;;  %v2028_v28 = vadd.f32 %v1997_v23, %v1996_v51 }
 0x276   : > { %v2029_v16 = vadd.f32 %v2028_v28, %v1998_v9  ;;  %v1961_v62 = vadd.f32 %v2640_v58, %v1960_v19 }
 0x278   : > { %v2030_v7 = vadd.f32 %v2029_v16, %v1999_v41 }
 0x29f   : > { %v2643_v21 = vpop.f32.mrb[0].mxu1 }
 0x2a0   : > { %v1544_v38 = vpop.f32.mrb[1].mxu1  ;;  %v2002_v26 = vmul.f32 %v2643_v21, %v2643_v21 }
 0x2a1   : > { %v1962_v12 = vadd.f32 %v1961_v62, %v1544_v38  ;;  %v2000_v63 = vmul.f32 %v1544_v38, %v1544_v38  ;;  %v2644_v18 = vpop.f32.mrb[2].mxu1 }
 0x2a2   : > { %v2454_v6 = vpack.c.bf16 %v2644_v18, %v2643_v21  ;;  %v1547_v43 = vpop.f32.mrb[3].mxu1  ;;  %v2003_v52 = vmul.f32 %v2644_v18, %v2644_v18 }
 0x2a3   : > { %v2031_v50 = vadd.f32 %v2030_v7, %v2000_v63  ;;  %v2449_v60 = vpack.c.bf16 %v1547_v43, %v1544_v38  ;;  %v1963_v57 = vadd.f32 %v1962_v12, %v1547_v43  ;;  %v2001_v27 = vmul.f32 %v1547_v43, %v1547_v43 }
 0x2a4   : > { %2533 = vst [vmem:[%s3905_s11 + $0x18] sm:$0xff] %v2454_v6  }
 0x2a5   : > { %2532 = vst [vmem:[%s3905_s11 + $0x10] sm:$0xff] %v2449_v60   ;;  %v1964_v49 = vadd.f32 %v2643_v21, %v1963_v57  ;;  %v2032_v3 = vadd.f32 %v2031_v50, %v2001_v27 }
 0x2a7   : > { %v2033_v30 = vadd.f32 %v2032_v3, %v2002_v26  ;;  %v2647_v13 = vpop.f32.mrb[4].mxu1  ;;  %v1965_v39 = vadd.f32 %v2644_v18, %v1964_v49 }
 0x2a8   : > { %v1560_v5 = vpop.f32.mrb[5].mxu1  ;;  %v2006_v34 = vmul.f32 %v2647_v13, %v2647_v13 }
 0x2a9   : > { %v1966_v10 = vadd.f32 %v1965_v39, %v1560_v5  ;;  %v2004_v42 = vmul.f32 %v1560_v5, %v1560_v5  ;;  %v2034_v1 = vadd.f32 %v2033_v30, %v2003_v52  ;;  %v2648_v11 = vpop.f32.mrb[6].mxu1 }
 0x2aa   : > { %v2464_v22 = vpack.c.bf16 %v2648_v11, %v2647_v13  ;;  %v1563_v53 = vpop.f32.mrb[7].mxu1  ;;  %v2007_v59 = vmul.f32 %v2648_v11, %v2648_v11 }
 0x2ab   : > { %v2035_v20 = vadd.f32 %v2034_v1, %v2004_v42  ;;  %v2459_v2 = vpack.c.bf16 %v1563_v53, %v1560_v5  ;;  %v1967_v40 = vadd.f32 %v1966_v10, %v1563_v53  ;;  %v2005_v25 = vmul.f32 %v1563_v53, %v1563_v53 }
 0x2ac   : > { %2535 = vst [vmem:[%s3905_s11 + $0x28] sm:$0xff] %v2464_v22  }
 0x2ad   : > { %2534 = vst [vmem:[%s3905_s11 + $0x20] sm:$0xff] %v2459_v2   ;;  %v1968_v37 = vadd.f32 %v2647_v13, %v1967_v40  ;;  %v2036_v45 = vadd.f32 %v2035_v20, %v2005_v25 }
 0x2af   : > { %v2037_v44 = vadd.f32 %v2036_v45, %v2006_v34  ;;  %v2651_v61 = vpop.f32.mrb[8].mxu1  ;;  %v1969_v54 = vadd.f32 %v2648_v11, %v1968_v37 }
 0x2b0   : > { %v1576_v8 = vpop.f32.mrb[9].mxu1  ;;  %v2010_v35 = vmul.f32 %v2651_v61, %v2651_v61 }
 0x2b1   : > { %v1970_v46 = vadd.f32 %v1969_v54, %v1576_v8  ;;  %v2008_v55 = vmul.f32 %v1576_v8, %v1576_v8  ;;  %v2038_v29 = vadd.f32 %v2037_v44, %v2007_v59  ;;  %v2652_v14 = vpop.f32.mrb[10].mxu1 }
 0x2b2   : > { %v2474_v31 = vpack.c.bf16 %v2652_v14, %v2651_v61  ;;  %v1579_v36 = vpop.f32.mrb[11].mxu1  ;;  %v2011_v58 = vmul.f32 %v2652_v14, %v2652_v14 }
 0x2b3   : > { %v2039_v33 = vadd.f32 %v2038_v29, %v2008_v55  ;;  %v2469_v24 = vpack.c.bf16 %v1579_v36, %v1576_v8  ;;  %v1971_v32 = vadd.f32 %v1970_v46, %v1579_v36  ;;  %v2009_v0 = vmul.f32 %v1579_v36, %v1579_v36 }
 0x2b4   : > { %2537 = vst [vmem:[%s3905_s11 + $0x38] sm:$0xff] %v2474_v31  }
 0x2b5   : > { %2536 = vst [vmem:[%s3905_s11 + $0x30] sm:$0xff] %v2469_v24   ;;  %v1972_v4 = vadd.f32 %v2651_v61, %v1971_v32  ;;  %v2040_v47 = vadd.f32 %v2039_v33, %v2009_v0 }
 0x2b7   : > { %v2041_v48 = vadd.f32 %v2040_v47, %v2010_v35  ;;  %v2655_v15 = vpop.f32.mrb[12].mxu1  ;;  %v1973_v51 = vadd.f32 %v2652_v14, %v1972_v4 }
 0x2b8   : > { %v1592_v17 = vpop.f32.mrb[13].mxu1  ;;  %v2014_v38 = vmul.f32 %v2655_v15, %v2655_v15 }
 0x2b9   : > { %v1974_v56 = vadd.f32 %v1973_v51, %v1592_v17  ;;  %v2012_v23 = vmul.f32 %v1592_v17, %v1592_v17  ;;  %v2042_v9 = vadd.f32 %v2041_v48, %v2011_v58  ;;  %v2656_v19 = vpop.f32.mrb[14].mxu1 }
 0x2ba   : > { %v2484_v28 = vpack.c.bf16 %v2656_v19, %v2655_v15  ;;  %v1595_v41 = vpop.f32.mrb[15].mxu1  ;;  %v2015_v18 = vmul.f32 %v2656_v19, %v2656_v19 }
 0x2bb   : > { %v2043_v16 = vadd.f32 %v2042_v9, %v2012_v23  ;;  %v2479_v62 = vpack.c.bf16 %v1595_v41, %v1592_v17  ;;  %v1975_v7 = vadd.f32 %v1974_v56, %v1595_v41  ;;  %v2013_v21 = vmul.f32 %v1595_v41, %v1595_v41 }
 0x2bc   : > { %2539 = vst [vmem:[%s3905_s11 + $0x48] sm:$0xff] %v2484_v28  }
 0x2bd   : > { %2538 = vst [vmem:[%s3905_s11 + $0x40] sm:$0xff] %v2479_v62   ;;  %v1976_v12 = vadd.f32 %v2655_v15, %v1975_v7  ;;  %v2044_v63 = vadd.f32 %v2043_v16, %v2013_v21 }
 0x2bf   : > { %v2045_v6 = vadd.f32 %v2044_v63, %v2014_v38  ;;  %v2659_v43 = vpop.f32.mrb[16].mxu1  ;;  %v1977_v50 = vadd.f32 %v2656_v19, %v1976_v12 }
 0x2c0   : > { %v1608_v60 = vpop.f32.mrb[17].mxu1  ;;  %v2018_v10 = vmul.f32 %v2659_v43, %v2659_v43 }
 0x2c1   : > { %v1978_v57 = vadd.f32 %v1977_v50, %v1608_v60  ;;  %v2016_v27 = vmul.f32 %v1608_v60, %v1608_v60  ;;  %v2046_v26 = vadd.f32 %v2045_v6, %v2015_v18  ;;  %v2660_v49 = vpop.f32.mrb[18].mxu1 }
 0x2c2   : > { %v2494_v3 = vpack.c.bf16 %v2660_v49, %v2659_v43  ;;  %v1611_v52 = vpop.f32.mrb[19].mxu1  ;;  %v2019_v11 = vmul.f32 %v2660_v49, %v2660_v49 }
 0x2c3   : > { %v2047_v30 = vadd.f32 %v2046_v26, %v2016_v27  ;;  %v2489_v13 = vpack.c.bf16 %v1611_v52, %v1608_v60  ;;  %v1979_v39 = vadd.f32 %v1978_v57, %v1611_v52  ;;  %v2017_v5 = vmul.f32 %v1611_v52, %v1611_v52 }
 0x2c4   : > { %2541 = vst [vmem:[%s3905_s11 + $0x58] sm:$0xff] %v2494_v3  }
 0x2c5   : > { %2540 = vst [vmem:[%s3905_s11 + $0x50] sm:$0xff] %v2489_v13   ;;  %v1980_v42 = vadd.f32 %v2659_v43, %v1979_v39  ;;  %v2048_v1 = vadd.f32 %v2047_v30, %v2017_v5 }
 0x2c7   : > { %v2049_v22 = vadd.f32 %v2048_v1, %v2018_v10  ;;  %v2663_v53 = vpop.f32.mrb[20].mxu1  ;;  %v1981_v20 = vadd.f32 %v2660_v49, %v1980_v42 }
 0x2c8   : > { %v1624_v2 = vpop.f32.mrb[21].mxu1  ;;  %v2022_v46 = vmul.f32 %v2663_v53, %v2663_v53 }
 0x2c9   : > { %v1982_v40 = vadd.f32 %v1981_v20, %v1624_v2  ;;  %v2020_v25 = vmul.f32 %v1624_v2, %v1624_v2  ;;  %v2050_v34 = vadd.f32 %v2049_v22, %v2019_v11  ;;  %v2664_v37 = vpop.f32.mrb[22].mxu1 }
 0x2ca   : > { %v2504_v45 = vpack.c.bf16 %v2664_v37, %v2663_v53  ;;  %v1627_v59 = vpop.f32.mrb[23].mxu1  ;;  %v2023_v14 = vmul.f32 %v2664_v37, %v2664_v37 }
 0x2cb   : > { %v2051_v44 = vadd.f32 %v2050_v34, %v2020_v25  ;;  %v2499_v61 = vpack.c.bf16 %v1627_v59, %v1624_v2  ;;  %v1983_v54 = vadd.f32 %v1982_v40, %v1627_v59  ;;  %v2021_v8 = vmul.f32 %v1627_v59, %v1627_v59 }
 0x2cc   : > { %2543 = vst [vmem:[%s3905_s11 + $0x68] sm:$0xff] %v2504_v45  }
 0x2cd   : > { %2542 = vst [vmem:[%s3905_s11 + $0x60] sm:$0xff] %v2499_v61   ;;  %v1984_v55 = vadd.f32 %v2663_v53, %v1983_v54  ;;  %v2052_v29 = vadd.f32 %v2051_v44, %v2021_v8 }
 0x2cf   : > { %v2053_v31 = vadd.f32 %v2052_v29, %v2022_v46  ;;  %v2667_v36 = vpop.f32.mrb[24].mxu1  ;;  %v1985_v33 = vadd.f32 %v2664_v37, %v1984_v55 }
 0x2d0   : > { %v1640_v24 = vpop.f32.mrb[25].mxu1  ;;  %v2026_v56 = vmul.f32 %v2667_v36, %v2667_v36 }
 0x2d1   : > { %v1986_v32 = vadd.f32 %v1985_v33, %v1640_v24  ;;  %v2024_v0 = vmul.f32 %v1640_v24, %v1640_v24  ;;  %v2054_v35 = vadd.f32 %v2053_v31, %v2023_v14  ;;  %v2668_v4 = vpop.f32.mrb[26].mxu1 }
 0x2d2   : > { %v2514_v47 = vpack.c.bf16 %v2668_v4, %v2667_v36  ;;  %v1643_v58 = vpop.f32.mrb[27].mxu1  ;;  %v2027_v19 = vmul.f32 %v2668_v4, %v2668_v4 }
 0x2d3   : > { %v2055_v48 = vadd.f32 %v2054_v35, %v2024_v0  ;;  %v2509_v15 = vpack.c.bf16 %v1643_v58, %v1640_v24  ;;  %v1987_v51 = vadd.f32 %v1986_v32, %v1643_v58  ;;  %v2025_v17 = vmul.f32 %v1643_v58, %v1643_v58 }
 0x2d4   : > { %2545 = vst [vmem:[%s3905_s11 + $0x78] sm:$0xff] %v2514_v47  }
 0x2d5   : > { %2544 = vst [vmem:[%s3905_s11 + $0x70] sm:$0xff] %v2509_v15   ;;  %v1988_v23 = vadd.f32 %v2667_v36, %v1987_v51  ;;  %v2056_v9 = vadd.f32 %v2055_v48, %v2025_v17 }
 0x2d7   : > { %v1989_v28 = vadd.f32 %v2668_v4, %v1988_v23  ;;  %v2057_v41 = vadd.f32 %v2056_v9, %v2026_v56 }
 0x2d9   : > { %v1990_v16 = vrot.slane %v1989_v28, 4  ;;  %v2058_v62 = vadd.f32 %v2057_v41, %v2027_v19 }
 0x2db   : > { %v1991_v7 = vadd.f32 %v1990_v16, %v1989_v28  ;;  %v2059_v21 = vrot.slane %v2058_v62, 4 }
 0x2dd   : > { %v1992_v38 = vrot.slane %v1991_v7, 2  ;;  %v2060_v12 = vadd.f32 %v2059_v21, %v2058_v62 }
 0x2df   : > { %v1993_v63 = vadd.f32 %v1992_v38, %v1991_v7  ;;  %v2061_v18 = vrot.slane %v2060_v12, 2 }
 0x2e1   : > { %v1994_v6 = vrot.slane %v1993_v63, 1  ;;  %v2062_v43 = vadd.f32 %v2061_v18, %v2060_v12 }
 0x2e3   : > { %v2063_v50 = vrot.slane %v2062_v43, 1  ;;  %v1995_v60 = vadd.f32 %v1994_v6, %v1993_v63 }
 0x2e5   : > { %v2064_v57 = vadd.f32 %v2063_v50, %v2062_v43 }
 0x2e7   : > { %v2066_v27 = vsel %vm2065_vm2, %v1995_v60, %v2064_v57 }
 0x2e8   : > { %2067 = vst [vmem:[%s278_s14] sm:$0x3] %v2066_v27 }
 0x2e9 PF: > { %s17_s21 = sadd.s32 1, %s2838_s21  }
 0x2ea   : > { %p14_p5 = scmp.ge.s32.totalorder %s17_s21, 4  }
 0x2ec   :  { %16 = sbr.rel (!%p14_p5) target bundleno = 1 (0x1), region = 90 }

</bundles_post_ra>
